<compile_context>
chip_gen: v6e
topology: v6e:2x2x1
jax: 0.10.0
libtpu: 0.0.40
codegen_flags: <defaults>
</compile_context>

<pallas_src>
import functools

import jax
import jax.numpy as jnp
from jax.experimental import pallas as pl
from jax.experimental.pallas import tpu as pltpu

# Safe on v5e/v6e (128 MiB physical) and v7x (64 MiB physical); far above the
# few MiB these blocks actually need, so double-buffering always fits.
_VMEM_LIMIT = 32 * 1024 * 1024


# ----------------------------------------------------------------------------
# Pallas kernels
# ----------------------------------------------------------------------------
def _conv_bn_relu_kernel(offsets, m, x_ref, w_ref, s_ref, b_ref, o_ref):
    """K tap-matmuls on the MXU + folded BatchNorm affine + ReLU.

    x_ref: (1, R, Cin)    flattened-spatial input block for one image
    w_ref: (T, Cin, Ct)   per-tap weight matrices (T == len(offsets))
    s_ref: (1, Ct)        folded BN scale
    b_ref: (1, Ct)        folded BN bias
    o_ref: (1, M, Ct)     flattened-spatial output tile
    """
    acc = jnp.zeros(o_ref.shape[1:], jnp.float32)
    for t, ofs in enumerate(offsets):               # static, fully unrolled
        acc = acc + jnp.dot(x_ref[0, ofs:ofs + m, :], w_ref[t],
                            preferred_element_type=jnp.float32)
    # NOTE: on v6e/v7x the matmul inputs could be cast to bf16 for ~2x MXU
    # throughput; kept f32 here so the strict reference check stays tight.
    y = acc * s_ref[...] + b_ref[...]               # f32 epilogue (v5e-safe)
    o_ref[0] = jnp.maximum(y, 0.0)


def _maxpool_kernel(offsets, m, x_ref, o_ref):
    """3x3 / stride-2 / valid max pool over the flattened stride-2 layout.

    x_ref: (1, R, C);  o_ref: (1, M, C)
    """
    acc = x_ref[0, offsets[0]:offsets[0] + m, :]
    for ofs in offsets[1:]:
        acc = jnp.maximum(acc, x_ref[0, ofs:ofs + m, :])
    o_ref[0] = acc


# ----------------------------------------------------------------------------
# pallas_call wrappers (real grid, parallel semantics, lane-dense Cout tiles)
# ----------------------------------------------------------------------------
def _cout_tile(cout):
    for t in (256, 128):
        if cout % t == 0:
            return t
    return cout


def _conv_call(xf, offsets, m, w_taps, scale, bias):
    n, rows, cin = xf.shape
    t, _, cout = w_taps.shape
    tco = _cout_tile(cout)
    kernel = functools.partial(_conv_bn_relu_kernel, tuple(offsets), m)
    return pl.pallas_call(
        kernel,
        out_shape=jax.ShapeDtypeStruct((n, m, cout), jnp.float32),
        grid=(n, cout // tco),
        in_specs=[
            pl.BlockSpec((1, rows, cin), lambda i, j: (i, 0, 0)),
            pl.BlockSpec((t, cin, tco), lambda i, j: (0, 0, j)),
            pl.BlockSpec((1, tco), lambda i, j: (0, j)),
            pl.BlockSpec((1, tco), lambda i, j: (0, j)),
        ],
        out_specs=pl.BlockSpec((1, m, tco), lambda i, j: (i, 0, j)),
        compiler_params=pltpu.CompilerParams(
            dimension_semantics=("parallel", "parallel"),
            vmem_limit_bytes=_VMEM_LIMIT),
    )(xf, w_taps, scale.reshape(1, cout), bias.reshape(1, cout))


def _maxpool_call(xf, offsets, m):
    n, rows, c = xf.shape
    kernel = functools.partial(_maxpool_kernel, tuple(offsets), m)
    return pl.pallas_call(
        kernel,
        out_shape=jax.ShapeDtypeStruct((n, m, c), jnp.float32),
        grid=(n,),
        in_specs=[pl.BlockSpec((1, rows, c), lambda i: (i, 0, 0))],
        out_specs=pl.BlockSpec((1, m, c), lambda i: (i, 0, 0)),
        compiler_params=pltpu.CompilerParams(
            dimension_semantics=("parallel",),
            vmem_limit_bytes=_VMEM_LIMIT),
    )(xf)


# ----------------------------------------------------------------------------
# Wrapper glue: build the flattened tap layouts (single copy of the input
# volume; NO per-tap HBM materialization).
# ----------------------------------------------------------------------------
def _stride1_flat(x, kh, kw, padding):
    """Pad + flatten spatial dims for a stride-1 KhxKw conv."""
    n, h, w, c = x.shape
    if padding:
        x = jnp.pad(x, ((0, 0), (padding, padding), (padding, padding), (0, 0)))
    hp, wp = h + 2 * padding, w + 2 * padding
    ho, wo = hp - kh + 1, wp - kw + 1
    xf = x.reshape(n, hp * wp, c)
    offsets = [r * wp + s for r in range(kh) for s in range(kw)]
    m = ho * wp                       # rows of width wp; cols >= wo are junk
    pad_rows = max(offsets) + m - xf.shape[1]
    if pad_rows > 0:
        xf = jnp.pad(xf, ((0, 0), (0, pad_rows), (0, 0)))
    return xf, offsets, m, ho, wo, wp


def _stride2_flat(x):
    """Space-to-depth phase split + flatten for 3x3 / stride-2 windows.

    Plane p = 2a+b holds x[:, a::2, b::2, :]; all valid tap reads stay inside
    their plane, junk columns (sliced off later) may read across planes.
    """
    n, h, w, c = x.shape
    ho, wo = (h - 3) // 2 + 1, (w - 3) // 2 + 1
    hh, wh = ho + 1, wo + 1
    xp = jnp.pad(x, ((0, 0), (0, 2 * hh - h), (0, 2 * wh - w), (0, 0)))
    ph = xp.reshape(n, hh, 2, wh, 2, c).transpose(0, 2, 4, 1, 3, 5)
    xf = ph.reshape(n, 4 * hh * wh, c)
    offsets = [(2 * (r % 2) + (s % 2)) * hh * wh + (r // 2) * wh + (s // 2)
               for r in range(3) for s in range(3)]
    m = ho * wh
    pad_rows = max(offsets) + m - xf.shape[1]
    if pad_rows > 0:
        xf = jnp.pad(xf, ((0, 0), (0, pad_rows), (0, 0)))
    return xf, offsets, m, ho, wo, wh


def conv_bn_relu(x, params, *, stride=1, padding=0):
    """BasicConv2d: conv(bias=False) + folded eval-mode BatchNorm + ReLU."""
    w, scale, bias = params                   # w: (KH, KW, Cin, Cout) HWIO
    kh, kw, cin, cout = w.shape
    if stride == 1:
        xf, offsets, m, ho, wo, wrow = _stride1_flat(x, kh, kw, padding)
    else:
        assert stride == 2 and padding == 0 and kh == 3 and kw == 3
        xf, offsets, m, ho, wo, wrow = _stride2_flat(x)
    out = _conv_call(xf, offsets, m, w.reshape(kh * kw, cin, cout), scale, bias)
    n = x.shape[0]
    return out.reshape(n, ho, wrow, cout)[:, :, :wo, :]


# ----------------------------------------------------------------------------
# InceptionB forward
# ----------------------------------------------------------------------------
def inception_b(x_nchw, params):
    x = jnp.transpose(x_nchw, (0, 2, 3, 1)).astype(jnp.float32)    # -> NHWC
    n, h, wd, cin = x.shape

    # Shared stride-2 window layout of x: used by branch3x3 AND branch_pool.
    xf2, offs2, m2, ho, wo, wrow2 = _stride2_flat(x)

    # branch3x3: 3x3 / stride-2 conv
    w3, s3, b3 = params['branch3x3']
    br3 = _conv_call(xf2, offs2, m2, w3.reshape(9, cin, -1), s3, b3)
    br3 = br3.reshape(n, ho, wrow2, -1)[:, :, :wo, :]

    # branch3x3dbl: 1x1 -> 3x3(pad 1) -> 3x3(stride 2)
    d = conv_bn_relu(x, params['branch3x3dbl_1'], stride=1, padding=0)
    d = conv_bn_relu(d, params['branch3x3dbl_2'], stride=1, padding=1)
    d = conv_bn_relu(d, params['branch3x3dbl_3'], stride=2, padding=0)

    # branch_pool: max_pool2d(x, 3, stride=2)
    bp = _maxpool_call(xf2, offs2, m2)
    bp = bp.reshape(n, ho, wrow2, cin)[:, :, :wo, :]

    out = jnp.concatenate([br3, d, bp], axis=-1)    # concat on channels
    return jnp.transpose(out, (0, 3, 1, 2))         # -> NCHW


# ----------------------------------------------------------------------------
# Deterministic parameter init (conv weight HWIO + folded BN scale/bias)
# ----------------------------------------------------------------------------
def make_basic_conv_params(key, cin, cout, kh, kw):
    ks = jax.random.split(key, 5)
    fan_in = cin * kh * kw
    w = jax.random.normal(ks[0], (kh, kw, cin, cout), jnp.float32) / jnp.sqrt(fan_in)
    gamma = 1.0 + 0.1 * jax.random.normal(ks[1], (cout,), jnp.float32)
    beta = 0.1 * jax.random.normal(ks[2], (cout,), jnp.float32)
    r_mean = 0.1 * jax.random.normal(ks[3], (cout,), jnp.float32)
    r_var = 0.5 + 0.1 * jnp.abs(jax.random.normal(ks[4], (cout,), jnp.float32))
    eps = 1e-3                                  # BatchNorm2d(eps=0.001)
    scale = gamma / jnp.sqrt(r_var + eps)
    bias = beta - r_mean * scale
    return (w, scale, bias)


# ----------------------------------------------------------------------------
# Pure-JAX reference (lax.conv / reduce_window) for correctness check
# ----------------------------------------------------------------------------
def _ref_conv(x, w_hwio, scale, bias, stride, padding):
    y = jax.lax.conv_general_dilated(
        x, w_hwio, (stride, stride),
        ((padding, padding), (padding, padding)),
        dimension_numbers=('NHWC', 'HWIO', 'NHWC'))
    return jnp.maximum(y * scale + bias, 0.0)


def reference_inception_b(x_nchw, params):
    x = jnp.transpose(x_nchw, (0, 2, 3, 1)).astype(jnp.float32)
    br3 = _ref_conv(x, *params['branch3x3'], 2, 0)
    d = _ref_conv(x, *params['branch3x3dbl_1'], 1, 0)
    d = _ref_conv(d, *params['branch3x3dbl_2'], 1, 1)
    d = _ref_conv(d, *params['branch3x3dbl_3'], 2, 0)
    bp = jax.lax.reduce_window(x, -jnp.inf, jax.lax.max,
                               (1, 3, 3, 1), (1, 2, 2, 1), 'VALID')
    out = jnp.concatenate([br3, d, bp], axis=-1)
    return jnp.transpose(out, (0, 3, 1, 2))


# ----------------------------------------------------------------------------
if __name__ == "__main__":
    key = jax.random.PRNGKey(0)
    N, IN_CH, H, W = 2, 32, 15, 15

    k_x, k_p = jax.random.split(key)
    x = jax.random.normal(k_x, (N, IN_CH, H, W), jnp.float32)   # NCHW like torch

    layer_defs = [
        ('branch3x3',      IN_CH, 384, 3, 3),
        ('branch3x3dbl_1', IN_CH,  64, 1, 1),
        ('branch3x3dbl_2', 64,     96, 3, 3),
        ('branch3x3dbl_3', 96,     96, 3, 3),
    ]
    keys = jax.random.split(k_p, len(layer_defs))
    params = {name: make_basic_conv_params(kk, ci, co, kh, kw)
              for kk, (name, ci, co, kh, kw) in zip(keys, layer_defs)}

    out = jax.jit(inception_b)(x, params)
    out = jax.block_until_ready(out)

    Ho, Wo = (H - 3) // 2 + 1, (W - 3) // 2 + 1
    assert out.shape == (N, 384 + 96 + IN_CH, Ho, Wo), out.shape

    ref = reference_inception_b(x, params)
    max_err = float(jnp.max(jnp.abs(out - ref)))
    assert max_err < 2e-3, f"mismatch vs reference: {max_err}"

    print("KERNEL_OK")
</pallas_src>

<mosaic_0001>
module attributes {stable_mosaic.version = 11 : i64} {
  func.func @_conv_bn_relu_kernel(%arg0: i32, %arg1: i32, %arg2: memref<1x225x32xf32, #tpu.memory_space<vmem>>, %arg3: memref<1x32x64xf32, #tpu.memory_space<vmem>>, %arg4: memref<1x64xf32, #tpu.memory_space<vmem>>, %arg5: memref<1x64xf32, #tpu.memory_space<vmem>>, %arg6: memref<1x225x64xf32, #tpu.memory_space<vmem>>) attributes {dimension_semantics = [#tpu.dimension_semantics<parallel>, #tpu.dimension_semantics<parallel>], iteration_bounds = array<i64: 2, 1>, scalar_prefetch = 0 : i64, scratch_operands = 0 : i64, tpu.core_type = #tpu.core_type<tc>, window_params = [{transform_indices = @transform_0, window_bounds = array<i64: 1, 225, 32>}, {transform_indices = @transform_1, window_bounds = array<i64: 1, 32, 64>}, {transform_indices = @transform_2, window_bounds = array<i64: 1, 64>}, {transform_indices = @transform_3, window_bounds = array<i64: 1, 64>}, {transform_indices = @transform_4, window_bounds = array<i64: 1, 225, 64>}]} {
    %cst = arith.constant 0.000000e+00 : f32
    %0 = vector.broadcast %cst : f32 to vector<225x64xf32>
    %c0 = arith.constant 0 : index
    %c0_0 = arith.constant 0 : index
    %c0_1 = arith.constant 0 : index
    %1 = vector.load %arg2[%c0, %c0_0, %c0_1] : memref<1x225x32xf32, #tpu.memory_space<vmem>>, vector<1x225x32xf32>
    %2 = vector.shape_cast %1 : vector<1x225x32xf32> to vector<225x32xf32>
    %c0_2 = arith.constant 0 : index
    %c0_3 = arith.constant 0 : index
    %c0_4 = arith.constant 0 : index
    %3 = vector.load %arg3[%c0_2, %c0_3, %c0_4] : memref<1x32x64xf32, #tpu.memory_space<vmem>>, vector<1x32x64xf32>
    %4 = vector.shape_cast %3 : vector<1x32x64xf32> to vector<32x64xf32>
    %cst_5 = arith.constant dense<0.000000e+00> : vector<225x64xf32>
    %5 = tpu.matmul %2, %4, %cst_5 {dimension_numbers = #tpu.dot_dimension_numbers<[1], [0], [0], [1], [0, 0, 1, 1], [], []>} : vector<225x32xf32>, vector<32x64xf32>, vector<225x64xf32> -> vector<225x64xf32>
    %6 = arith.addf %0, %5 : vector<225x64xf32>
    %c0_6 = arith.constant 0 : index
    %c0_7 = arith.constant 0 : index
    %7 = vector.load %arg4[%c0_6, %c0_7] : memref<1x64xf32, #tpu.memory_space<vmem>>, vector<1x64xf32>
    %8 = vector.broadcast %7 : vector<1x64xf32> to vector<225x64xf32>
    %9 = arith.mulf %6, %8 : vector<225x64xf32>
    %c0_8 = arith.constant 0 : index
    %c0_9 = arith.constant 0 : index
    %10 = vector.load %arg5[%c0_8, %c0_9] : memref<1x64xf32, #tpu.memory_space<vmem>>, vector<1x64xf32>
    %11 = vector.broadcast %10 : vector<1x64xf32> to vector<225x64xf32>
    %12 = arith.addf %9, %11 : vector<225x64xf32>
    %cst_10 = arith.constant 0.000000e+00 : f32
    %13 = vector.broadcast %cst_10 : f32 to vector<225x64xf32>
    %14 = arith.maximumf %12, %13 : vector<225x64xf32>
    %c0_11 = arith.constant 0 : index
    %c0_12 = arith.constant 0 : index
    %c0_13 = arith.constant 0 : index
    %15 = vector.load %arg6[%c0_11, %c0_12, %c0_13] : memref<1x225x64xf32, #tpu.memory_space<vmem>>, vector<1x225x64xf32>
    %16 = vector.shape_cast %15 : vector<1x225x64xf32> to vector<225x64xf32>
    %17 = vector.shape_cast %14 : vector<225x64xf32> to vector<1x225x64xf32>
    tpu.vector_store %arg6[%c0_11, %c0_12, %c0_13], %17 {strides = array<i32>} : memref<1x225x64xf32, #tpu.memory_space<vmem>>, vector<1x225x64xf32>,
    return
  }
  func.func @transform_0(%arg0: i32, %arg1: i32) -> (i32, i32, i32) {
    %c0_i32 = arith.constant 0 : i32
    %c0_i32_0 = arith.constant 0 : i32
    %c0_i32_1 = arith.constant 0 : i32
    return %arg0, %c0_i32, %c0_i32_0 : i32, i32, i32
  }
  func.func @transform_1(%arg0: i32, %arg1: i32) -> (i32, i32, i32) {
    %c0_i32 = arith.constant 0 : i32
    %c0_i32_0 = arith.constant 0 : i32
    %c0_i32_1 = arith.constant 0 : i32
    return %c0_i32, %c0_i32_0, %arg1 : i32, i32, i32
  }
  func.func @transform_2(%arg0: i32, %arg1: i32) -> (i32, i32) {
    %c0_i32 = arith.constant 0 : i32
    %c0_i32_0 = arith.constant 0 : i32
    return %c0_i32, %arg1 : i32, i32
  }
  func.func @transform_3(%arg0: i32, %arg1: i32) -> (i32, i32) {
    %c0_i32 = arith.constant 0 : i32
    %c0_i32_0 = arith.constant 0 : i32
    return %c0_i32, %arg1 : i32, i32
  }
  func.func @transform_4(%arg0: i32, %arg1: i32) -> (i32, i32, i32) {
    %c0_i32 = arith.constant 0 : i32
    %c0_i32_0 = arith.constant 0 : i32
    return %arg0, %c0_i32, %arg1 : i32, i32, i32
  }
}

module attributes {stable_mosaic.version = 11 : i64} {
  func.func @_conv_bn_relu_kernel(%arg0: i32, %arg1: i32, %arg2: memref<1x291x64xf32, #tpu.memory_space<vmem>>, %arg3: memref<9x64x96xf32, #tpu.memory_space<vmem>>, %arg4: memref<1x96xf32, #tpu.memory_space<vmem>>, %arg5: memref<1x96xf32, #tpu.memory_space<vmem>>, %arg6: memref<1x255x96xf32, #tpu.memory_space<vmem>>) attributes {dimension_semantics = [#tpu.dimension_semantics<parallel>, #tpu.dimension_semantics<parallel>], iteration_bounds = array<i64: 2, 1>, scalar_prefetch = 0 : i64, scratch_operands = 0 : i64, tpu.core_type = #tpu.core_type<tc>, window_params = [{transform_indices = @transform_0, window_bounds = array<i64: 1, 291, 64>}, {transform_indices = @transform_1, window_bounds = array<i64: 9, 64, 96>}, {transform_indices = @transform_2, window_bounds = array<i64: 1, 96>}, {transform_indices = @transform_3, window_bounds = array<i64: 1, 96>}, {transform_indices = @transform_4, window_bounds = array<i64: 1, 255, 96>}]} {
    %cst = arith.constant 0.000000e+00 : f32
    %0 = vector.broadcast %cst : f32 to vector<255x96xf32>
    %c0 = arith.constant 0 : index
    %c0_0 = arith.constant 0 : index
    %c0_1 = arith.constant 0 : index
    %1 = vector.load %arg2[%c0, %c0_0, %c0_1] : memref<1x291x64xf32, #tpu.memory_space<vmem>>, vector<1x255x64xf32>
    %2 = vector.shape_cast %1 : vector<1x255x64xf32> to vector<255x64xf32>
    %c0_2 = arith.constant 0 : index
    %c0_3 = arith.constant 0 : index
    %c0_4 = arith.constant 0 : index
    %3 = vector.load %arg3[%c0_2, %c0_3, %c0_4] : memref<9x64x96xf32, #tpu.memory_space<vmem>>, vector<1x64x96xf32>
    %4 = vector.shape_cast %3 : vector<1x64x96xf32> to vector<64x96xf32>
    %cst_5 = arith.constant dense<0.000000e+00> : vector<255x96xf32>
    %5 = tpu.matmul %2, %4, %cst_5 {dimension_numbers = #tpu.dot_dimension_numbers<[1], [0], [0], [1], [0, 0, 1, 1], [], []>} : vector<255x64xf32>, vector<64x96xf32>, vector<255x96xf32> -> vector<255x96xf32>
    %6 = arith.addf %0, %5 : vector<255x96xf32>
    %c0_6 = arith.constant 0 : index
    %c1 = arith.constant 1 : index
    %c0_7 = arith.constant 0 : index
    %7 = vector.load %arg2[%c0_6, %c1, %c0_7] : memref<1x291x64xf32, #tpu.memory_space<vmem>>, vector<1x255x64xf32>
    %8 = vector.shape_cast %7 : vector<1x255x64xf32> to vector<255x64xf32>
    %c1_8 = arith.constant 1 : index
    %c0_9 = arith.constant 0 : index
    %c0_10 = arith.constant 0 : index
    %9 = vector.load %arg3[%c1_8, %c0_9, %c0_10] : memref<9x64x96xf32, #tpu.memory_space<vmem>>, vector<1x64x96xf32>
    %10 = vector.shape_cast %9 : vector<1x64x96xf32> to vector<64x96xf32>
    %cst_11 = arith.constant dense<0.000000e+00> : vector<255x96xf32>
    %11 = tpu.matmul %8, %10, %cst_11 {dimension_numbers = #tpu.dot_dimension_numbers<[1], [0], [0], [1], [0, 0, 1, 1], [], []>} : vector<255x64xf32>, vector<64x96xf32>, vector<255x96xf32> -> vector<255x96xf32>
    %12 = arith.addf %6, %11 : vector<255x96xf32>
    %c0_12 = arith.constant 0 : index
    %c2 = arith.constant 2 : index
    %c0_13 = arith.constant 0 : index
    %13 = vector.load %arg2[%c0_12, %c2, %c0_13] : memref<1x291x64xf32, #tpu.memory_space<vmem>>, vector<1x255x64xf32>
    %14 = vector.shape_cast %13 : vector<1x255x64xf32> to vector<255x64xf32>
    %c2_14 = arith.constant 2 : index
    %c0_15 = arith.constant 0 : index
    %c0_16 = arith.constant 0 : index
    %15 = vector.load %arg3[%c2_14, %c0_15, %c0_16] : memref<9x64x96xf32, #tpu.memory_space<vmem>>, vector<1x64x96xf32>
    %16 = vector.shape_cast %15 : vector<1x64x96xf32> to vector<64x96xf32>
    %cst_17 = arith.constant dense<0.000000e+00> : vector<255x96xf32>
    %17 = tpu.matmul %14, %16, %cst_17 {dimension_numbers = #tpu.dot_dimension_numbers<[1], [0], [0], [1], [0, 0, 1, 1], [], []>} : vector<255x64xf32>, vector<64x96xf32>, vector<255x96xf32> -> vector<255x96xf32>
    %18 = arith.addf %12, %17 : vector<255x96xf32>
    %c0_18 = arith.constant 0 : index
    %c17 = arith.constant 17 : index
    %c0_19 = arith.constant 0 : index
    %19 = vector.load %arg2[%c0_18, %c17, %c0_19] : memref<1x291x64xf32, #tpu.memory_space<vmem>>, vector<1x255x64xf32>
    %20 = vector.shape_cast %19 : vector<1x255x64xf32> to vector<255x64xf32>
    %c3 = arith.constant 3 : index
    %c0_20 = arith.constant 0 : index
    %c0_21 = arith.constant 0 : index
    %21 = vector.load %arg3[%c3, %c0_20, %c0_21] : memref<9x64x96xf32, #tpu.memory_space<vmem>>, vector<1x64x96xf32>
    %22 = vector.shape_cast %21 : vector<1x64x96xf32> to vector<64x96xf32>
    %cst_22 = arith.constant dense<0.000000e+00> : vector<255x96xf32>
    %23 = tpu.matmul %20, %22, %cst_22 {dimension_numbers = #tpu.dot_dimension_numbers<[1], [0], [0], [1], [0, 0, 1, 1], [], []>} : vector<255x64xf32>, vector<64x96xf32>, vector<255x96xf32> -> vector<255x96xf32>
    %24 = arith.addf %18, %23 : vector<255x96xf32>
    %c0_23 = arith.constant 0 : index
    %c18 = arith.constant 18 : index
    %c0_24 = arith.constant 0 : index
    %25 = vector.load %arg2[%c0_23, %c18, %c0_24] : memref<1x291x64xf32, #tpu.memory_space<vmem>>, vector<1x255x64xf32>
    %26 = vector.shape_cast %25 : vector<1x255x64xf32> to vector<255x64xf32>
    %c4 = arith.constant 4 : index
    %c0_25 = arith.constant 0 : index
    %c0_26 = arith.constant 0 : index
    %27 = vector.load %arg3[%c4, %c0_25, %c0_26] : memref<9x64x96xf32, #tpu.memory_space<vmem>>, vector<1x64x96xf32>
    %28 = vector.shape_cast %27 : vector<1x64x96xf32> to vector<64x96xf32>
    %cst_27 = arith.constant dense<0.000000e+00> : vector<255x96xf32>
    %29 = tpu.matmul %26, %28, %cst_27 {dimension_numbers = #tpu.dot_dimension_numbers<[1], [0], [0], [1], [0, 0, 1, 1], [], []>} : vector<255x64xf32>, vector<64x96xf32>, vector<255x96xf32> -> vector<255x96xf32>
    %30 = arith.addf %24, %29 : vector<255x96xf32>
    %c0_28 = arith.constant 0 : index
    %c19 = arith.constant 19 : index
    %c0_29 = arith.constant 0 : index
    %31 = vector.load %arg2[%c0_28, %c19, %c0_29] : memref<1x291x64xf32, #tpu.memory_space<vmem>>, vector<1x255x64xf32>
    %32 = vector.shape_cast %31 : vector<1x255x64xf32> to vector<255x64xf32>
    %c5 = arith.constant 5 : index
    %c0_30 = arith.constant 0 : index
    %c0_31 = arith.constant 0 : index
    %33 = vector.load %arg3[%c5, %c0_30, %c0_31] : memref<9x64x96xf32, #tpu.memory_space<vmem>>, vector<1x64x96xf32>
    %34 = vector.shape_cast %33 : vector<1x64x96xf32> to vector<64x96xf32>
    %cst_32 = arith.constant dense<0.000000e+00> : vector<255x96xf32>
    %35 = tpu.matmul %32, %34, %cst_32 {dimension_numbers = #tpu.dot_dimension_numbers<[1], [0], [0], [1], [0, 0, 1, 1], [], []>} : vector<255x64xf32>, vector<64x96xf32>, vector<255x96xf32> -> vector<255x96xf32>
    %36 = arith.addf %30, %35 : vector<255x96xf32>
    %c0_33 = arith.constant 0 : index
    %c34 = arith.constant 34 : index
    %c0_34 = arith.constant 0 : index
    %37 = vector.load %arg2[%c0_33, %c34, %c0_34] : memref<1x291x64xf32, #tpu.memory_space<vmem>>, vector<1x255x64xf32>
    %38 = vector.shape_cast %37 : vector<1x255x64xf32> to vector<255x64xf32>
    %c6 = arith.constant 6 : index
    %c0_35 = arith.constant 0 : index
    %c0_36 = arith.constant 0 : index
    %39 = vector.load %arg3[%c6, %c0_35, %c0_36] : memref<9x64x96xf32, #tpu.memory_space<vmem>>, vector<1x64x96xf32>
    %40 = vector.shape_cast %39 : vector<1x64x96xf32> to vector<64x96xf32>
    %cst_37 = arith.constant dense<0.000000e+00> : vector<255x96xf32>
    %41 = tpu.matmul %38, %40, %cst_37 {dimension_numbers = #tpu.dot_dimension_numbers<[1], [0], [0], [1], [0, 0, 1, 1], [], []>} : vector<255x64xf32>, vector<64x96xf32>, vector<255x96xf32> -> vector<255x96xf32>
    %42 = arith.addf %36, %41 : vector<255x96xf32>
    %c0_38 = arith.constant 0 : index
    %c35 = arith.constant 35 : index
    %c0_39 = arith.constant 0 : index
    %43 = vector.load %arg2[%c0_38, %c35, %c0_39] : memref<1x291x64xf32, #tpu.memory_space<vmem>>, vector<1x255x64xf32>
    %44 = vector.shape_cast %43 : vector<1x255x64xf32> to vector<255x64xf32>
    %c7 = arith.constant 7 : index
    %c0_40 = arith.constant 0 : index
    %c0_41 = arith.constant 0 : index
    %45 = vector.load %arg3[%c7, %c0_40, %c0_41] : memref<9x64x96xf32, #tpu.memory_space<vmem>>, vector<1x64x96xf32>
    %46 = vector.shape_cast %45 : vector<1x64x96xf32> to vector<64x96xf32>
    %cst_42 = arith.constant dense<0.000000e+00> : vector<255x96xf32>
    %47 = tpu.matmul %44, %46, %cst_42 {dimension_numbers = #tpu.dot_dimension_numbers<[1], [0], [0], [1], [0, 0, 1, 1], [], []>} : vector<255x64xf32>, vector<64x96xf32>, vector<255x96xf32> -> vector<255x96xf32>
    %48 = arith.addf %42, %47 : vector<255x96xf32>
    %c0_43 = arith.constant 0 : index
    %c36 = arith.constant 36 : index
    %c0_44 = arith.constant 0 : index
    %49 = vector.load %arg2[%c0_43, %c36, %c0_44] : memref<1x291x64xf32, #tpu.memory_space<vmem>>, vector<1x255x64xf32>
    %50 = vector.shape_cast %49 : vector<1x255x64xf32> to vector<255x64xf32>
    %c8 = arith.constant 8 : index
    %c0_45 = arith.constant 0 : index
    %c0_46 = arith.constant 0 : index
    %51 = vector.load %arg3[%c8, %c0_45, %c0_46] : memref<9x64x96xf32, #tpu.memory_space<vmem>>, vector<1x64x96xf32>
    %52 = vector.shape_cast %51 : vector<1x64x96xf32> to vector<64x96xf32>
    %cst_47 = arith.constant dense<0.000000e+00> : vector<255x96xf32>
    %53 = tpu.matmul %50, %52, %cst_47 {dimension_numbers = #tpu.dot_dimension_numbers<[1], [0], [0], [1], [0, 0, 1, 1], [], []>} : vector<255x64xf32>, vector<64x96xf32>, vector<255x96xf32> -> vector<255x96xf32>
    %54 = arith.addf %48, %53 : vector<255x96xf32>
    %c0_48 = arith.constant 0 : index
    %c0_49 = arith.constant 0 : index
    %55 = vector.load %arg4[%c0_48, %c0_49] : memref<1x96xf32, #tpu.memory_space<vmem>>, vector<1x96xf32>
    %56 = vector.broadcast %55 : vector<1x96xf32> to vector<255x96xf32>
    %57 = arith.mulf %54, %56 : vector<255x96xf32>
    %c0_50 = arith.constant 0 : index
    %c0_51 = arith.constant 0 : index
    %58 = vector.load %arg5[%c0_50, %c0_51] : memref<1x96xf32, #tpu.memory_space<vmem>>, vector<1x96xf32>
    %59 = vector.broadcast %58 : vector<1x96xf32> to vector<255x96xf32>
    %60 = arith.addf %57, %59 : vector<255x96xf32>
    %cst_52 = arith.constant 0.000000e+00 : f32
    %61 = vector.broadcast %cst_52 : f32 to vector<255x96xf32>
    %62 = arith.maximumf %60, %61 : vector<255x96xf32>
    %c0_53 = arith.constant 0 : index
    %c0_54 = arith.constant 0 : index
    %c0_55 = arith.constant 0 : index
    %63 = vector.load %arg6[%c0_53, %c0_54, %c0_55] : memref<1x255x96xf32, #tpu.memory_space<vmem>>, vector<1x255x96xf32>
    %64 = vector.shape_cast %63 : vector<1x255x96xf32> to vector<255x96xf32>
    %65 = vector.shape_cast %62 : vector<255x96xf32> to vector<1x255x96xf32>
    tpu.vector_store %arg6[%c0_53, %c0_54, %c0_55], %65 {strides = array<i32>} : memref<1x255x96xf32, #tpu.memory_space<vmem>>, vector<1x255x96xf32>,
    return
  }
  func.func @transform_0(%arg0: i32, %arg1: i32) -> (i32, i32, i32) {
    %c0_i32 = arith.constant 0 : i32
    %c0_i32_0 = arith.constant 0 : i32
    %c0_i32_1 = arith.constant 0 : i32
    return %arg0, %c0_i32, %c0_i32_0 : i32, i32, i32
  }
  func.func @transform_1(%arg0: i32, %arg1: i32) -> (i32, i32, i32) {
    %c0_i32 = arith.constant 0 : i32
    %c0_i32_0 = arith.constant 0 : i32
    %c0_i32_1 = arith.constant 0 : i32
    return %c0_i32, %c0_i32_0, %arg1 : i32, i32, i32
  }
  func.func @transform_2(%arg0: i32, %arg1: i32) -> (i32, i32) {
    %c0_i32 = arith.constant 0 : i32
    %c0_i32_0 = arith.constant 0 : i32
    return %c0_i32, %arg1 : i32, i32
  }
  func.func @transform_3(%arg0: i32, %arg1: i32) -> (i32, i32) {
    %c0_i32 = arith.constant 0 : i32
    %c0_i32_0 = arith.constant 0 : i32
    return %c0_i32, %arg1 : i32, i32
  }
  func.func @transform_4(%arg0: i32, %arg1: i32) -> (i32, i32, i32) {
    %c0_i32 = arith.constant 0 : i32
    %c0_i32_0 = arith.constant 0 : i32
    return %arg0, %c0_i32, %arg1 : i32, i32, i32
  }
}

module attributes {stable_mosaic.version = 11 : i64} {
  func.func @_conv_bn_relu_kernel(%arg0: i32, %arg1: i32, %arg2: memref<1x256x96xf32, #tpu.memory_space<vmem>>, %arg3: memref<9x96x96xf32, #tpu.memory_space<vmem>>, %arg4: memref<1x96xf32, #tpu.memory_space<vmem>>, %arg5: memref<1x96xf32, #tpu.memory_space<vmem>>, %arg6: memref<1x56x96xf32, #tpu.memory_space<vmem>>) attributes {dimension_semantics = [#tpu.dimension_semantics<parallel>, #tpu.dimension_semantics<parallel>], iteration_bounds = array<i64: 2, 1>, scalar_prefetch = 0 : i64, scratch_operands = 0 : i64, tpu.core_type = #tpu.core_type<tc>, window_params = [{transform_indices = @transform_0, window_bounds = array<i64: 1, 256, 96>}, {transform_indices = @transform_1, window_bounds = array<i64: 9, 96, 96>}, {transform_indices = @transform_2, window_bounds = array<i64: 1, 96>}, {transform_indices = @transform_3, window_bounds = array<i64: 1, 96>}, {transform_indices = @transform_4, window_bounds = array<i64: 1, 56, 96>}]} {
    %cst = arith.constant 0.000000e+00 : f32
    %0 = vector.broadcast %cst : f32 to vector<56x96xf32>
    %c0 = arith.constant 0 : index
    %c0_0 = arith.constant 0 : index
    %c0_1 = arith.constant 0 : index
    %1 = vector.load %arg2[%c0, %c0_0, %c0_1] : memref<1x256x96xf32, #tpu.memory_space<vmem>>, vector<1x56x96xf32>
    %2 = vector.shape_cast %1 : vector<1x56x96xf32> to vector<56x96xf32>
    %c0_2 = arith.constant 0 : index
    %c0_3 = arith.constant 0 : index
    %c0_4 = arith.constant 0 : index
    %3 = vector.load %arg3[%c0_2, %c0_3, %c0_4] : memref<9x96x96xf32, #tpu.memory_space<vmem>>, vector<1x96x96xf32>
    %4 = vector.shape_cast %3 : vector<1x96x96xf32> to vector<96x96xf32>
    %cst_5 = arith.constant dense<0.000000e+00> : vector<56x96xf32>
    %5 = tpu.matmul %2, %4, %cst_5 {dimension_numbers = #tpu.dot_dimension_numbers<[1], [0], [0], [1], [0, 0, 1, 1], [], []>} : vector<56x96xf32>, vector<96x96xf32>, vector<56x96xf32> -> vector<56x96xf32>
    %6 = arith.addf %0, %5 : vector<56x96xf32>
    %c0_6 = arith.constant 0 : index
    %c64 = arith.constant 64 : index
    %c0_7 = arith.constant 0 : index
    %7 = vector.load %arg2[%c0_6, %c64, %c0_7] : memref<1x256x96xf32, #tpu.memory_space<vmem>>, vector<1x56x96xf32>
    %8 = vector.shape_cast %7 : vector<1x56x96xf32> to vector<56x96xf32>
    %c1 = arith.constant 1 : index
    %c0_8 = arith.constant 0 : index
    %c0_9 = arith.constant 0 : index
    %9 = vector.load %arg3[%c1, %c0_8, %c0_9] : memref<9x96x96xf32, #tpu.memory_space<vmem>>, vector<1x96x96xf32>
    %10 = vector.shape_cast %9 : vector<1x96x96xf32> to vector<96x96xf32>
    %cst_10 = arith.constant dense<0.000000e+00> : vector<56x96xf32>
    %11 = tpu.matmul %8, %10, %cst_10 {dimension_numbers = #tpu.dot_dimension_numbers<[1], [0], [0], [1], [0, 0, 1, 1], [], []>} : vector<56x96xf32>, vector<96x96xf32>, vector<56x96xf32> -> vector<56x96xf32>
    %12 = arith.addf %6, %11 : vector<56x96xf32>
    %c0_11 = arith.constant 0 : index
    %c1_12 = arith.constant 1 : index
    %c0_13 = arith.constant 0 : index
    %13 = vector.load %arg2[%c0_11, %c1_12, %c0_13] : memref<1x256x96xf32, #tpu.memory_space<vmem>>, vector<1x56x96xf32>
    %14 = vector.shape_cast %13 : vector<1x56x96xf32> to vector<56x96xf32>
    %c2 = arith.constant 2 : index
    %c0_14 = arith.constant 0 : index
    %c0_15 = arith.constant 0 : index
    %15 = vector.load %arg3[%c2, %c0_14, %c0_15] : memref<9x96x96xf32, #tpu.memory_space<vmem>>, vector<1x96x96xf32>
    %16 = vector.shape_cast %15 : vector<1x96x96xf32> to vector<96x96xf32>
    %cst_16 = arith.constant dense<0.000000e+00> : vector<56x96xf32>
    %17 = tpu.matmul %14, %16, %cst_16 {dimension_numbers = #tpu.dot_dimension_numbers<[1], [0], [0], [1], [0, 0, 1, 1], [], []>} : vector<56x96xf32>, vector<96x96xf32>, vector<56x96xf32> -> vector<56x96xf32>
    %18 = arith.addf %12, %17 : vector<56x96xf32>
    %c0_17 = arith.constant 0 : index
    %c128 = arith.constant 128 : index
    %c0_18 = arith.constant 0 : index
    %19 = vector.load %arg2[%c0_17, %c128, %c0_18] : memref<1x256x96xf32, #tpu.memory_space<vmem>>, vector<1x56x96xf32>
    %20 = vector.shape_cast %19 : vector<1x56x96xf32> to vector<56x96xf32>
    %c3 = arith.constant 3 : index
    %c0_19 = arith.constant 0 : index
    %c0_20 = arith.constant 0 : index
    %21 = vector.load %arg3[%c3, %c0_19, %c0_20] : memref<9x96x96xf32, #tpu.memory_space<vmem>>, vector<1x96x96xf32>
    %22 = vector.shape_cast %21 : vector<1x96x96xf32> to vector<96x96xf32>
    %cst_21 = arith.constant dense<0.000000e+00> : vector<56x96xf32>
    %23 = tpu.matmul %20, %22, %cst_21 {dimension_numbers = #tpu.dot_dimension_numbers<[1], [0], [0], [1], [0, 0, 1, 1], [], []>} : vector<56x96xf32>, vector<96x96xf32>, vector<56x96xf32> -> vector<56x96xf32>
    %24 = arith.addf %18, %23 : vector<56x96xf32>
    %c0_22 = arith.constant 0 : index
    %c192 = arith.constant 192 : index
    %c0_23 = arith.constant 0 : index
    %25 = vector.load %arg2[%c0_22, %c192, %c0_23] : memref<1x256x96xf32, #tpu.memory_space<vmem>>, vector<1x56x96xf32>
    %26 = vector.shape_cast %25 : vector<1x56x96xf32> to vector<56x96xf32>
    %c4 = arith.constant 4 : index
    %c0_24 = arith.constant 0 : index
    %c0_25 = arith.constant 0 : index
    %27 = vector.load %arg3[%c4, %c0_24, %c0_25] : memref<9x96x96xf32, #tpu.memory_space<vmem>>, vector<1x96x96xf32>
    %28 = vector.shape_cast %27 : vector<1x96x96xf32> to vector<96x96xf32>
    %cst_26 = arith.constant dense<0.000000e+00> : vector<56x96xf32>
    %29 = tpu.matmul %26, %28, %cst_26 {dimension_numbers = #tpu.dot_dimension_numbers<[1], [0], [0], [1], [0, 0, 1, 1], [], []>} : vector<56x96xf32>, vector<96x96xf32>, vector<56x96xf32> -> vector<56x96xf32>
    %30 = arith.addf %24, %29 : vector<56x96xf32>
    %c0_27 = arith.constant 0 : index
    %c129 = arith.constant 129 : index
    %c0_28 = arith.constant 0 : index
    %31 = vector.load %arg2[%c0_27, %c129, %c0_28] : memref<1x256x96xf32, #tpu.memory_space<vmem>>, vector<1x56x96xf32>
    %32 = vector.shape_cast %31 : vector<1x56x96xf32> to vector<56x96xf32>
    %c5 = arith.constant 5 : index
    %c0_29 = arith.constant 0 : index
    %c0_30 = arith.constant 0 : index
    %33 = vector.load %arg3[%c5, %c0_29, %c0_30] : memref<9x96x96xf32, #tpu.memory_space<vmem>>, vector<1x96x96xf32>
    %34 = vector.shape_cast %33 : vector<1x96x96xf32> to vector<96x96xf32>
    %cst_31 = arith.constant dense<0.000000e+00> : vector<56x96xf32>
    %35 = tpu.matmul %32, %34, %cst_31 {dimension_numbers = #tpu.dot_dimension_numbers<[1], [0], [0], [1], [0, 0, 1, 1], [], []>} : vector<56x96xf32>, vector<96x96xf32>, vector<56x96xf32> -> vector<56x96xf32>
    %36 = arith.addf %30, %35 : vector<56x96xf32>
    %c0_32 = arith.constant 0 : index
    %c8 = arith.constant 8 : index
    %c0_33 = arith.constant 0 : index
    %37 = vector.load %arg2[%c0_32, %c8, %c0_33] : memref<1x256x96xf32, #tpu.memory_space<vmem>>, vector<1x56x96xf32>
    %38 = vector.shape_cast %37 : vector<1x56x96xf32> to vector<56x96xf32>
    %c6 = arith.constant 6 : index
    %c0_34 = arith.constant 0 : index
    %c0_35 = arith.constant 0 : index
    %39 = vector.load %arg3[%c6, %c0_34, %c0_35] : memref<9x96x96xf32, #tpu.memory_space<vmem>>, vector<1x96x96xf32>
    %40 = vector.shape_cast %39 : vector<1x96x96xf32> to vector<96x96xf32>
    %cst_36 = arith.constant dense<0.000000e+00> : vector<56x96xf32>
    %41 = tpu.matmul %38, %40, %cst_36 {dimension_numbers = #tpu.dot_dimension_numbers<[1], [0], [0], [1], [0, 0, 1, 1], [], []>} : vector<56x96xf32>, vector<96x96xf32>, vector<56x96xf32> -> vector<56x96xf32>
    %42 = arith.addf %36, %41 : vector<56x96xf32>
    %c0_37 = arith.constant 0 : index
    %c72 = arith.constant 72 : index
    %c0_38 = arith.constant 0 : index
    %43 = vector.load %arg2[%c0_37, %c72, %c0_38] : memref<1x256x96xf32, #tpu.memory_space<vmem>>, vector<1x56x96xf32>
    %44 = vector.shape_cast %43 : vector<1x56x96xf32> to vector<56x96xf32>
    %c7 = arith.constant 7 : index
    %c0_39 = arith.constant 0 : index
    %c0_40 = arith.constant 0 : index
    %45 = vector.load %arg3[%c7, %c0_39, %c0_40] : memref<9x96x96xf32, #tpu.memory_space<vmem>>, vector<1x96x96xf32>
    %46 = vector.shape_cast %45 : vector<1x96x96xf32> to vector<96x96xf32>
    %cst_41 = arith.constant dense<0.000000e+00> : vector<56x96xf32>
    %47 = tpu.matmul %44, %46, %cst_41 {dimension_numbers = #tpu.dot_dimension_numbers<[1], [0], [0], [1], [0, 0, 1, 1], [], []>} : vector<56x96xf32>, vector<96x96xf32>, vector<56x96xf32> -> vector<56x96xf32>
    %48 = arith.addf %42, %47 : vector<56x96xf32>
    %c0_42 = arith.constant 0 : index
    %c9 = arith.constant 9 : index
    %c0_43 = arith.constant 0 : index
    %49 = vector.load %arg2[%c0_42, %c9, %c0_43] : memref<1x256x96xf32, #tpu.memory_space<vmem>>, vector<1x56x96xf32>
    %50 = vector.shape_cast %49 : vector<1x56x96xf32> to vector<56x96xf32>
    %c8_44 = arith.constant 8 : index
    %c0_45 = arith.constant 0 : index
    %c0_46 = arith.constant 0 : index
    %51 = vector.load %arg3[%c8_44, %c0_45, %c0_46] : memref<9x96x96xf32, #tpu.memory_space<vmem>>, vector<1x96x96xf32>
    %52 = vector.shape_cast %51 : vector<1x96x96xf32> to vector<96x96xf32>
    %cst_47 = arith.constant dense<0.000000e+00> : vector<56x96xf32>
    %53 = tpu.matmul %50, %52, %cst_47 {dimension_numbers = #tpu.dot_dimension_numbers<[1], [0], [0], [1], [0, 0, 1, 1], [], []>} : vector<56x96xf32>, vector<96x96xf32>, vector<56x96xf32> -> vector<56x96xf32>
    %54 = arith.addf %48, %53 : vector<56x96xf32>
    %c0_48 = arith.constant 0 : index
    %c0_49 = arith.constant 0 : index
    %55 = vector.load %arg4[%c0_48, %c0_49] : memref<1x96xf32, #tpu.memory_space<vmem>>, vector<1x96xf32>
    %56 = vector.broadcast %55 : vector<1x96xf32> to vector<56x96xf32>
    %57 = arith.mulf %54, %56 : vector<56x96xf32>
    %c0_50 = arith.constant 0 : index
    %c0_51 = arith.constant 0 : index
    %58 = vector.load %arg5[%c0_50, %c0_51] : memref<1x96xf32, #tpu.memory_space<vmem>>, vector<1x96xf32>
    %59 = vector.broadcast %58 : vector<1x96xf32> to vector<56x96xf32>
    %60 = arith.addf %57, %59 : vector<56x96xf32>
    %cst_52 = arith.constant 0.000000e+00 : f32
    %61 = vector.broadcast %cst_52 : f32 to vector<56x96xf32>
    %62 = arith.maximumf %60, %61 : vector<56x96xf32>
    %c0_53 = arith.constant 0 : index
    %c0_54 = arith.constant 0 : index
    %c0_55 = arith.constant 0 : index
    %63 = vector.load %arg6[%c0_53, %c0_54, %c0_55] : memref<1x56x96xf32, #tpu.memory_space<vmem>>, vector<1x56x96xf32>
    %64 = vector.shape_cast %63 : vector<1x56x96xf32> to vector<56x96xf32>
    %65 = vector.shape_cast %62 : vector<56x96xf32> to vector<1x56x96xf32>
    tpu.vector_store %arg6[%c0_53, %c0_54, %c0_55], %65 {strides = array<i32>} : memref<1x56x96xf32, #tpu.memory_space<vmem>>, vector<1x56x96xf32>,
    return
  }
  func.func @transform_0(%arg0: i32, %arg1: i32) -> (i32, i32, i32) {
    %c0_i32 = arith.constant 0 : i32
    %c0_i32_0 = arith.constant 0 : i32
    %c0_i32_1 = arith.constant 0 : i32
    return %arg0, %c0_i32, %c0_i32_0 : i32, i32, i32
  }
  func.func @transform_1(%arg0: i32, %arg1: i32) -> (i32, i32, i32) {
    %c0_i32 = arith.constant 0 : i32
    %c0_i32_0 = arith.constant 0 : i32
    %c0_i32_1 = arith.constant 0 : i32
    return %c0_i32, %c0_i32_0, %arg1 : i32, i32, i32
  }
  func.func @transform_2(%arg0: i32, %arg1: i32) -> (i32, i32) {
    %c0_i32 = arith.constant 0 : i32
    %c0_i32_0 = arith.constant 0 : i32
    return %c0_i32, %arg1 : i32, i32
  }
  func.func @transform_3(%arg0: i32, %arg1: i32) -> (i32, i32) {
    %c0_i32 = arith.constant 0 : i32
    %c0_i32_0 = arith.constant 0 : i32
    return %c0_i32, %arg1 : i32, i32
  }
  func.func @transform_4(%arg0: i32, %arg1: i32) -> (i32, i32, i32) {
    %c0_i32 = arith.constant 0 : i32
    %c0_i32_0 = arith.constant 0 : i32
    return %arg0, %c0_i32, %arg1 : i32, i32, i32
  }
}

module attributes {stable_mosaic.version = 11 : i64} {
  func.func @_maxpool_kernel(%arg0: i32, %arg1: memref<1x256x32xf32, #tpu.memory_space<vmem>>, %arg2: memref<1x56x32xf32, #tpu.memory_space<vmem>>) attributes {dimension_semantics = [#tpu.dimension_semantics<parallel>], iteration_bounds = array<i64: 2>, scalar_prefetch = 0 : i64, scratch_operands = 0 : i64, tpu.core_type = #tpu.core_type<tc>, window_params = [{transform_indices = @transform_0, window_bounds = array<i64: 1, 256, 32>}, {transform_indices = @transform_1, window_bounds = array<i64: 1, 56, 32>}]} {
    %c0 = arith.constant 0 : index
    %c0_0 = arith.constant 0 : index
    %c0_1 = arith.constant 0 : index
    %0 = vector.load %arg1[%c0, %c0_0, %c0_1] : memref<1x256x32xf32, #tpu.memory_space<vmem>>, vector<1x56x32xf32>
    %1 = vector.shape_cast %0 : vector<1x56x32xf32> to vector<56x32xf32>
    %c0_2 = arith.constant 0 : index
    %c64 = arith.constant 64 : index
    %c0_3 = arith.constant 0 : index
    %2 = vector.load %arg1[%c0_2, %c64, %c0_3] : memref<1x256x32xf32, #tpu.memory_space<vmem>>, vector<1x56x32xf32>
    %3 = vector.shape_cast %2 : vector<1x56x32xf32> to vector<56x32xf32>
    %4 = arith.maximumf %1, %3 : vector<56x32xf32>
    %c0_4 = arith.constant 0 : index
    %c1 = arith.constant 1 : index
    %c0_5 = arith.constant 0 : index
    %5 = vector.load %arg1[%c0_4, %c1, %c0_5] : memref<1x256x32xf32, #tpu.memory_space<vmem>>, vector<1x56x32xf32>
    %6 = vector.shape_cast %5 : vector<1x56x32xf32> to vector<56x32xf32>
    %7 = arith.maximumf %4, %6 : vector<56x32xf32>
    %c0_6 = arith.constant 0 : index
    %c128 = arith.constant 128 : index
    %c0_7 = arith.constant 0 : index
    %8 = vector.load %arg1[%c0_6, %c128, %c0_7] : memref<1x256x32xf32, #tpu.memory_space<vmem>>, vector<1x56x32xf32>
    %9 = vector.shape_cast %8 : vector<1x56x32xf32> to vector<56x32xf32>
    %10 = arith.maximumf %7, %9 : vector<56x32xf32>
    %c0_8 = arith.constant 0 : index
    %c192 = arith.constant 192 : index
    %c0_9 = arith.constant 0 : index
    %11 = vector.load %arg1[%c0_8, %c192, %c0_9] : memref<1x256x32xf32, #tpu.memory_space<vmem>>, vector<1x56x32xf32>
    %12 = vector.shape_cast %11 : vector<1x56x32xf32> to vector<56x32xf32>
    %13 = arith.maximumf %10, %12 : vector<56x32xf32>
    %c0_10 = arith.constant 0 : index
    %c129 = arith.constant 129 : index
    %c0_11 = arith.constant 0 : index
    %14 = vector.load %arg1[%c0_10, %c129, %c0_11] : memref<1x256x32xf32, #tpu.memory_space<vmem>>, vector<1x56x32xf32>
    %15 = vector.shape_cast %14 : vector<1x56x32xf32> to vector<56x32xf32>
    %16 = arith.maximumf %13, %15 : vector<56x32xf32>
    %c0_12 = arith.constant 0 : index
    %c8 = arith.constant 8 : index
    %c0_13 = arith.constant 0 : index
    %17 = vector.load %arg1[%c0_12, %c8, %c0_13] : memref<1x256x32xf32, #tpu.memory_space<vmem>>, vector<1x56x32xf32>
    %18 = vector.shape_cast %17 : vector<1x56x32xf32> to vector<56x32xf32>
    %19 = arith.maximumf %16, %18 : vector<56x32xf32>
    %c0_14 = arith.constant 0 : index
    %c72 = arith.constant 72 : index
    %c0_15 = arith.constant 0 : index
    %20 = vector.load %arg1[%c0_14, %c72, %c0_15] : memref<1x256x32xf32, #tpu.memory_space<vmem>>, vector<1x56x32xf32>
    %21 = vector.shape_cast %20 : vector<1x56x32xf32> to vector<56x32xf32>
    %22 = arith.maximumf %19, %21 : vector<56x32xf32>
    %c0_16 = arith.constant 0 : index
    %c9 = arith.constant 9 : index
    %c0_17 = arith.constant 0 : index
    %23 = vector.load %arg1[%c0_16, %c9, %c0_17] : memref<1x256x32xf32, #tpu.memory_space<vmem>>, vector<1x56x32xf32>
    %24 = vector.shape_cast %23 : vector<1x56x32xf32> to vector<56x32xf32>
    %25 = arith.maximumf %22, %24 : vector<56x32xf32>
    %c0_18 = arith.constant 0 : index
    %c0_19 = arith.constant 0 : index
    %c0_20 = arith.constant 0 : index
    %26 = vector.load %arg2[%c0_18, %c0_19, %c0_20] : memref<1x56x32xf32, #tpu.memory_space<vmem>>, vector<1x56x32xf32>
    %27 = vector.shape_cast %26 : vector<1x56x32xf32> to vector<56x32xf32>
    %28 = vector.shape_cast %25 : vector<56x32xf32> to vector<1x56x32xf32>
    tpu.vector_store %arg2[%c0_18, %c0_19, %c0_20], %28 {strides = array<i32>} : memref<1x56x32xf32, #tpu.memory_space<vmem>>, vector<1x56x32xf32>,
    return
  }
  func.func @transform_0(%arg0: i32) -> (i32, i32, i32) {
    %c0_i32 = arith.constant 0 : i32
    %c0_i32_0 = arith.constant 0 : i32
    %c0_i32_1 = arith.constant 0 : i32
    return %arg0, %c0_i32, %c0_i32_0 : i32, i32, i32
  }
  func.func @transform_1(%arg0: i32) -> (i32, i32, i32) {
    %c0_i32 = arith.constant 0 : i32
    %c0_i32_0 = arith.constant 0 : i32
    %c0_i32_1 = arith.constant 0 : i32
    return %arg0, %c0_i32, %c0_i32_0 : i32, i32, i32
  }
}

module attributes {stable_mosaic.version = 11 : i64} {
  func.func @_conv_bn_relu_kernel(%arg0: i32, %arg1: i32, %arg2: memref<1x256x32xf32, #tpu.memory_space<vmem>>, %arg3: memref<9x32x128xf32, #tpu.memory_space<vmem>>, %arg4: memref<1x128xf32, #tpu.memory_space<vmem>>, %arg5: memref<1x128xf32, #tpu.memory_space<vmem>>, %arg6: memref<1x56x128xf32, #tpu.memory_space<vmem>>) attributes {dimension_semantics = [#tpu.dimension_semantics<parallel>, #tpu.dimension_semantics<parallel>], iteration_bounds = array<i64: 2, 3>, scalar_prefetch = 0 : i64, scratch_operands = 0 : i64, tpu.core_type = #tpu.core_type<tc>, window_params = [{transform_indices = @transform_0, window_bounds = array<i64: 1, 256, 32>}, {transform_indices = @transform_1, window_bounds = array<i64: 9, 32, 128>}, {transform_indices = @transform_2, window_bounds = array<i64: 1, 128>}, {transform_indices = @transform_3, window_bounds = array<i64: 1, 128>}, {transform_indices = @transform_4, window_bounds = array<i64: 1, 56, 128>}]} {
    %cst = arith.constant 0.000000e+00 : f32
    %0 = vector.broadcast %cst : f32 to vector<56x128xf32>
    %c0 = arith.constant 0 : index
    %c0_0 = arith.constant 0 : index
    %c0_1 = arith.constant 0 : index
    %1 = vector.load %arg2[%c0, %c0_0, %c0_1] : memref<1x256x32xf32, #tpu.memory_space<vmem>>, vector<1x56x32xf32>
    %2 = vector.shape_cast %1 : vector<1x56x32xf32> to vector<56x32xf32>
    %c0_2 = arith.constant 0 : index
    %c0_3 = arith.constant 0 : index
    %c0_4 = arith.constant 0 : index
    %3 = vector.load %arg3[%c0_2, %c0_3, %c0_4] : memref<9x32x128xf32, #tpu.memory_space<vmem>>, vector<1x32x128xf32>
    %4 = vector.shape_cast %3 : vector<1x32x128xf32> to vector<32x128xf32>
    %cst_5 = arith.constant dense<0.000000e+00> : vector<56x128xf32>
    %5 = tpu.matmul %2, %4, %cst_5 {dimension_numbers = #tpu.dot_dimension_numbers<[1], [0], [0], [1], [0, 0, 1, 1], [], []>} : vector<56x32xf32>, vector<32x128xf32>, vector<56x128xf32> -> vector<56x128xf32>
    %6 = arith.addf %0, %5 : vector<56x128xf32>
    %c0_6 = arith.constant 0 : index
    %c64 = arith.constant 64 : index
    %c0_7 = arith.constant 0 : index
    %7 = vector.load %arg2[%c0_6, %c64, %c0_7] : memref<1x256x32xf32, #tpu.memory_space<vmem>>, vector<1x56x32xf32>
    %8 = vector.shape_cast %7 : vector<1x56x32xf32> to vector<56x32xf32>
    %c1 = arith.constant 1 : index
    %c0_8 = arith.constant 0 : index
    %c0_9 = arith.constant 0 : index
    %9 = vector.load %arg3[%c1, %c0_8, %c0_9] : memref<9x32x128xf32, #tpu.memory_space<vmem>>, vector<1x32x128xf32>
    %10 = vector.shape_cast %9 : vector<1x32x128xf32> to vector<32x128xf32>
    %cst_10 = arith.constant dense<0.000000e+00> : vector<56x128xf32>
    %11 = tpu.matmul %8, %10, %cst_10 {dimension_numbers = #tpu.dot_dimension_numbers<[1], [0], [0], [1], [0, 0, 1, 1], [], []>} : vector<56x32xf32>, vector<32x128xf32>, vector<56x128xf32> -> vector<56x128xf32>
    %12 = arith.addf %6, %11 : vector<56x128xf32>
    %c0_11 = arith.constant 0 : index
    %c1_12 = arith.constant 1 : index
    %c0_13 = arith.constant 0 : index
    %13 = vector.load %arg2[%c0_11, %c1_12, %c0_13] : memref<1x256x32xf32, #tpu.memory_space<vmem>>, vector<1x56x32xf32>
    %14 = vector.shape_cast %13 : vector<1x56x32xf32> to vector<56x32xf32>
    %c2 = arith.constant 2 : index
    %c0_14 = arith.constant 0 : index
    %c0_15 = arith.constant 0 : index
    %15 = vector.load %arg3[%c2, %c0_14, %c0_15] : memref<9x32x128xf32, #tpu.memory_space<vmem>>, vector<1x32x128xf32>
    %16 = vector.shape_cast %15 : vector<1x32x128xf32> to vector<32x128xf32>
    %cst_16 = arith.constant dense<0.000000e+00> : vector<56x128xf32>
    %17 = tpu.matmul %14, %16, %cst_16 {dimension_numbers = #tpu.dot_dimension_numbers<[1], [0], [0], [1], [0, 0, 1, 1], [], []>} : vector<56x32xf32>, vector<32x128xf32>, vector<56x128xf32> -> vector<56x128xf32>
    %18 = arith.addf %12, %17 : vector<56x128xf32>
    %c0_17 = arith.constant 0 : index
    %c128 = arith.constant 128 : index
    %c0_18 = arith.constant 0 : index
    %19 = vector.load %arg2[%c0_17, %c128, %c0_18] : memref<1x256x32xf32, #tpu.memory_space<vmem>>, vector<1x56x32xf32>
    %20 = vector.shape_cast %19 : vector<1x56x32xf32> to vector<56x32xf32>
    %c3 = arith.constant 3 : index
    %c0_19 = arith.constant 0 : index
    %c0_20 = arith.constant 0 : index
    %21 = vector.load %arg3[%c3, %c0_19, %c0_20] : memref<9x32x128xf32, #tpu.memory_space<vmem>>, vector<1x32x128xf32>
    %22 = vector.shape_cast %21 : vector<1x32x128xf32> to vector<32x128xf32>
    %cst_21 = arith.constant dense<0.000000e+00> : vector<56x128xf32>
    %23 = tpu.matmul %20, %22, %cst_21 {dimension_numbers = #tpu.dot_dimension_numbers<[1], [0], [0], [1], [0, 0, 1, 1], [], []>} : vector<56x32xf32>, vector<32x128xf32>, vector<56x128xf32> -> vector<56x128xf32>
    %24 = arith.addf %18, %23 : vector<56x128xf32>
    %c0_22 = arith.constant 0 : index
    %c192 = arith.constant 192 : index
    %c0_23 = arith.constant 0 : index
    %25 = vector.load %arg2[%c0_22, %c192, %c0_23] : memref<1x256x32xf32, #tpu.memory_space<vmem>>, vector<1x56x32xf32>
    %26 = vector.shape_cast %25 : vector<1x56x32xf32> to vector<56x32xf32>
    %c4 = arith.constant 4 : index
    %c0_24 = arith.constant 0 : index
    %c0_25 = arith.constant 0 : index
    %27 = vector.load %arg3[%c4, %c0_24, %c0_25] : memref<9x32x128xf32, #tpu.memory_space<vmem>>, vector<1x32x128xf32>
    %28 = vector.shape_cast %27 : vector<1x32x128xf32> to vector<32x128xf32>
    %cst_26 = arith.constant dense<0.000000e+00> : vector<56x128xf32>
    %29 = tpu.matmul %26, %28, %cst_26 {dimension_numbers = #tpu.dot_dimension_numbers<[1], [0], [0], [1], [0, 0, 1, 1], [], []>} : vector<56x32xf32>, vector<32x128xf32>, vector<56x128xf32> -> vector<56x128xf32>
    %30 = arith.addf %24, %29 : vector<56x128xf32>
    %c0_27 = arith.constant 0 : index
    %c129 = arith.constant 129 : index
    %c0_28 = arith.constant 0 : index
    %31 = vector.load %arg2[%c0_27, %c129, %c0_28] : memref<1x256x32xf32, #tpu.memory_space<vmem>>, vector<1x56x32xf32>
    %32 = vector.shape_cast %31 : vector<1x56x32xf32> to vector<56x32xf32>
    %c5 = arith.constant 5 : index
    %c0_29 = arith.constant 0 : index
    %c0_30 = arith.constant 0 : index
    %33 = vector.load %arg3[%c5, %c0_29, %c0_30] : memref<9x32x128xf32, #tpu.memory_space<vmem>>, vector<1x32x128xf32>
    %34 = vector.shape_cast %33 : vector<1x32x128xf32> to vector<32x128xf32>
    %cst_31 = arith.constant dense<0.000000e+00> : vector<56x128xf32>
    %35 = tpu.matmul %32, %34, %cst_31 {dimension_numbers = #tpu.dot_dimension_numbers<[1], [0], [0], [1], [0, 0, 1, 1], [], []>} : vector<56x32xf32>, vector<32x128xf32>, vector<56x128xf32> -> vector<56x128xf32>
    %36 = arith.addf %30, %35 : vector<56x128xf32>
    %c0_32 = arith.constant 0 : index
    %c8 = arith.constant 8 : index
    %c0_33 = arith.constant 0 : index
    %37 = vector.load %arg2[%c0_32, %c8, %c0_33] : memref<1x256x32xf32, #tpu.memory_space<vmem>>, vector<1x56x32xf32>
    %38 = vector.shape_cast %37 : vector<1x56x32xf32> to vector<56x32xf32>
    %c6 = arith.constant 6 : index
    %c0_34 = arith.constant 0 : index
    %c0_35 = arith.constant 0 : index
    %39 = vector.load %arg3[%c6, %c0_34, %c0_35] : memref<9x32x128xf32, #tpu.memory_space<vmem>>, vector<1x32x128xf32>
    %40 = vector.shape_cast %39 : vector<1x32x128xf32> to vector<32x128xf32>
    %cst_36 = arith.constant dense<0.000000e+00> : vector<56x128xf32>
    %41 = tpu.matmul %38, %40, %cst_36 {dimension_numbers = #tpu.dot_dimension_numbers<[1], [0], [0], [1], [0, 0, 1, 1], [], []>} : vector<56x32xf32>, vector<32x128xf32>, vector<56x128xf32> -> vector<56x128xf32>
    %42 = arith.addf %36, %41 : vector<56x128xf32>
    %c0_37 = arith.constant 0 : index
    %c72 = arith.constant 72 : index
    %c0_38 = arith.constant 0 : index
    %43 = vector.load %arg2[%c0_37, %c72, %c0_38] : memref<1x256x32xf32, #tpu.memory_space<vmem>>, vector<1x56x32xf32>
    %44 = vector.shape_cast %43 : vector<1x56x32xf32> to vector<56x32xf32>
    %c7 = arith.constant 7 : index
    %c0_39 = arith.constant 0 : index
    %c0_40 = arith.constant 0 : index
    %45 = vector.load %arg3[%c7, %c0_39, %c0_40] : memref<9x32x128xf32, #tpu.memory_space<vmem>>, vector<1x32x128xf32>
    %46 = vector.shape_cast %45 : vector<1x32x128xf32> to vector<32x128xf32>
    %cst_41 = arith.constant dense<0.000000e+00> : vector<56x128xf32>
    %47 = tpu.matmul %44, %46, %cst_41 {dimension_numbers = #tpu.dot_dimension_numbers<[1], [0], [0], [1], [0, 0, 1, 1], [], []>} : vector<56x32xf32>, vector<32x128xf32>, vector<56x128xf32> -> vector<56x128xf32>
    %48 = arith.addf %42, %47 : vector<56x128xf32>
    %c0_42 = arith.constant 0 : index
    %c9 = arith.constant 9 : index
    %c0_43 = arith.constant 0 : index
    %49 = vector.load %arg2[%c0_42, %c9, %c0_43] : memref<1x256x32xf32, #tpu.memory_space<vmem>>, vector<1x56x32xf32>
    %50 = vector.shape_cast %49 : vector<1x56x32xf32> to vector<56x32xf32>
    %c8_44 = arith.constant 8 : index
    %c0_45 = arith.constant 0 : index
    %c0_46 = arith.constant 0 : index
    %51 = vector.load %arg3[%c8_44, %c0_45, %c0_46] : memref<9x32x128xf32, #tpu.memory_space<vmem>>, vector<1x32x128xf32>
    %52 = vector.shape_cast %51 : vector<1x32x128xf32> to vector<32x128xf32>
    %cst_47 = arith.constant dense<0.000000e+00> : vector<56x128xf32>
    %53 = tpu.matmul %50, %52, %cst_47 {dimension_numbers = #tpu.dot_dimension_numbers<[1], [0], [0], [1], [0, 0, 1, 1], [], []>} : vector<56x32xf32>, vector<32x128xf32>, vector<56x128xf32> -> vector<56x128xf32>
    %54 = arith.addf %48, %53 : vector<56x128xf32>
    %c0_48 = arith.constant 0 : index
    %c0_49 = arith.constant 0 : index
    %55 = vector.load %arg4[%c0_48, %c0_49] : memref<1x128xf32, #tpu.memory_space<vmem>>, vector<1x128xf32>
    %56 = vector.broadcast %55 : vector<1x128xf32> to vector<56x128xf32>
    %57 = arith.mulf %54, %56 : vector<56x128xf32>
    %c0_50 = arith.constant 0 : index
    %c0_51 = arith.constant 0 : index
    %58 = vector.load %arg5[%c0_50, %c0_51] : memref<1x128xf32, #tpu.memory_space<vmem>>, vector<1x128xf32>
    %59 = vector.broadcast %58 : vector<1x128xf32> to vector<56x128xf32>
    %60 = arith.addf %57, %59 : vector<56x128xf32>
    %cst_52 = arith.constant 0.000000e+00 : f32
    %61 = vector.broadcast %cst_52 : f32 to vector<56x128xf32>
    %62 = arith.maximumf %60, %61 : vector<56x128xf32>
    %c0_53 = arith.constant 0 : index
    %c0_54 = arith.constant 0 : index
    %c0_55 = arith.constant 0 : index
    %63 = vector.load %arg6[%c0_53, %c0_54, %c0_55] : memref<1x56x128xf32, #tpu.memory_space<vmem>>, vector<1x56x128xf32>
    %64 = vector.shape_cast %63 : vector<1x56x128xf32> to vector<56x128xf32>
    %65 = vector.shape_cast %62 : vector<56x128xf32> to vector<1x56x128xf32>
    tpu.vector_store %arg6[%c0_53, %c0_54, %c0_55], %65 {strides = array<i32>} : memref<1x56x128xf32, #tpu.memory_space<vmem>>, vector<1x56x128xf32>,
    return
  }
  func.func @transform_0(%arg0: i32, %arg1: i32) -> (i32, i32, i32) {
    %c0_i32 = arith.constant 0 : i32
    %c0_i32_0 = arith.constant 0 : i32
    %c0_i32_1 = arith.constant 0 : i32
    return %arg0, %c0_i32, %c0_i32_0 : i32, i32, i32
  }
  func.func @transform_1(%arg0: i32, %arg1: i32) -> (i32, i32, i32) {
    %c0_i32 = arith.constant 0 : i32
    %c0_i32_0 = arith.constant 0 : i32
    %c0_i32_1 = arith.constant 0 : i32
    return %c0_i32, %c0_i32_0, %arg1 : i32, i32, i32
  }
  func.func @transform_2(%arg0: i32, %arg1: i32) -> (i32, i32) {
    %c0_i32 = arith.constant 0 : i32
    %c0_i32_0 = arith.constant 0 : i32
    return %c0_i32, %arg1 : i32, i32
  }
  func.func @transform_3(%arg0: i32, %arg1: i32) -> (i32, i32) {
    %c0_i32 = arith.constant 0 : i32
    %c0_i32_0 = arith.constant 0 : i32
    return %c0_i32, %arg1 : i32, i32
  }
  func.func @transform_4(%arg0: i32, %arg1: i32) -> (i32, i32, i32) {
    %c0_i32 = arith.constant 0 : i32
    %c0_i32_0 = arith.constant 0 : i32
    return %arg0, %c0_i32, %arg1 : i32, i32, i32
  }
}

</mosaic_0001>

<bundles_post_ra>
// kernel: inception_b.6
= control target key start
LH: loop header
LB: loop body
LE: loop exit
PB: predicated region body
PF: predicated region fallthrough
CT: control target
= control target key end

     0   :  { %s1100_s15 = smov 0   ;;  %s1102_s16 = smov 0   ;;  %s1405_s0 = inlined_call_operand.vmem [shape: f32[2,225,32], index: 0, kind: input, shape index: {}]   ;;  %s1406_s1 = inlined_call_operand.vmem [shape: f32[1,32,64], index: 1, kind: input, shape index: {}]   ;;  %s1407_s2 = inlined_call_operand.vmem [shape: f32[1,64], index: 2, kind: input, shape index: {}]   ;;  %s1408_s3 = inlined_call_operand.vmem [shape: f32[1,64], index: 3, kind: input, shape index: {}]   ;;  %s1409_s4 = inlined_call_operand.vmem [shape: f32[2,225,64], index: 4, kind: output, shape index: {}]  }
   0x1   :  { %s1104_s17 = smov 0  }
   0x2 LB: > { %s26_s18 = sadd.s32 1, %s1067_s16  ;;  %p850_p0 = scmp.ge.s32.totalorder %s1071_s17, 1  ;;  %s1071_s17 = sphi %s1104_s17, %s14_s17   ;;  %s1067_s16 = sphi %s1102_s16, %s1411_s16   ;;  %s1063_s15 = sphi %s1100_s15, %s1410_s15  }
   0x3   : > { %p28_p1 = scmp.ge.s32.totalorder %s26_s18, 2  ;;  %p201_p2 = scmp.lt.s32.totalorder %s1071_s17, 3 }
   0x5   : > { %s1413_s18 = smov (%p28_p1, %s26_s18), 0  ;;  %p202_p3 = pnand %p850_p0, %p201_p2 }
   0x6   : > { %p240_p4 = scmp.lt.s32.totalorder (!%p202_p3), %s1063_s15, 1 }
   0x7   : > { %205 = sbr.rel (%p202_p3) target bundleno = 277 (0x115), region = 36 }
   0xc   : > { %v295_v0 = vld [vmem:[%s1406_s1 + $0x18] sm:$0xff]  ;;  %v1073_v1 = vmov 0.0   ;;  %v294_v2 = vld [vmem:[%s1406_s1 + $0x10] sm:$0xff]  ;;  %s1415_s15 = smov (!%p240_p4, %s1063_s15), 1  ;;  %v293_v3 = vld [vmem:[%s1406_s1 + $0x8] sm:$0xff]  ;;  %vm296_vm0 = vcmask 261120  }
   0xd   : > { %919 = vmatprep.subr.mxu0 %v1073_v1  ;;  %1014 = vmatprep.subr.mxu1 %v1073_v1  ;;  %s1022_s25 = smul.u32 232, %s1415_s15  ;;  %v292_v4 = vld [vmem:[%s1406_s1] sm:$0xff]  ;;  %vm1074_vm1 = vmmov 0   ;;  %vm695_vm2 = vcmask 523264   ;;  %vm724_vm3 = vcmask 516096  }
   0xe   : > { %920 = vmatpush3.msra.mxu0 %v295_v0  ;;  %1018 = vmatpush3.msra.mxu1 %v295_v0  ;;  %v1267_v34 = vld [vmem:[%s1407_s2] ss:$0 sm:$0xff] }
   0xf   : > { %921 = vmatprep.subr.mxu0 %v1073_v1  ;;  %1015 = vmatprep.subr.mxu1 %v1073_v1  ;;  %s1144_s30 = scalar_lea.vmem %s1405_s0, %s1022_s25  ;;  %v1272_v36 = vld [vmem:[%s1408_s3] ss:$0 sm:$0xff]  ;;  %s1282_s11 = scalar_lea.vmem %s1409_s4, %s1022_s25 }
  0x10   : > { %922 = vmatpush3.msra.mxu0 %v294_v2  ;;  %1019 = vmatpush3.msra.mxu1 %v294_v2  ;;  %v263_v5 = vld [vmem:[%s1144_s30] sm:$0xff]  ;;  %v278_v6 = vld [vmem:[%s1144_s30 + $0x78] sm:$0xff]  ;;  %v264_v7 = vld [vmem:[%s1144_s30 + $0x8] sm:$0xff] }
  0x11   : > { %923 = vmatprep.subr.mxu0 %v1073_v1  ;;  %1016 = vmatprep.subr.mxu1 %v1073_v1  ;;  %v279_v8 = vld [vmem:[%s1144_s30 + $0x80] sm:$0xff]  ;;  %v265_v9 = vld [vmem:[%s1144_s30 + $0x10] sm:$0xff]  ;;  %v280_v10 = vld [vmem:[%s1144_s30 + $0x88] sm:$0xff] }
  0x12   : > { %924 = vmatpush3.msra.mxu0 %v293_v3  ;;  %1020 = vmatpush3.msra.mxu1 %v293_v3  ;;  %v266_v11 = vld [vmem:[%s1144_s30 + $0x18] sm:$0xff]  ;;  %v281_v12 = vld [vmem:[%s1144_s30 + $0x90] sm:$0xff]  ;;  %v267_v13 = vld [vmem:[%s1144_s30 + $0x20] sm:$0xff] }
  0x13   : > { %925 = vmatprep.subr.mxu0 %v1073_v1  ;;  %927 = vmatprep.mubr.msk.f32.mxu0 %vm1074_vm1, %v1073_v1  ;;  %v282_v14 = vld [vmem:[%s1144_s30 + $0x98] sm:$0xff]  ;;  %v268_v15 = vld [vmem:[%s1144_s30 + $0x28] sm:$0xff]  ;;  %v283_v16 = vld [vmem:[%s1144_s30 + $0xa0] sm:$0xff] }
  0x14   : > { %926 = vmatpush3.msra.mxu0 %v292_v4  ;;  %1017 = vmatprep.subr.mxu1 %v1073_v1  ;;  %v269_v17 = vld [vmem:[%s1144_s30 + $0x30] sm:$0xff]  ;;  %v284_v18 = vld [vmem:[%s1144_s30 + $0xa8] sm:$0xff]  ;;  %v270_v19 = vld [vmem:[%s1144_s30 + $0x38] sm:$0xff] }
  0x15   : > { %928 = vmatmul.mubr.msk.f32.vlgmr.msra.gmra.mxu0 %vm296_vm0, %v263_v5  ;;  %1021 = vmatpush3.msra.mxu1 %v292_v4  ;;  %v285_v20 = vld [vmem:[%s1144_s30 + $0xb0] sm:$0xff]  ;;  %v271_v21 = vld [vmem:[%s1144_s30 + $0x40] sm:$0xff]  ;;  %v286_v22 = vld [vmem:[%s1144_s30 + $0xb8] sm:$0xff] }
  0x16   : > { %972 = vmatprep.mubr.msk.f32.mxu1 %vm1074_vm1, %v1073_v1  ;;  %930 = vmatprep.mubr.msk.f32.mxu0 %vm1074_vm1, %v1073_v1  ;;  %v272_v23 = vld [vmem:[%s1144_s30 + $0x48] sm:$0xff]  ;;  %v287_v24 = vld [vmem:[%s1144_s30 + $0xc0] sm:$0xff]  ;;  %v273_v25 = vld [vmem:[%s1144_s30 + $0x50] sm:$0xff] }
  0x17   : > { %973 = vmatmul.mubr.msk.f32.vlgmr.msra.gmra.mxu1 %vm296_vm0, %v278_v6  ;;  %v288_v26 = vld [vmem:[%s1144_s30 + $0xc8] sm:$0xff]  ;;  %v274_v27 = vld [vmem:[%s1144_s30 + $0x58] sm:$0xff]  ;;  %v289_v28 = vld [vmem:[%s1144_s30 + $0xd0] sm:$0xff] }
  0x18   : > { %975 = vmatprep.mubr.msk.f32.mxu1 %vm1074_vm1, %v1073_v1  ;;  %v275_v29 = vld [vmem:[%s1144_s30 + $0x60] sm:$0xff]  ;;  %v290_v30 = vld [vmem:[%s1144_s30 + $0xd8] sm:$0xff]  ;;  %v276_v31 = vld [vmem:[%s1144_s30 + $0x68] sm:$0xff] }
  0x19   : > { %931 = vmatmul.mubr.msk.f32.gmra.mxu0 %vm296_vm0, %v264_v7  ;;  %v291_v32 = vld [vmem:[%s1144_s30 + $0xe0] sm:$0x1]  ;;  %v277_v33 = vld [vmem:[%s1144_s30 + $0x70] sm:$0xff] }
  0x1a   : > { %933 = vmatprep.mubr.msk.f32.mxu0 %vm1074_vm1, %v1073_v1 }
  0x1b   : > { %976 = vmatmul.mubr.msk.f32.gmra.mxu1 %vm296_vm0, %v279_v8 }
  0x1c   : > { %978 = vmatprep.mubr.msk.f32.mxu1 %vm1074_vm1, %v1073_v1 }
  0x1d   : > { %934 = vmatmul.mubr.msk.f32.gmra.mxu0 %vm296_vm0, %v265_v9 }
  0x1e   : > { %936 = vmatprep.mubr.msk.f32.mxu0 %vm1074_vm1, %v1073_v1 }
  0x1f   : > { %979 = vmatmul.mubr.msk.f32.gmra.mxu1 %vm296_vm0, %v280_v10 }
  0x20   : > { %981 = vmatprep.mubr.msk.f32.mxu1 %vm1074_vm1, %v1073_v1 }
  0x21   : > { %937 = vmatmul.mubr.msk.f32.gmra.mxu0 %vm296_vm0, %v266_v11 }
  0x22   : > { %939 = vmatprep.mubr.msk.f32.mxu0 %vm1074_vm1, %v1073_v1 }
  0x23   : > { %982 = vmatmul.mubr.msk.f32.gmra.mxu1 %vm296_vm0, %v281_v12 }
  0x24   : > { %984 = vmatprep.mubr.msk.f32.mxu1 %vm1074_vm1, %v1073_v1 }
  0x25   : > { %940 = vmatmul.mubr.msk.f32.gmra.mxu0 %vm296_vm0, %v267_v13 }
  0x26   : > { %942 = vmatprep.mubr.msk.f32.mxu0 %vm1074_vm1, %v1073_v1 }
  0x27   : > { %985 = vmatmul.mubr.msk.f32.gmra.mxu1 %vm296_vm0, %v282_v14 }
  0x28   : > { %987 = vmatprep.mubr.msk.f32.mxu1 %vm1074_vm1, %v1073_v1 }
  0x29   : > { %943 = vmatmul.mubr.msk.f32.gmra.mxu0 %vm296_vm0, %v268_v15 }
  0x2a   : > { %945 = vmatprep.mubr.msk.f32.mxu0 %vm1074_vm1, %v1073_v1 }
  0x2b   : > { %988 = vmatmul.mubr.msk.f32.gmra.mxu1 %vm296_vm0, %v283_v16 }
  0x2c   : > { %990 = vmatprep.mubr.msk.f32.mxu1 %vm1074_vm1, %v1073_v1 }
  0x2d   : > { %946 = vmatmul.mubr.msk.f32.gmra.mxu0 %vm296_vm0, %v269_v17 }
  0x2e   : > { %948 = vmatprep.mubr.msk.f32.mxu0 %vm1074_vm1, %v1073_v1 }
  0x2f   : > { %991 = vmatmul.mubr.msk.f32.gmra.mxu1 %vm296_vm0, %v284_v18 }
  0x30   : > { %993 = vmatprep.mubr.msk.f32.mxu1 %vm1074_vm1, %v1073_v1 }
  0x31   : > { %949 = vmatmul.mubr.msk.f32.gmra.mxu0 %vm296_vm0, %v270_v19 }
  0x32   : > { %951 = vmatprep.mubr.msk.f32.mxu0 %vm1074_vm1, %v1073_v1 }
  0x33   : > { %994 = vmatmul.mubr.msk.f32.gmra.mxu1 %vm296_vm0, %v285_v20 }
  0x34   : > { %996 = vmatprep.mubr.msk.f32.mxu1 %vm1074_vm1, %v1073_v1 }
  0x35   : > { %952 = vmatmul.mubr.msk.f32.gmra.mxu0 %vm296_vm0, %v271_v21 }
  0x36   : > { %954 = vmatprep.mubr.msk.f32.mxu0 %vm1074_vm1, %v1073_v1 }
  0x37   : > { %997 = vmatmul.mubr.msk.f32.gmra.mxu1 %vm296_vm0, %v286_v22 }
  0x38   : > { %999 = vmatprep.mubr.msk.f32.mxu1 %vm1074_vm1, %v1073_v1 }
  0x39   : > { %955 = vmatmul.mubr.msk.f32.gmra.mxu0 %vm296_vm0, %v272_v23 }
  0x3a   : > { %957 = vmatprep.mubr.msk.f32.mxu0 %vm1074_vm1, %v1073_v1 }
  0x3b   : > { %1000 = vmatmul.mubr.msk.f32.gmra.mxu1 %vm296_vm0, %v287_v24 }
  0x3c   : > { %1002 = vmatprep.mubr.msk.f32.mxu1 %vm1074_vm1, %v1073_v1 }
  0x3d   : > { %958 = vmatmul.mubr.msk.f32.gmra.mxu0 %vm296_vm0, %v273_v25 }
  0x3e   : > { %960 = vmatprep.mubr.msk.f32.mxu0 %vm1074_vm1, %v1073_v1 }
  0x3f   : > { %1003 = vmatmul.mubr.msk.f32.gmra.mxu1 %vm296_vm0, %v288_v26 }
  0x40   : > { %1005 = vmatprep.mubr.msk.f32.mxu1 %vm1074_vm1, %v1073_v1 }
  0x41   : > { %961 = vmatmul.mubr.msk.f32.gmra.mxu0 %vm296_vm0, %v274_v27 }
  0x42   : > { %963 = vmatprep.mubr.msk.f32.mxu0 %vm1074_vm1, %v1073_v1 }
  0x43   : > { %1006 = vmatmul.mubr.msk.f32.gmra.mxu1 %vm296_vm0, %v289_v28 }
  0x44   : > { %1008 = vmatprep.mubr.msk.f32.mxu1 %vm1074_vm1, %v1073_v1 }
  0x45   : > { %964 = vmatmul.mubr.msk.f32.gmra.mxu0 %vm296_vm0, %v275_v29 }
  0x46   : > { %966 = vmatprep.mubr.msk.f32.mxu0 %vm1074_vm1, %v1073_v1 }
  0x47   : > { %1009 = vmatmul.mubr.msk.f32.gmra.mxu1 %vm296_vm0, %v290_v30 }
  0x48   : > { %1011 = vmatprep.mubr.msk.f32.mxu1 %vm1074_vm1, %v1073_v1 }
  0x49   : > { %967 = vmatmul.mubr.msk.f32.gmra.mxu0 %vm296_vm0, %v276_v31 }
  0x4a   : > { %969 = vmatprep.mubr.msk.f32.mxu0 %vm1074_vm1, %v1073_v1 }
  0x4b   : > { %1012 = vmatmul.mubr.msk.f32.gmra.mxu1 %vm296_vm0, %v291_v32 }
  0x4d   : > { %970 = vmatmul.mubr.msk.f32.gmra.mxu0 %vm296_vm0, %v277_v33 }
  0xd5   : > { %v450_v35 = vpop.f32.mrf.mxu0 }
  0xd6   : > { %v601_v37 = vmul.f32 %v1267_v34, %v450_v35 }
  0xd7   : > { %v929_v38 = vpop.f32.mrf.mxu0  ;;  %v525_v39 = vpop.f32.mrf.mxu1 }
  0xd8   : > { %v637_v40 = vadd.f32 %v1272_v36, %v601_v37  ;;  %v616_v41 = vmul.f32 %v1267_v34, %v525_v39 }
  0xd9   : > { %v455_v42 = vpop.f32.mrf.mxu0  ;;  %v974_v43 = vpop.f32.mrf.mxu1 }
  0xda   : > { %v666_v44 = vmax.f32 %v637_v40, 0.0  ;;  %v652_v45 = vadd.f32 %v1272_v36, %v616_v41  ;;  %v602_v46 = vmul.f32 %v1267_v34, %v455_v42 }
  0xdb   : > { %v932_v47 = vpop.f32.mrf.mxu0  ;;  %v530_v48 = vpop.f32.mrf.mxu1 }
  0xdc   : > { %696 = vst.msk [vmem:[%s1282_s11] sm:$0xff] %vm695_vm2, %v666_v44  ;;  %v681_v49 = vmax.f32 %v652_v45, 0.0  ;;  %v638_v50 = vadd.f32 %v1272_v36, %v602_v46  ;;  %v617_v51 = vmul.f32 %v1267_v34, %v530_v48 }
  0xdd   : > { %v460_v52 = vpop.f32.mrf.mxu0  ;;  %v977_v53 = vpop.f32.mrf.mxu1 }
  0xde   : > { %711 = vst.msk [vmem:[%s1282_s11 + $0x78] sm:$0xff] %vm695_vm2, %v681_v49  ;;  %v667_v54 = vmax.f32 %v638_v50, 0.0  ;;  %v653_v55 = vadd.f32 %v1272_v36, %v617_v51  ;;  %v603_v56 = vmul.f32 %v1267_v34, %v460_v52 }
  0xdf   : > { %v935_v57 = vpop.f32.mrf.mxu0  ;;  %v535_v58 = vpop.f32.mrf.mxu1 }
  0xe0   : > { %697 = vst.msk [vmem:[%s1282_s11 + $0x8] sm:$0xff] %vm695_vm2, %v667_v54  ;;  %v682_v59 = vmax.f32 %v653_v55, 0.0  ;;  %v639_v60 = vadd.f32 %v1272_v36, %v603_v56  ;;  %v618_v61 = vmul.f32 %v1267_v34, %v535_v58 }
  0xe1   : > { %v465_v62 = vpop.f32.mrf.mxu0  ;;  %v980_v63 = vpop.f32.mrf.mxu1 }
  0xe2   : > { %712 = vst.msk [vmem:[%s1282_s11 + $0x80] sm:$0xff] %vm695_vm2, %v682_v59  ;;  %v668_v0 = vmax.f32 %v639_v60, 0.0  ;;  %v654_v1 = vadd.f32 %v1272_v36, %v618_v61  ;;  %v604_v2 = vmul.f32 %v1267_v34, %v465_v62 }
  0xe3   : > { %v938_v3 = vpop.f32.mrf.mxu0  ;;  %v540_v4 = vpop.f32.mrf.mxu1 }
  0xe4   : > { %698 = vst.msk [vmem:[%s1282_s11 + $0x10] sm:$0xff] %vm695_vm2, %v668_v0  ;;  %v683_v5 = vmax.f32 %v654_v1, 0.0  ;;  %v640_v6 = vadd.f32 %v1272_v36, %v604_v2  ;;  %v619_v7 = vmul.f32 %v1267_v34, %v540_v4 }
  0xe5   : > { %v470_v8 = vpop.f32.mrf.mxu0  ;;  %v983_v9 = vpop.f32.mrf.mxu1 }
  0xe6   : > { %713 = vst.msk [vmem:[%s1282_s11 + $0x88] sm:$0xff] %vm695_vm2, %v683_v5  ;;  %v669_v10 = vmax.f32 %v640_v6, 0.0  ;;  %v655_v11 = vadd.f32 %v1272_v36, %v619_v7  ;;  %v605_v12 = vmul.f32 %v1267_v34, %v470_v8 }
  0xe7   : > { %v941_v13 = vpop.f32.mrf.mxu0  ;;  %v545_v14 = vpop.f32.mrf.mxu1 }
  0xe8   : > { %699 = vst.msk [vmem:[%s1282_s11 + $0x18] sm:$0xff] %vm695_vm2, %v669_v10  ;;  %v684_v15 = vmax.f32 %v655_v11, 0.0  ;;  %v641_v16 = vadd.f32 %v1272_v36, %v605_v12  ;;  %v620_v17 = vmul.f32 %v1267_v34, %v545_v14 }
  0xe9   : > { %v475_v18 = vpop.f32.mrf.mxu0  ;;  %v986_v19 = vpop.f32.mrf.mxu1 }
  0xea   : > { %714 = vst.msk [vmem:[%s1282_s11 + $0x90] sm:$0xff] %vm695_vm2, %v684_v15  ;;  %v670_v20 = vmax.f32 %v641_v16, 0.0  ;;  %v656_v21 = vadd.f32 %v1272_v36, %v620_v17  ;;  %v606_v22 = vmul.f32 %v1267_v34, %v475_v18 }
  0xeb   : > { %v944_v23 = vpop.f32.mrf.mxu0  ;;  %v550_v24 = vpop.f32.mrf.mxu1 }
  0xec   : > { %700 = vst.msk [vmem:[%s1282_s11 + $0x20] sm:$0xff] %vm695_vm2, %v670_v20  ;;  %v685_v25 = vmax.f32 %v656_v21, 0.0  ;;  %v642_v26 = vadd.f32 %v1272_v36, %v606_v22  ;;  %v621_v27 = vmul.f32 %v1267_v34, %v550_v24 }
  0xed   : > { %v480_v28 = vpop.f32.mrf.mxu0  ;;  %v989_v29 = vpop.f32.mrf.mxu1 }
  0xee   : > { %715 = vst.msk [vmem:[%s1282_s11 + $0x98] sm:$0xff] %vm695_vm2, %v685_v25  ;;  %v671_v30 = vmax.f32 %v642_v26, 0.0  ;;  %v657_v31 = vadd.f32 %v1272_v36, %v621_v27  ;;  %v607_v32 = vmul.f32 %v1267_v34, %v480_v28 }
  0xef   : > { %v947_v33 = vpop.f32.mrf.mxu0  ;;  %v555_v35 = vpop.f32.mrf.mxu1 }
  0xf0   : > { %701 = vst.msk [vmem:[%s1282_s11 + $0x28] sm:$0xff] %vm695_vm2, %v671_v30  ;;  %v686_v37 = vmax.f32 %v657_v31, 0.0  ;;  %v643_v38 = vadd.f32 %v1272_v36, %v607_v32  ;;  %v622_v39 = vmul.f32 %v1267_v34, %v555_v35 }
  0xf1   : > { %v485_v40 = vpop.f32.mrf.mxu0  ;;  %v992_v41 = vpop.f32.mrf.mxu1 }
  0xf2   : > { %716 = vst.msk [vmem:[%s1282_s11 + $0xa0] sm:$0xff] %vm695_vm2, %v686_v37  ;;  %v672_v42 = vmax.f32 %v643_v38, 0.0  ;;  %v658_v43 = vadd.f32 %v1272_v36, %v622_v39  ;;  %v608_v44 = vmul.f32 %v1267_v34, %v485_v40 }
  0xf3   : > { %v950_v45 = vpop.f32.mrf.mxu0  ;;  %v560_v46 = vpop.f32.mrf.mxu1 }
  0xf4   : > { %702 = vst.msk [vmem:[%s1282_s11 + $0x30] sm:$0xff] %vm695_vm2, %v672_v42  ;;  %v687_v47 = vmax.f32 %v658_v43, 0.0  ;;  %v644_v48 = vadd.f32 %v1272_v36, %v608_v44  ;;  %v623_v49 = vmul.f32 %v1267_v34, %v560_v46 }
  0xf5   : > { %v490_v50 = vpop.f32.mrf.mxu0  ;;  %v995_v51 = vpop.f32.mrf.mxu1 }
  0xf6   : > { %717 = vst.msk [vmem:[%s1282_s11 + $0xa8] sm:$0xff] %vm695_vm2, %v687_v47  ;;  %v673_v52 = vmax.f32 %v644_v48, 0.0  ;;  %v659_v53 = vadd.f32 %v1272_v36, %v623_v49  ;;  %v609_v54 = vmul.f32 %v1267_v34, %v490_v50 }
  0xf7   : > { %v953_v55 = vpop.f32.mrf.mxu0  ;;  %v565_v56 = vpop.f32.mrf.mxu1 }
  0xf8   : > { %703 = vst.msk [vmem:[%s1282_s11 + $0x38] sm:$0xff] %vm695_vm2, %v673_v52  ;;  %v688_v57 = vmax.f32 %v659_v53, 0.0  ;;  %v645_v58 = vadd.f32 %v1272_v36, %v609_v54  ;;  %v624_v59 = vmul.f32 %v1267_v34, %v565_v56 }
  0xf9   : > { %v495_v60 = vpop.f32.mrf.mxu0  ;;  %v998_v61 = vpop.f32.mrf.mxu1 }
  0xfa   : > { %718 = vst.msk [vmem:[%s1282_s11 + $0xb0] sm:$0xff] %vm695_vm2, %v688_v57  ;;  %v674_v62 = vmax.f32 %v645_v58, 0.0  ;;  %v660_v63 = vadd.f32 %v1272_v36, %v624_v59  ;;  %v610_v0 = vmul.f32 %v1267_v34, %v495_v60 }
  0xfb   : > { %v956_v1 = vpop.f32.mrf.mxu0  ;;  %v570_v2 = vpop.f32.mrf.mxu1 }
  0xfc   : > { %704 = vst.msk [vmem:[%s1282_s11 + $0x40] sm:$0xff] %vm695_vm2, %v674_v62  ;;  %v689_v3 = vmax.f32 %v660_v63, 0.0  ;;  %v646_v4 = vadd.f32 %v1272_v36, %v610_v0  ;;  %v625_v5 = vmul.f32 %v1267_v34, %v570_v2 }
  0xfd   : > { %v500_v6 = vpop.f32.mrf.mxu0  ;;  %v1001_v7 = vpop.f32.mrf.mxu1 }
  0xfe   : > { %719 = vst.msk [vmem:[%s1282_s11 + $0xb8] sm:$0xff] %vm695_vm2, %v689_v3  ;;  %v675_v8 = vmax.f32 %v646_v4, 0.0  ;;  %v661_v9 = vadd.f32 %v1272_v36, %v625_v5  ;;  %v611_v10 = vmul.f32 %v1267_v34, %v500_v6 }
  0xff   : > { %v959_v11 = vpop.f32.mrf.mxu0  ;;  %v575_v12 = vpop.f32.mrf.mxu1 }
 0x100   : > { %705 = vst.msk [vmem:[%s1282_s11 + $0x48] sm:$0xff] %vm695_vm2, %v675_v8  ;;  %v690_v13 = vmax.f32 %v661_v9, 0.0  ;;  %v647_v14 = vadd.f32 %v1272_v36, %v611_v10  ;;  %v626_v15 = vmul.f32 %v1267_v34, %v575_v12 }
 0x101   : > { %v505_v16 = vpop.f32.mrf.mxu0  ;;  %v1004_v17 = vpop.f32.mrf.mxu1 }
 0x102   : > { %720 = vst.msk [vmem:[%s1282_s11 + $0xc0] sm:$0xff] %vm695_vm2, %v690_v13  ;;  %v676_v18 = vmax.f32 %v647_v14, 0.0  ;;  %v662_v19 = vadd.f32 %v1272_v36, %v626_v15  ;;  %v612_v20 = vmul.f32 %v1267_v34, %v505_v16 }
 0x103   : > { %v962_v21 = vpop.f32.mrf.mxu0  ;;  %v580_v22 = vpop.f32.mrf.mxu1 }
 0x104   : > { %706 = vst.msk [vmem:[%s1282_s11 + $0x50] sm:$0xff] %vm695_vm2, %v676_v18  ;;  %v691_v23 = vmax.f32 %v662_v19, 0.0  ;;  %v648_v24 = vadd.f32 %v1272_v36, %v612_v20  ;;  %v627_v25 = vmul.f32 %v1267_v34, %v580_v22 }
 0x105   : > { %v510_v26 = vpop.f32.mrf.mxu0  ;;  %v1007_v27 = vpop.f32.mrf.mxu1 }
 0x106   : > { %721 = vst.msk [vmem:[%s1282_s11 + $0xc8] sm:$0xff] %vm695_vm2, %v691_v23  ;;  %v677_v28 = vmax.f32 %v648_v24, 0.0  ;;  %v663_v29 = vadd.f32 %v1272_v36, %v627_v25  ;;  %v613_v30 = vmul.f32 %v1267_v34, %v510_v26 }
 0x107   : > { %v965_v31 = vpop.f32.mrf.mxu0  ;;  %v585_v32 = vpop.f32.mrf.mxu1 }
 0x108   : > { %707 = vst.msk [vmem:[%s1282_s11 + $0x58] sm:$0xff] %vm695_vm2, %v677_v28  ;;  %v692_v33 = vmax.f32 %v663_v29, 0.0  ;;  %v649_v35 = vadd.f32 %v1272_v36, %v613_v30  ;;  %v628_v37 = vmul.f32 %v1267_v34, %v585_v32 }
 0x109   : > { %v515_v38 = vpop.f32.mrf.mxu0  ;;  %v1010_v39 = vpop.f32.mrf.mxu1 }
 0x10a   : > { %722 = vst.msk [vmem:[%s1282_s11 + $0xd0] sm:$0xff] %vm695_vm2, %v692_v33  ;;  %v678_v40 = vmax.f32 %v649_v35, 0.0  ;;  %v664_v41 = vadd.f32 %v1272_v36, %v628_v37  ;;  %v614_v42 = vmul.f32 %v1267_v34, %v515_v38 }
 0x10b   : > { %v968_v43 = vpop.f32.mrf.mxu0  ;;  %v590_v44 = vpop.f32.mrf.mxu1 }
 0x10c   : > { %708 = vst.msk [vmem:[%s1282_s11 + $0x60] sm:$0xff] %vm695_vm2, %v678_v40  ;;  %v693_v45 = vmax.f32 %v664_v41, 0.0  ;;  %v650_v46 = vadd.f32 %v1272_v36, %v614_v42  ;;  %v629_v47 = vmul.f32 %v1267_v34, %v590_v44 }
 0x10d   : > { %v520_v48 = vpop.f32.mrf.mxu0  ;;  %v1013_v49 = vpop.f32.mrf.mxu1 }
 0x10e   : > { %723 = vst.msk [vmem:[%s1282_s11 + $0xd8] sm:$0xff] %vm695_vm2, %v693_v45  ;;  %v679_v50 = vmax.f32 %v650_v46, 0.0  ;;  %v665_v51 = vadd.f32 %v1272_v36, %v629_v47  ;;  %v615_v52 = vmul.f32 %v1267_v34, %v520_v48 }
 0x10f   : > { %v971_v53 = vpop.f32.mrf.mxu0 }
 0x110   : > { %709 = vst.msk [vmem:[%s1282_s11 + $0x68] sm:$0xff] %vm695_vm2, %v679_v50  ;;  %v694_v54 = vmax.f32 %v665_v51, 0.0  ;;  %v651_v55 = vadd.f32 %v1272_v36, %v615_v52 }
 0x112   : > { %725 = vst.msk [vmem:[%s1282_s11 + $0xe0] sm:$0x1] %vm724_vm3, %v694_v54  ;;  %v680_v56 = vmax.f32 %v651_v55, 0.0 }
 0x114   : > { %710 = vst.msk [vmem:[%s1282_s11 + $0x70] sm:$0xff] %vm695_vm2, %v680_v56 }
 0x115 PF: > { %s14_s17 = sadd.s32 1, %s1071_s17   ;;  %s1410_s15 = smov %s1067_s16 }
 0x116   : > { %p11_p5 = scmp.ge.s32.totalorder %s14_s17, 4   ;;  %s1411_s16 = smov %s1413_s18 }
 0x118   :  { %13 = sbr.rel (!%p11_p5) target bundleno = 2 (0x2), region = 75 }

// kernel: inception_b.9
= control target key start
LH: loop header
LB: loop body
LE: loop exit
PB: predicated region body
PF: predicated region fallthrough
CT: control target
= control target key end

     0   :  { %s319_s6 = smov 0   ;;  %s419_s0 = inlined_call_operand.vmem [shape: f32[2,256,32], index: 0, kind: input, shape index: {}]   ;;  %s420_s1 = inlined_call_operand.vmem [shape: f32[2,56,32], index: 1, kind: output, shape index: {}]  }
   0x1 LB: > { %s281_s7 = sadd.s32 4294967295, %s307_s6   ;;  %p285_p0 = scmp.ge.s32.totalorder %s307_s6, 1  ;;  %s307_s6 = sphi %s319_s6, %s11_s6  }
   0x2   : > { %p87_p1 = scmp.lt.s32.totalorder %s307_s6, 3 }
   0x4   : > { %p88_p2 = pnand %p285_p0, %p87_p1 }
   0x5   : > { %p107_p3 = scmp.lt.s32.totalorder (!%p88_p2), %s281_s7, 1 }
   0x6   : > { %91 = sbr.rel (%p88_p2) target bundleno = 44 (0x2c), region = 24 }
   0xb   : > { %s422_s7 = smov (!%p107_p3, %s281_s7), 1  ;;  %vm218_vm0 = vcmask 261120  }
   0xc   : > { %s291_s8 = sshll.u32 %s422_s7, 8  ;;  %s292_s12 = smul.u32 56, %s422_s7 }
   0xd   : > { %s333_s11 = scalar_lea.vmem %s419_s0, %s291_s8 }
   0xe   : > { %v117_v0 = vld [vmem:[%s333_s11] sm:$0xff]  ;;  %v118_v1 = vld [vmem:[%s333_s11 + $0x8] sm:$0xff]  ;;  %v119_v11 = vld [vmem:[%s333_s11 + $0x10] sm:$0xff]  ;;  %s388_s15 = scalar_lea.vmem %s420_s1, %s292_s12 }
   0xf   : > { %v124_v2 = vld [vmem:[%s333_s11 + $0x40] sm:$0xff]  ;;  %v339_v3 = vld [vmem:[%s333_s11 + $0x48] sm:$0xff]  ;;  %v126_v14 = vld [vmem:[%s333_s11 + $0x50] sm:$0xff] }
  0x10   : > { %v131_v4 = vmax.f32 %v117_v0, %v124_v2  ;;  %v138_v5 = vld [vmem:[%s333_s11 + $0x1] sm:$0xff]  ;;  %v343_v6 = vld [vmem:[%s333_s11 + $0x9] sm:$0xff]  ;;  %v132_v7 = vmax.f32 %v118_v1, %v339_v3  ;;  %v140_v15 = vld [vmem:[%s333_s11 + $0x11] sm:$0xff]  ;;  %v133_v19 = vmax.f32 %v119_v11, %v126_v14 }
  0x11   : > { %v152_v8 = vld [vmem:[%s333_s11 + $0x80] sm:$0xff]  ;;  %v153_v10 = vld [vmem:[%s333_s11 + $0x88] sm:$0xff]  ;;  %v120_v20 = vld [vmem:[%s333_s11 + $0x18] sm:$0xff] }
  0x12   : > { %v145_v9 = vmax.f32 %v131_v4, %v138_v5  ;;  %v146_v12 = vmax.f32 %v132_v7, %v343_v6  ;;  %v166_v13 = vld [vmem:[%s333_s11 + $0xc0] sm:$0xff]  ;;  %v167_v17 = vld [vmem:[%s333_s11 + $0xc8] sm:$0xff]  ;;  %v154_v22 = vld [vmem:[%s333_s11 + $0x90] sm:$0xff]  ;;  %v147_v26 = vmax.f32 %v133_v19, %v140_v15 }
  0x13   : > { %v180_v18 = vld [vmem:[%s333_s11 + $0x81] sm:$0xff]  ;;  %v358_v23 = vld [vmem:[%s333_s11 + $0x58] sm:$0xff]  ;;  %v168_v27 = vld [vmem:[%s333_s11 + $0xd0] sm:$0xff] }
  0x14   : > { %v159_v16 = vmax.f32 %v145_v9, %v152_v8  ;;  %v160_v21 = vmax.f32 %v146_v12, %v153_v10  ;;  %v361_v24 = vld [vmem:[%s333_s11 + $0x19] sm:$0xff]  ;;  %v181_v28 = vld [vmem:[%s333_s11 + $0x89] sm:$0xff]  ;;  %v134_v29 = vmax.f32 %v120_v20, %v358_v23  ;;  %v142_v34 = vld [vmem:[%s333_s11 + $0x21] sm:$0xff]  ;;  %v161_v36 = vmax.f32 %v147_v26, %v154_v22 }
  0x15   : > { %v121_v30 = vld [vmem:[%s333_s11 + $0x20] sm:$0xff]  ;;  %v155_v32 = vld [vmem:[%s333_s11 + $0x98] sm:$0xff]  ;;  %v122_v40 = vld [vmem:[%s333_s11 + $0x28] sm:$0xff] }
  0x16   : > { %v173_v25 = vmax.f32 %v159_v16, %v166_v13  ;;  %v174_v31 = vmax.f32 %v160_v21, %v167_v17  ;;  %v128_v33 = vld [vmem:[%s333_s11 + $0x60] sm:$0xff]  ;;  %v148_v37 = vmax.f32 %v134_v29, %v361_v24  ;;  %v169_v38 = vld [vmem:[%s333_s11 + $0xd8] sm:$0xff]  ;;  %v129_v44 = vld [vmem:[%s333_s11 + $0x68] sm:$0xff]  ;;  %v175_v46 = vmax.f32 %v161_v36, %v168_v27 }
  0x17   : > { %v135_v39 = vmax.f32 %v121_v30, %v128_v33  ;;  %v182_v42 = vld [vmem:[%s333_s11 + $0x91] sm:$0xff]  ;;  %v156_v43 = vld [vmem:[%s333_s11 + $0xa0] sm:$0xff]  ;;  %v143_v49 = vld [vmem:[%s333_s11 + $0x29] sm:$0xff]  ;;  %v136_v54 = vmax.f32 %v122_v40, %v129_v44 }
  0x18   : > { %v187_v35 = vmax.f32 %v173_v25, %v180_v18  ;;  %v188_v41 = vmax.f32 %v174_v31, %v181_v28  ;;  %v162_v47 = vmax.f32 %v148_v37, %v155_v32  ;;  %v123_v50 = vld [vmem:[%s333_s11 + $0x30] sm:$0xff]  ;;  %v170_v52 = vld [vmem:[%s333_s11 + $0xe0] sm:$0xff]  ;;  %v189_v58 = vmax.f32 %v175_v46, %v182_v42  ;;  %v157_v60 = vld [vmem:[%s333_s11 + $0xa8] sm:$0xff] }
  0x19   : > { %v149_v48 = vmax.f32 %v135_v39, %v142_v34  ;;  %v183_v53 = vld [vmem:[%s333_s11 + $0x99] sm:$0xff]  ;;  %v130_v55 = vld [vmem:[%s333_s11 + $0x70] sm:$0xff]  ;;  %v150_v63 = vmax.f32 %v136_v54, %v143_v49  ;;  %v184_v0 = vld [vmem:[%s333_s11 + $0xa1] sm:$0xff] }
  0x1a   : > { %v195_v45 = vmax.f32 %v187_v35, %v118_v1  ;;  %v196_v51 = vmax.f32 %v188_v41, %v119_v11  ;;  %v176_v57 = vmax.f32 %v162_v47, %v169_v38  ;;  %v144_v61 = vld [vmem:[%s333_s11 + $0x31] sm:$0xff]  ;;  %v137_v1 = vmax.f32 %v123_v50, %v130_v55  ;;  %v171_v7 = vld [vmem:[%s333_s11 + $0xe8] sm:$0xff] }
  0x1b   : > { %v163_v59 = vmax.f32 %v149_v48, %v156_v43  ;;  %v158_v8 = vld [vmem:[%s333_s11 + $0xb0] sm:$0xff]  ;;  %v164_v10 = vmax.f32 %v150_v63, %v157_v60  ;;  %v194_v27 = vld [vmem:[%s333_s11 + $0x38] sm:$0xff] }
  0x1c   : > { %v203_v56 = vmax.f32 %v195_v45, %v339_v3  ;;  %v204_v62 = vmax.f32 %v196_v51, %v126_v14  ;;  %v197_v3 = vmax.f32 %v189_v58, %v120_v20  ;;  %v190_v5 = vmax.f32 %v176_v57, %v183_v53  ;;  %v172_v16 = vld [vmem:[%s333_s11 + $0xf0] sm:$0xff] }
  0x1d   : > { %v177_v4 = vmax.f32 %v163_v59, %v170_v52  ;;  %v151_v11 = vmax.f32 %v137_v1, %v144_v61  ;;  %v185_v17 = vld [vmem:[%s333_s11 + $0xa9] sm:$0xff]  ;;  %v186_v21 = vld [vmem:[%s333_s11 + $0xb1] sm:$0xff] }
  0x1e   : > { %v211_v2 = vmax.f32 %v203_v56, %v343_v6  ;;  %v212_v9 = vmax.f32 %v204_v62, %v140_v15  ;;  %v205_v12 = vmax.f32 %v197_v3, %v358_v23  ;;  %v198_v13 = vmax.f32 %v190_v5, %v121_v30 }
  0x1f   : > { %v191_v14 = vmax.f32 %v177_v4, %v184_v0  ;;  %v178_v6 = vmax.f32 %v164_v10, %v171_v7  ;;  %v165_v18 = vmax.f32 %v151_v11, %v158_v8 }
  0x20   : > { %219 = vst.msk [vmem:[%s388_s15] sm:$0xff] %vm218_vm0, %v211_v2  ;;  %220 = vst.msk [vmem:[%s388_s15 + $0x8] sm:$0xff] %vm218_vm0, %v212_v9  ;;  %v213_v15 = vmax.f32 %v205_v12, %v361_v24  ;;  %v206_v19 = vmax.f32 %v198_v13, %v128_v33  ;;  %v202_v24 = vld [vmem:[%s333_s11 + $0x78] sm:$0xff] }
  0x21   : > { %v199_v20 = vmax.f32 %v191_v14, %v122_v40  ;;  %v179_v22 = vmax.f32 %v165_v18, %v172_v16  ;;  %v192_v23 = vmax.f32 %v178_v6, %v185_v17  ;;  %v210_v33 = vld [vmem:[%s333_s11 + $0x39] sm:$0xff] }
  0x22   : > { %221 = vst.msk [vmem:[%s388_s15 + $0x10] sm:$0xff] %vm218_vm0, %v213_v15  ;;  %v214_v25 = vmax.f32 %v206_v19, %v142_v34 }
  0x23   : > { %v207_v26 = vmax.f32 %v199_v20, %v129_v44  ;;  %v200_v28 = vmax.f32 %v192_v23, %v123_v50  ;;  %v193_v29 = vmax.f32 %v179_v22, %v186_v21 }
  0x24   : > { %222 = vst.msk [vmem:[%s388_s15 + $0x18] sm:$0xff] %vm218_vm0, %v214_v25 }
  0x25   : > { %v215_v30 = vmax.f32 %v207_v26, %v143_v49  ;;  %v208_v31 = vmax.f32 %v200_v28, %v130_v55  ;;  %v201_v32 = vmax.f32 %v193_v29, %v194_v27 }
  0x27   : > { %223 = vst.msk [vmem:[%s388_s15 + $0x20] sm:$0xff] %vm218_vm0, %v215_v30  ;;  %v216_v35 = vmax.f32 %v208_v31, %v144_v61  ;;  %v209_v36 = vmax.f32 %v201_v32, %v202_v24 }
  0x29   : > { %224 = vst.msk [vmem:[%s388_s15 + $0x28] sm:$0xff] %vm218_vm0, %v216_v35  ;;  %v217_v37 = vmax.f32 %v209_v36, %v210_v33 }
  0x2b   : > { %225 = vst.msk [vmem:[%s388_s15 + $0x30] sm:$0xff] %vm218_vm0, %v217_v37 }
  0x2c PF: > { %s11_s6 = sadd.s32 1, %s307_s6  }
  0x2d   : > { %p8_p4 = scmp.ge.s32.totalorder %s11_s6, 4  }
  0x2f   :  { %10 = sbr.rel (!%p8_p4) target bundleno = 1 (0x1), region = 54 }

// kernel: inception_b.8
= control target key start
LH: loop header
LB: loop body
LE: loop exit
PB: predicated region body
PF: predicated region fallthrough
CT: control target
= control target key end

     0   :  { %s2593_s15 = smov 0   ;;  %s2595_s16 = smov 0   ;;  %s3426_s0 = inlined_call_operand.vmem [shape: f32[2,256,96], index: 0, kind: input, shape index: {}]   ;;  %s3427_s1 = inlined_call_operand.vmem [shape: f32[9,96,96], index: 1, kind: input, shape index: {}]   ;;  %s3428_s2 = inlined_call_operand.vmem [shape: f32[1,96], index: 2, kind: input, shape index: {}]   ;;  %s3429_s3 = inlined_call_operand.vmem [shape: f32[1,96], index: 3, kind: input, shape index: {}]   ;;  %s3430_s4 = inlined_call_operand.vmem [shape: f32[2,56,96], index: 4, kind: output, shape index: {}]  }
   0x1   :  { %s2597_s17 = smov 0  }
   0x2 LB: > { %s26_s18 = sadd.s32 1, %s2560_s16  ;;  %p1747_p0 = scmp.ge.s32.totalorder %s2564_s17, 1  ;;  %s2564_s17 = sphi %s2597_s17, %s14_s17   ;;  %s2560_s16 = sphi %s2595_s16, %s3432_s16   ;;  %s2556_s15 = sphi %s2593_s15, %s3431_s15  }
   0x3   : > { %p28_p1 = scmp.ge.s32.totalorder %s26_s18, 2  ;;  %p201_p2 = scmp.lt.s32.totalorder %s2564_s17, 3 }
   0x5   : > { %s3434_s18 = smov (%p28_p1, %s26_s18), 0  ;;  %p202_p3 = pnand %p1747_p0, %p201_p2 }
   0x6   : > { %p240_p4 = scmp.lt.s32.totalorder (!%p202_p3), %s2556_s15, 1 }
   0x7   : > { %205 = sbr.rel (%p202_p3) target bundleno = 404 (0x194), region = 36 }
   0xc   : > { %v1762_v0 = vld [vmem:[%s3427_s1 + $0xb8] sm:$0xff]  ;;  %v2566_v2 = vmov 0.0   ;;  %v1761_v3 = vld [vmem:[%s3427_s1 + $0xb0] sm:$0xff]  ;;  %v1760_v5 = vld [vmem:[%s3427_s1 + $0xa8] sm:$0xff]  ;;  %s3436_s15 = smov (!%p240_p4, %s2556_s15), 1  ;;  %vm302_vm0 = vcmask 785408  }
   0xd   : > { %v281_v1 = vld [vmem:[%s3427_s1 + $0x58] sm:$0xff]  ;;  %2086 = vmatprep.subr.mxu0 %v2566_v2  ;;  %2131 = vmatprep.subr.mxu1 %v2566_v2  ;;  %v280_v4 = vld [vmem:[%s3427_s1 + $0x50] sm:$0xff]  ;;  %v279_v6 = vld [vmem:[%s3427_s1 + $0x48] sm:$0xff]  ;;  %s1914_s11 = sshll.u32 %s3436_s15, 8  ;;  %vm2567_vm1 = vmmov 0   ;;  %s2515_s28 = smul.u32 56, %s3436_s15 }
   0xe   : > { %2087 = vmatpush3.msra.mxu0 %v1762_v0  ;;  %2132 = vmatpush3.msra.mxu1 %v281_v1  ;;  %v1759_v7 = vld [vmem:[%s3427_s1 + $0xa0] sm:$0xff]  ;;  %v1758_v9 = vld [vmem:[%s3427_s1 + $0x98] sm:$0xff]  ;;  %v1757_v11 = vld [vmem:[%s3427_s1 + $0x90] sm:$0xff]  ;;  %s2707_s22 = scalar_lea.vmem %s3426_s0, %s1914_s11 }
   0xf   : > { %2088 = vmatprep.subr.mxu0 %v2566_v2  ;;  %2133 = vmatprep.subr.mxu1 %v2566_v2  ;;  %v278_v8 = vld [vmem:[%s3427_s1 + $0x40] sm:$0xff]  ;;  %v277_v10 = vld [vmem:[%s3427_s1 + $0x38] sm:$0xff]  ;;  %v276_v12 = vld [vmem:[%s3427_s1 + $0x30] sm:$0xff]  ;;  %s3400_s6 = scalar_lea.vmem %s3430_s4, %s2515_s28 }
  0x10   : > { %2089 = vmatpush3.msra.mxu0 %v1761_v3  ;;  %2134 = vmatpush3.msra.mxu1 %v280_v4  ;;  %v1756_v13 = vld [vmem:[%s3427_s1 + $0x88] sm:$0xff]  ;;  %v1755_v15 = vld [vmem:[%s3427_s1 + $0x80] sm:$0xff]  ;;  %v1754_v17 = vld [vmem:[%s3427_s1 + $0x78] sm:$0xff] }
  0x11   : > { %2090 = vmatprep.subr.mxu0 %v2566_v2  ;;  %2135 = vmatprep.subr.mxu1 %v2566_v2  ;;  %v275_v14 = vld [vmem:[%s3427_s1 + $0x28] sm:$0xff]  ;;  %v274_v16 = vld [vmem:[%s3427_s1 + $0x20] sm:$0xff]  ;;  %v273_v18 = vld [vmem:[%s3427_s1 + $0x18] sm:$0xff] }
  0x12   : > { %2091 = vmatpush3.msra.mxu0 %v1760_v5  ;;  %2136 = vmatpush3.msra.mxu1 %v279_v6  ;;  %v1753_v19 = vld [vmem:[%s3427_s1 + $0x70] sm:$0xff]  ;;  %v1752_v21 = vld [vmem:[%s3427_s1 + $0x68] sm:$0xff]  ;;  %v1751_v23 = vld [vmem:[%s3427_s1 + $0x60] sm:$0xff] }
  0x13   : > { %2092 = vmatprep.subr.mxu0 %v2566_v2  ;;  %2137 = vmatprep.subr.mxu1 %v2566_v2  ;;  %v272_v20 = vld [vmem:[%s3427_s1 + $0x10] sm:$0xff]  ;;  %v271_v22 = vld [vmem:[%s3427_s1 + $0x8] sm:$0xff]  ;;  %v270_v24 = vld [vmem:[%s3427_s1] sm:$0xff] }
  0x14   : > { %2093 = vmatpush3.msra.mxu0 %v1759_v7  ;;  %2138 = vmatpush3.msra.mxu1 %v278_v8  ;;  %v282_v25 = vld [vmem:[%s2707_s22 + $0x40] sm:$0xff]  ;;  %v1788_v27 = vld [vmem:[%s3427_s1 + $0x118] sm:$0xff]  ;;  %v2734_v28 = vld [vmem:[%s2707_s22 + $0x48] sm:$0xff] }
  0x15   : > { %2094 = vmatprep.subr.mxu0 %v2566_v2  ;;  %2139 = vmatprep.subr.mxu1 %v2566_v2  ;;  %v263_v26 = vld [vmem:[%s2707_s22] sm:$0xff]  ;;  %v2737_v29 = vld [vmem:[%s2707_s22 + $0x8] sm:$0xff]  ;;  %v1787_v30 = vld [vmem:[%s3427_s1 + $0x110] sm:$0xff] }
  0x16   : > { %2095 = vmatpush3.msra.mxu0 %v1758_v9  ;;  %2140 = vmatpush3.msra.mxu1 %v277_v10  ;;  %v1807_v31 = vld [vmem:[%s3427_s1 + $0x178] sm:$0xff]  ;;  %v1786_v32 = vld [vmem:[%s3427_s1 + $0x108] sm:$0xff]  ;;  %v1806_v33 = vld [vmem:[%s3427_s1 + $0x170] sm:$0xff] }
  0x17   : > { %2096 = vmatprep.subr.mxu0 %v2566_v2  ;;  %2141 = vmatprep.subr.mxu1 %v2566_v2  ;;  %v2762_v34 = vld [vmem:[%s2707_s22 + $0x50] sm:$0xff]  ;;  %v1785_v36 = vld [vmem:[%s3427_s1 + $0x100] sm:$0xff]  ;;  %v1805_v37 = vld [vmem:[%s3427_s1 + $0x168] sm:$0xff] }
  0x18   : > { %2097 = vmatpush3.msra.mxu0 %v1757_v11  ;;  %2142 = vmatpush3.msra.mxu1 %v276_v12  ;;  %v2767_v35 = vld [vmem:[%s2707_s22 + $0x10] sm:$0xff]  ;;  %v1784_v38 = vld [vmem:[%s3427_s1 + $0xf8] sm:$0xff]  ;;  %v1804_v39 = vld [vmem:[%s3427_s1 + $0x160] sm:$0xff] }
  0x19   : > { %2098 = vmatprep.subr.mxu0 %v2566_v2  ;;  %2143 = vmatprep.subr.mxu1 %v2566_v2  ;;  %v2793_v40 = vld [vmem:[%s2707_s22 + $0x58] sm:$0xff]  ;;  %v1783_v42 = vld [vmem:[%s3427_s1 + $0xf0] sm:$0xff]  ;;  %v1782_v44 = vld [vmem:[%s3427_s1 + $0xe8] sm:$0xff] }
  0x1a   : > { %2099 = vmatpush3.msra.mxu0 %v1756_v13  ;;  %2144 = vmatpush3.msra.mxu1 %v275_v14  ;;  %v2796_v41 = vld [vmem:[%s2707_s22 + $0x18] sm:$0xff]  ;;  %v1802_v45 = vld [vmem:[%s3427_s1 + $0x150] sm:$0xff]  ;;  %v2822_v46 = vld [vmem:[%s2707_s22 + $0x60] sm:$0xff] }
  0x1b   : > { %2100 = vmatprep.subr.mxu0 %v2566_v2  ;;  %2145 = vmatprep.subr.mxu1 %v2566_v2  ;;  %v1803_v43 = vld [vmem:[%s3427_s1 + $0x158] sm:$0xff]  ;;  %v2825_v47 = vld [vmem:[%s2707_s22 + $0x20] sm:$0xff]  ;;  %v1801_v48 = vld [vmem:[%s3427_s1 + $0x148] sm:$0xff] }
  0x1c   : > { %2101 = vmatpush3.msra.mxu0 %v1755_v15  ;;  %2146 = vmatpush3.msra.mxu1 %v274_v16  ;;  %v1781_v49 = vld [vmem:[%s3427_s1 + $0xe0] sm:$0xff]  ;;  %v2847_v51 = vld [vmem:[%s2707_s22 + $0x68] sm:$0xff]  ;;  %v1780_v53 = vld [vmem:[%s3427_s1 + $0xd8] sm:$0xff] }
  0x1d   : > { %2102 = vmatprep.subr.mxu0 %v2566_v2  ;;  %2147 = vmatprep.subr.mxu1 %v2566_v2  ;;  %v1800_v50 = vld [vmem:[%s3427_s1 + $0x140] sm:$0xff]  ;;  %v2853_v52 = vld [vmem:[%s2707_s22 + $0x28] sm:$0xff]  ;;  %v1799_v54 = vld [vmem:[%s3427_s1 + $0x138] sm:$0xff] }
  0x1e   : > { %2103 = vmatpush3.msra.mxu0 %v1754_v17  ;;  %2148 = vmatpush3.msra.mxu1 %v273_v18  ;;  %v1779_v55 = vld [vmem:[%s3427_s1 + $0xd0] sm:$0xff]  ;;  %v1778_v59 = vld [vmem:[%s3427_s1 + $0xc8] sm:$0xff]  ;;  %v1777_v61 = vld [vmem:[%s3427_s1 + $0xc0] sm:$0xff] }
  0x1f   : > { %2104 = vmatprep.subr.mxu0 %v2566_v2  ;;  %2149 = vmatprep.subr.mxu1 %v2566_v2  ;;  %v1798_v56 = vld [vmem:[%s3427_s1 + $0x130] sm:$0xff]  ;;  %v1797_v60 = vld [vmem:[%s3427_s1 + $0x128] sm:$0xff]  ;;  %v1796_v62 = vld [vmem:[%s3427_s1 + $0x120] sm:$0xff] }
  0x20   : > { %2105 = vmatpush3.msra.mxu0 %v1753_v19  ;;  %2150 = vmatpush3.msra.mxu1 %v272_v20  ;;  %v2877_v57 = vld [vmem:[%s2707_s22 + $0x70] sm:$0xff]  ;;  %v545_v63 = vld [vmem:[%s2707_s22 + $0x1] sm:$0xff]  ;;  %v1826_v1 = vld [vmem:[%s3427_s1 + $0x1d8] sm:$0xff] }
  0x21   : > { %2106 = vmatprep.subr.mxu0 %v2566_v2  ;;  %2151 = vmatprep.subr.mxu1 %v2566_v2  ;;  %v2880_v58 = vld [vmem:[%s2707_s22 + $0x30] sm:$0xff]  ;;  %v693_v0 = vld [vmem:[%s2707_s22 + $0x80] sm:$0xff]  ;;  %v694_v4 = vld [vmem:[%s2707_s22 + $0x88] sm:$0xff] }
  0x22   : > { %2107 = vmatpush3.msra.mxu0 %v1752_v21  ;;  %2152 = vmatpush3.msra.mxu1 %v271_v22  ;;  %v2922_v3 = vld [vmem:[%s2707_s22 + $0x9] sm:$0xff]  ;;  %v1845_v6 = vld [vmem:[%s3427_s1 + $0x238] sm:$0xff]  ;;  %v1823_v11 = vld [vmem:[%s3427_s1 + $0x1c0] sm:$0xff] }
  0x23   : > { %2108 = vmatprep.subr.mxu0 %v2566_v2  ;;  %2153 = vmatprep.subr.mxu1 %v2566_v2  ;;  %v1825_v5 = vld [vmem:[%s3427_s1 + $0x1d0] sm:$0xff]  ;;  %v1824_v7 = vld [vmem:[%s3427_s1 + $0x1c8] sm:$0xff]  ;;  %v1822_v13 = vld [vmem:[%s3427_s1 + $0x1b8] sm:$0xff] }
  0x24   : > { %2109 = vmatpush3.msra.mxu0 %v1751_v23  ;;  %2110 = vmatprep.mubr.msk.f32.mxu0 %vm2567_vm1, %v2566_v2  ;;  %v1844_v8 = vld [vmem:[%s3427_s1 + $0x230] sm:$0xff]  ;;  %v1843_v12 = vld [vmem:[%s3427_s1 + $0x228] sm:$0xff]  ;;  %v1842_v14 = vld [vmem:[%s3427_s1 + $0x220] sm:$0xff] }
  0x25   : > { %2154 = vmatpush3.msra.mxu1 %v270_v24  ;;  %2155 = vmatprep.mubr.msk.f32.mxu1 %vm2567_vm1, %v2566_v2  ;;  %v2947_v9 = vld [vmem:[%s2707_s22 + $0x11] sm:$0xff]  ;;  %v2975_v15 = vld [vmem:[%s2707_s22 + $0x19] sm:$0xff]  ;;  %v1820_v19 = vld [vmem:[%s3427_s1 + $0x1a8] sm:$0xff] }
  0x26   : > { %2111 = vmatmul.mubr.msk.f32.vlgmr.msra.gmra.mxu0 %vm302_vm0, %v282_v25  ;;  %2156 = vmatmul.mubr.msk.f32.vlgmr.msra.gmra.mxu1 %vm302_vm0, %v263_v26  ;;  %v695_v10 = vld [vmem:[%s2707_s22 + $0x90] sm:$0xff]  ;;  %v696_v16 = vld [vmem:[%s2707_s22 + $0x98] sm:$0xff]  ;;  %v3001_v21 = vld [vmem:[%s2707_s22 + $0x21] sm:$0xff] }
  0x27   : > { %2176 = vmatprep.subr.mxu0 %v2566_v2  ;;  %2113 = vmatprep.mubr.msk.f32.mxu0 %vm2567_vm1, %v2566_v2  ;;  %v1821_v17 = vld [vmem:[%s3427_s1 + $0x1b0] sm:$0xff]  ;;  %v1841_v18 = vld [vmem:[%s3427_s1 + $0x218] sm:$0xff]  ;;  %v697_v22 = vld [vmem:[%s2707_s22 + $0xa0] sm:$0xff] }
  0x28   : > { %2177 = vmatpush3.msra.mxu0 %v1788_v27  ;;  %2158 = vmatprep.mubr.msk.f32.mxu1 %vm2567_vm1, %v2566_v2  ;;  %v1840_v20 = vld [vmem:[%s3427_s1 + $0x210] sm:$0xff]  ;;  %v1839_v23 = vld [vmem:[%s3427_s1 + $0x208] sm:$0xff]  ;;  %v1819_v24 = vld [vmem:[%s3427_s1 + $0x1a0] sm:$0xff] }
  0x29   : > { %2178 = vmatprep.subr.mxu0 %v2566_v2  ;;  %2221 = vmatprep.subr.mxu1 %v2566_v2  ;;  %v1838_v25 = vld [vmem:[%s3427_s1 + $0x200] sm:$0xff]  ;;  %v3023_v26 = vld [vmem:[%s2707_s22 + $0x29] sm:$0xff] }
  0x2a   : > { %2114 = vmatmul.mubr.msk.f32.gmra.mxu0 %vm302_vm0, %v2734_v28  ;;  %2159 = vmatmul.mubr.msk.f32.gmra.mxu1 %vm302_vm0, %v2737_v29  ;;  %v698_v27 = vld [vmem:[%s2707_s22 + $0xa8] sm:$0xff] }
  0x2b   : > { %2179 = vmatpush3.msra.mxu0 %v1787_v30  ;;  %2222 = vmatpush3.msra.mxu1 %v1807_v31  ;;  %v1818_v30 = vld [vmem:[%s3427_s1 + $0x198] sm:$0xff] }
  0x2c   : > { %2180 = vmatprep.subr.mxu0 %v2566_v2  ;;  %2223 = vmatprep.subr.mxu1 %v2566_v2  ;;  %v1837_v31 = vld [vmem:[%s3427_s1 + $0x1f8] sm:$0xff] }
  0x2d   : > { %2181 = vmatpush3.msra.mxu0 %v1786_v32  ;;  %2116 = vmatprep.mubr.msk.f32.mxu0 %vm2567_vm1, %v2566_v2  ;;  %v1817_v32 = vld [vmem:[%s3427_s1 + $0x190] sm:$0xff] }
  0x2e   : > { %2161 = vmatprep.mubr.msk.f32.mxu1 %vm2567_vm1, %v2566_v2  ;;  %2182 = vmatprep.subr.mxu0 %v2566_v2 }
  0x2f   : > { %2224 = vmatpush3.msra.mxu1 %v1806_v33  ;;  %2117 = vmatmul.mubr.msk.f32.gmra.mxu0 %vm302_vm0, %v2762_v34  ;;  %v1836_v33 = vld [vmem:[%s3427_s1 + $0x1f0] sm:$0xff] }
  0x30   : > { %2162 = vmatmul.mubr.msk.f32.gmra.mxu1 %vm302_vm0, %v2767_v35  ;;  %2183 = vmatpush3.msra.mxu0 %v1785_v36  ;;  %v3050_v36 = vld [vmem:[%s2707_s22 + $0x31] sm:$0xff] }
  0x31   : > { %2225 = vmatprep.subr.mxu1 %v2566_v2  ;;  %2184 = vmatprep.subr.mxu0 %v2566_v2 }
  0x32   : > { %2226 = vmatpush3.msra.mxu1 %v1805_v37  ;;  %2119 = vmatprep.mubr.msk.f32.mxu0 %vm2567_vm1, %v2566_v2  ;;  %v699_v37 = vld [vmem:[%s2707_s22 + $0xb0] sm:$0xff] }
  0x33   : > { %2227 = vmatprep.subr.mxu1 %v2566_v2  ;;  %2164 = vmatprep.mubr.msk.f32.mxu1 %vm2567_vm1, %v2566_v2 }
  0x34   : > { %2185 = vmatpush3.msra.mxu0 %v1784_v38  ;;  %2228 = vmatpush3.msra.mxu1 %v1804_v39  ;;  %v1816_v38 = vld [vmem:[%s3427_s1 + $0x188] sm:$0xff] }
  0x35   : > { %2120 = vmatmul.mubr.msk.f32.gmra.mxu0 %vm302_vm0, %v2793_v40  ;;  %2165 = vmatmul.mubr.msk.f32.gmra.mxu1 %vm302_vm0, %v2796_v41  ;;  %v1835_v39 = vld [vmem:[%s3427_s1 + $0x1e8] sm:$0xff] }
  0x36   : > { %2186 = vmatprep.subr.mxu0 %v2566_v2  ;;  %2229 = vmatprep.subr.mxu1 %v2566_v2 }
  0x37   : > { %2187 = vmatpush3.msra.mxu0 %v1783_v42  ;;  %2230 = vmatpush3.msra.mxu1 %v1803_v43  ;;  %v1815_v42 = vld [vmem:[%s3427_s1 + $0x180] sm:$0xff] }
  0x38   : > { %2188 = vmatprep.subr.mxu0 %v2566_v2  ;;  %2231 = vmatprep.subr.mxu1 %v2566_v2  ;;  %v1834_v43 = vld [vmem:[%s3427_s1 + $0x1e0] sm:$0xff] }
  0x39   : > { %2122 = vmatprep.mubr.msk.f32.mxu0 %vm2567_vm1, %v2566_v2  ;;  %2167 = vmatprep.mubr.msk.f32.mxu1 %vm2567_vm1, %v2566_v2 }
  0x3a   : > { %2189 = vmatpush3.msra.mxu0 %v1782_v44  ;;  %2232 = vmatpush3.msra.mxu1 %v1802_v45  ;;  %v841_v44 = vld [vmem:[%s2707_s22 + $0xc0] sm:$0xff] }
  0x3b   : > { %2123 = vmatmul.mubr.msk.f32.gmra.mxu0 %vm302_vm0, %v2822_v46  ;;  %2168 = vmatmul.mubr.msk.f32.gmra.mxu1 %vm302_vm0, %v2825_v47  ;;  %v989_v45 = vld [vmem:[%s2707_s22 + $0x81] sm:$0xff] }
  0x3c   : > { %2233 = vmatprep.subr.mxu1 %v2566_v2  ;;  %2190 = vmatprep.subr.mxu0 %v2566_v2 }
  0x3d   : > { %2234 = vmatpush3.msra.mxu1 %v1801_v48  ;;  %2191 = vmatpush3.msra.mxu0 %v1781_v49  ;;  %v1864_v48 = vld [vmem:[%s3427_s1 + $0x298] sm:$0xff]  ;;  %v842_v49 = vld [vmem:[%s2707_s22 + $0xc8] sm:$0xff] }
  0x3e   : > { %2235 = vmatprep.subr.mxu1 %v2566_v2  ;;  %2125 = vmatprep.mubr.msk.f32.mxu0 %vm2567_vm1, %v2566_v2 }
  0x3f   : > { %2170 = vmatprep.mubr.msk.f32.mxu1 %vm2567_vm1, %v2566_v2  ;;  %2192 = vmatprep.subr.mxu0 %v2566_v2 }
  0x40   : > { %2236 = vmatpush3.msra.mxu1 %v1800_v50  ;;  %2126 = vmatmul.mubr.msk.f32.gmra.mxu0 %vm302_vm0, %v2847_v51  ;;  %v990_v50 = vld [vmem:[%s2707_s22 + $0x89] sm:$0xff] }
  0x41   : > { %2171 = vmatmul.mubr.msk.f32.gmra.mxu1 %vm302_vm0, %v2853_v52  ;;  %2193 = vmatpush3.msra.mxu0 %v1780_v53  ;;  %v1863_v53 = vld [vmem:[%s3427_s1 + $0x290] sm:$0xff] }
  0x42   : > { %2237 = vmatprep.subr.mxu1 %v2566_v2  ;;  %2194 = vmatprep.subr.mxu0 %v2566_v2 }
  0x43   : > { %2238 = vmatpush3.msra.mxu1 %v1799_v54  ;;  %2195 = vmatpush3.msra.mxu0 %v1779_v55  ;;  %v1883_v54 = vld [vmem:[%s3427_s1 + $0x2f8] sm:$0xff]  ;;  %v1862_v55 = vld [vmem:[%s3427_s1 + $0x288] sm:$0xff] }
  0x44   : > { %2239 = vmatprep.subr.mxu1 %v2566_v2  ;;  %2128 = vmatprep.mubr.msk.f32.mxu0 %vm2567_vm1, %v2566_v2 }
  0x45   : > { %2173 = vmatprep.mubr.msk.f32.mxu1 %vm2567_vm1, %v2566_v2  ;;  %2240 = vmatpush3.msra.mxu1 %v1798_v56  ;;  %v1882_v56 = vld [vmem:[%s3427_s1 + $0x2f0] sm:$0xff] }
  0x46   : > { %2129 = vmatmul.mubr.msk.f32.gmra.mxu0 %vm302_vm0, %v2877_v57  ;;  %2174 = vmatmul.mubr.msk.f32.gmra.mxu1 %vm302_vm0, %v2880_v58 }
  0x47   : > { %2196 = vmatprep.subr.mxu0 %v2566_v2  ;;  %2241 = vmatprep.subr.mxu1 %v2566_v2 }
  0x48   : > { %2197 = vmatpush3.msra.mxu0 %v1778_v59  ;;  %2242 = vmatpush3.msra.mxu1 %v1797_v60  ;;  %v843_v59 = vld [vmem:[%s2707_s22 + $0xd0] sm:$0xff] }
  0x49   : > { %2198 = vmatprep.subr.mxu0 %v2566_v2  ;;  %2243 = vmatprep.subr.mxu1 %v2566_v2  ;;  %v991_v60 = vld [vmem:[%s2707_s22 + $0x91] sm:$0xff] }
  0x4a   : > { %2199 = vmatpush3.msra.mxu0 %v1777_v61  ;;  %2200 = vmatprep.mubr.msk.f32.mxu0 %vm2567_vm1, %v2566_v2  ;;  %v1861_v61 = vld [vmem:[%s3427_s1 + $0x280] sm:$0xff] }
  0x4b   : > { %2244 = vmatpush3.msra.mxu1 %v1796_v62  ;;  %2245 = vmatprep.mubr.msk.f32.mxu1 %vm2567_vm1, %v2566_v2  ;;  %v1881_v62 = vld [vmem:[%s3427_s1 + $0x2e8] sm:$0xff] }
  0x4c   : > { %2201 = vmatmul.mubr.msk.f32.vlgmr.msra.gmra.mxu0 %vm302_vm0, %v545_v63  ;;  %2246 = vmatmul.mubr.msk.f32.vlgmr.msra.gmra.mxu1 %vm302_vm0, %v693_v0  ;;  %v1860_v63 = vld [vmem:[%s3427_s1 + $0x278] sm:$0xff]  ;;  %v1880_v0 = vld [vmem:[%s3427_s1 + $0x2e0] sm:$0xff] }
  0x4d   : > { %2266 = vmatprep.subr.mxu0 %v2566_v2  ;;  %2203 = vmatprep.mubr.msk.f32.mxu0 %vm2567_vm1, %v2566_v2 }
  0x4e   : > { %2267 = vmatpush3.msra.mxu0 %v1826_v1  ;;  %2248 = vmatprep.mubr.msk.f32.mxu1 %vm2567_vm1, %v2566_v2  ;;  %v844_v1 = vld [vmem:[%s2707_s22 + $0xd8] sm:$0xff] }
  0x4f   : > { %2268 = vmatprep.subr.mxu0 %v2566_v2  ;;  %2311 = vmatprep.subr.mxu1 %v2566_v2 }
  0x50   : > { %2204 = vmatmul.mubr.msk.f32.gmra.mxu0 %vm302_vm0, %v2922_v3  ;;  %2249 = vmatmul.mubr.msk.f32.gmra.mxu1 %vm302_vm0, %v694_v4  ;;  %v992_v4 = vld [vmem:[%s2707_s22 + $0x99] sm:$0xff] }
  0x51   : > { %2269 = vmatpush3.msra.mxu0 %v1825_v5  ;;  %2312 = vmatpush3.msra.mxu1 %v1845_v6  ;;  %v1859_v5 = vld [vmem:[%s3427_s1 + $0x270] sm:$0xff]  ;;  %v1879_v6 = vld [vmem:[%s3427_s1 + $0x2d8] sm:$0xff] }
  0x52   : > { %2270 = vmatprep.subr.mxu0 %v2566_v2  ;;  %2313 = vmatprep.subr.mxu1 %v2566_v2 }
  0x53   : > { %2271 = vmatpush3.msra.mxu0 %v1824_v7  ;;  %2206 = vmatprep.mubr.msk.f32.mxu0 %vm2567_vm1, %v2566_v2  ;;  %v1858_v7 = vld [vmem:[%s3427_s1 + $0x268] sm:$0xff] }
  0x54   : > { %2251 = vmatprep.mubr.msk.f32.mxu1 %vm2567_vm1, %v2566_v2  ;;  %2272 = vmatprep.subr.mxu0 %v2566_v2 }
  0x55   : > { %2314 = vmatpush3.msra.mxu1 %v1844_v8  ;;  %2207 = vmatmul.mubr.msk.f32.gmra.mxu0 %vm302_vm0, %v2947_v9  ;;  %v1878_v8 = vld [vmem:[%s3427_s1 + $0x2d0] sm:$0xff] }
  0x56   : > { %2252 = vmatmul.mubr.msk.f32.gmra.mxu1 %vm302_vm0, %v695_v10  ;;  %2273 = vmatpush3.msra.mxu0 %v1823_v11  ;;  %v845_v10 = vld [vmem:[%s2707_s22 + $0xe0] sm:$0xff] }
  0x57   : > { %2315 = vmatprep.subr.mxu1 %v2566_v2  ;;  %2274 = vmatprep.subr.mxu0 %v2566_v2  ;;  %v993_v11 = vld [vmem:[%s2707_s22 + $0xa1] sm:$0xff] }
  0x58   : > { %2316 = vmatpush3.msra.mxu1 %v1843_v12  ;;  %2209 = vmatprep.mubr.msk.f32.mxu0 %vm2567_vm1, %v2566_v2  ;;  %v1877_v12 = vld [vmem:[%s3427_s1 + $0x2c8] sm:$0xff] }
  0x59   : > { %2317 = vmatprep.subr.mxu1 %v2566_v2  ;;  %2254 = vmatprep.mubr.msk.f32.mxu1 %vm2567_vm1, %v2566_v2 }
  0x5a   : > { %2275 = vmatpush3.msra.mxu0 %v1822_v13  ;;  %2318 = vmatpush3.msra.mxu1 %v1842_v14  ;;  %v1857_v13 = vld [vmem:[%s3427_s1 + $0x260] sm:$0xff] }
  0x5b   : > { %2210 = vmatmul.mubr.msk.f32.gmra.mxu0 %vm302_vm0, %v2975_v15  ;;  %2255 = vmatmul.mubr.msk.f32.gmra.mxu1 %vm302_vm0, %v696_v16  ;;  %v1876_v14 = vld [vmem:[%s3427_s1 + $0x2c0] sm:$0xff]  ;;  %v846_v16 = vld [vmem:[%s2707_s22 + $0xe8] sm:$0xff] }
  0x5c   : > { %2276 = vmatprep.subr.mxu0 %v2566_v2  ;;  %2319 = vmatprep.subr.mxu1 %v2566_v2 }
  0x5d   : > { %2277 = vmatpush3.msra.mxu0 %v1821_v17  ;;  %2320 = vmatpush3.msra.mxu1 %v1841_v18  ;;  %v994_v17 = vld [vmem:[%s2707_s22 + $0xa9] sm:$0xff]  ;;  %v1856_v18 = vld [vmem:[%s3427_s1 + $0x258] sm:$0xff] }
  0x5e   : > { %2278 = vmatprep.subr.mxu0 %v2566_v2  ;;  %2321 = vmatprep.subr.mxu1 %v2566_v2 }
  0x5f   : > { %2212 = vmatprep.mubr.msk.f32.mxu0 %vm2567_vm1, %v2566_v2  ;;  %2257 = vmatprep.mubr.msk.f32.mxu1 %vm2567_vm1, %v2566_v2 }
  0x60   : > { %2279 = vmatpush3.msra.mxu0 %v1820_v19  ;;  %2322 = vmatpush3.msra.mxu1 %v1840_v20  ;;  %v1875_v19 = vld [vmem:[%s3427_s1 + $0x2b8] sm:$0xff]  ;;  %v1855_v20 = vld [vmem:[%s3427_s1 + $0x250] sm:$0xff] }
  0x61   : > { %2213 = vmatmul.mubr.msk.f32.gmra.mxu0 %vm302_vm0, %v3001_v21  ;;  %2258 = vmatmul.mubr.msk.f32.gmra.mxu1 %vm302_vm0, %v697_v22  ;;  %v1874_v22 = vld [vmem:[%s3427_s1 + $0x2b0] sm:$0xff] }
  0x62   : > { %2323 = vmatprep.subr.mxu1 %v2566_v2  ;;  %2280 = vmatprep.subr.mxu0 %v2566_v2 }
  0x63   : > { %2324 = vmatpush3.msra.mxu1 %v1839_v23  ;;  %2281 = vmatpush3.msra.mxu0 %v1819_v24  ;;  %v847_v23 = vld [vmem:[%s2707_s22 + $0xf0] sm:$0xff] }
  0x64   : > { %2325 = vmatprep.subr.mxu1 %v2566_v2  ;;  %2215 = vmatprep.mubr.msk.f32.mxu0 %vm2567_vm1, %v2566_v2  ;;  %v995_v24 = vld [vmem:[%s2707_s22 + $0xb1] sm:$0xff] }
  0x65   : > { %2260 = vmatprep.mubr.msk.f32.mxu1 %vm2567_vm1, %v2566_v2  ;;  %2282 = vmatprep.subr.mxu0 %v2566_v2 }
  0x66   : > { %2326 = vmatpush3.msra.mxu1 %v1838_v25  ;;  %2216 = vmatmul.mubr.msk.f32.gmra.mxu0 %vm302_vm0, %v3023_v26  ;;  %v1854_v25 = vld [vmem:[%s3427_s1 + $0x248] sm:$0xff] }
  0x67   : > { %2261 = vmatmul.mubr.msk.f32.gmra.mxu1 %vm302_vm0, %v698_v27  ;;  %2283 = vmatpush3.msra.mxu0 %v1818_v30  ;;  %v1873_v27 = vld [vmem:[%s3427_s1 + $0x2a8] sm:$0xff]  ;;  %v1853_v30 = vld [vmem:[%s3427_s1 + $0x240] sm:$0xff] }
  0x68   : > { %2327 = vmatprep.subr.mxu1 %v2566_v2  ;;  %2284 = vmatprep.subr.mxu0 %v2566_v2 }
  0x69   : > { %2328 = vmatpush3.msra.mxu1 %v1837_v31  ;;  %2285 = vmatpush3.msra.mxu0 %v1817_v32  ;;  %v1872_v31 = vld [vmem:[%s3427_s1 + $0x2a0] sm:$0xff]  ;;  %v1902_v32 = vld [vmem:[%s3427_s1 + $0x358] sm:$0xff] }
  0x6a   : > { %2329 = vmatprep.subr.mxu1 %v2566_v2  ;;  %2218 = vmatprep.mubr.msk.f32.mxu0 %vm2567_vm1, %v2566_v2 }
  0x6b   : > { %2263 = vmatprep.mubr.msk.f32.mxu1 %vm2567_vm1, %v2566_v2  ;;  %2330 = vmatpush3.msra.mxu1 %v1836_v33  ;;  %v1901_v33 = vld [vmem:[%s3427_s1 + $0x350] sm:$0xff] }
  0x6c   : > { %2219 = vmatmul.mubr.msk.f32.gmra.mxu0 %vm302_vm0, %v3050_v36  ;;  %2264 = vmatmul.mubr.msk.f32.gmra.mxu1 %vm302_vm0, %v699_v37 }
  0x6d   : > { %2286 = vmatprep.subr.mxu0 %v2566_v2  ;;  %2331 = vmatprep.subr.mxu1 %v2566_v2 }
  0x6e   : > { %2287 = vmatpush3.msra.mxu0 %v1816_v38  ;;  %2332 = vmatpush3.msra.mxu1 %v1835_v39 }
  0x6f   : > { %2288 = vmatprep.subr.mxu0 %v2566_v2  ;;  %2333 = vmatprep.subr.mxu1 %v2566_v2 }
  0x70   : > { %2289 = vmatpush3.msra.mxu0 %v1815_v42  ;;  %2290 = vmatprep.mubr.msk.f32.mxu0 %vm2567_vm1, %v2566_v2 }
  0x71   : > { %2334 = vmatpush3.msra.mxu1 %v1834_v43  ;;  %2335 = vmatprep.mubr.msk.f32.mxu1 %vm2567_vm1, %v2566_v2 }
  0x72   : > { %2291 = vmatmul.mubr.msk.f32.vlgmr.msra.gmra.mxu0 %vm302_vm0, %v841_v44  ;;  %2336 = vmatmul.mubr.msk.f32.vlgmr.msra.gmra.mxu1 %vm302_vm0, %v989_v45 }
  0x73   : > { %2356 = vmatprep.subr.mxu0 %v2566_v2  ;;  %2293 = vmatprep.mubr.msk.f32.mxu0 %vm2567_vm1, %v2566_v2 }
  0x74   : > { %2357 = vmatpush3.msra.mxu0 %v1864_v48  ;;  %2338 = vmatprep.mubr.msk.f32.mxu1 %vm2567_vm1, %v2566_v2 }
  0x75   : > { %2358 = vmatprep.subr.mxu0 %v2566_v2  ;;  %2401 = vmatprep.subr.mxu1 %v2566_v2 }
  0x76   : > { %2294 = vmatmul.mubr.msk.f32.gmra.mxu0 %vm302_vm0, %v842_v49  ;;  %2339 = vmatmul.mubr.msk.f32.gmra.mxu1 %vm302_vm0, %v990_v50 }
  0x77   : > { %2359 = vmatpush3.msra.mxu0 %v1863_v53  ;;  %2402 = vmatpush3.msra.mxu1 %v1883_v54 }
  0x78   : > { %2360 = vmatprep.subr.mxu0 %v2566_v2  ;;  %2403 = vmatprep.subr.mxu1 %v2566_v2 }
  0x79   : > { %2361 = vmatpush3.msra.mxu0 %v1862_v55  ;;  %2296 = vmatprep.mubr.msk.f32.mxu0 %vm2567_vm1, %v2566_v2 }
  0x7a   : > { %2341 = vmatprep.mubr.msk.f32.mxu1 %vm2567_vm1, %v2566_v2  ;;  %2362 = vmatprep.subr.mxu0 %v2566_v2 }
  0x7b   : > { %2404 = vmatpush3.msra.mxu1 %v1882_v56  ;;  %2297 = vmatmul.mubr.msk.f32.gmra.mxu0 %vm302_vm0, %v843_v59 }
  0x7c   : > { %2342 = vmatmul.mubr.msk.f32.gmra.mxu1 %vm302_vm0, %v991_v60  ;;  %2363 = vmatpush3.msra.mxu0 %v1861_v61 }
  0x7d   : > { %2405 = vmatprep.subr.mxu1 %v2566_v2  ;;  %2364 = vmatprep.subr.mxu0 %v2566_v2 }
  0x7e   : > { %2406 = vmatpush3.msra.mxu1 %v1881_v62  ;;  %2299 = vmatprep.mubr.msk.f32.mxu0 %vm2567_vm1, %v2566_v2 }
  0x7f   : > { %2407 = vmatprep.subr.mxu1 %v2566_v2  ;;  %2344 = vmatprep.mubr.msk.f32.mxu1 %vm2567_vm1, %v2566_v2 }
  0x80   : > { %2365 = vmatpush3.msra.mxu0 %v1860_v63  ;;  %2408 = vmatpush3.msra.mxu1 %v1880_v0 }
  0x81   : > { %2300 = vmatmul.mubr.msk.f32.gmra.mxu0 %vm302_vm0, %v844_v1  ;;  %2345 = vmatmul.mubr.msk.f32.gmra.mxu1 %vm302_vm0, %v992_v4 }
  0x82   : > { %2366 = vmatprep.subr.mxu0 %v2566_v2  ;;  %2409 = vmatprep.subr.mxu1 %v2566_v2 }
  0x83   : > { %2367 = vmatpush3.msra.mxu0 %v1859_v5  ;;  %2410 = vmatpush3.msra.mxu1 %v1879_v6 }
  0x84   : > { %2368 = vmatprep.subr.mxu0 %v2566_v2  ;;  %2411 = vmatprep.subr.mxu1 %v2566_v2 }
  0x85   : > { %2302 = vmatprep.mubr.msk.f32.mxu0 %vm2567_vm1, %v2566_v2  ;;  %2347 = vmatprep.mubr.msk.f32.mxu1 %vm2567_vm1, %v2566_v2 }
  0x86   : > { %2369 = vmatpush3.msra.mxu0 %v1858_v7  ;;  %2412 = vmatpush3.msra.mxu1 %v1878_v8 }
  0x87   : > { %2303 = vmatmul.mubr.msk.f32.gmra.mxu0 %vm302_vm0, %v845_v10  ;;  %2348 = vmatmul.mubr.msk.f32.gmra.mxu1 %vm302_vm0, %v993_v11 }
  0x88   : > { %2413 = vmatprep.subr.mxu1 %v2566_v2  ;;  %2370 = vmatprep.subr.mxu0 %v2566_v2 }
  0x89   : > { %2414 = vmatpush3.msra.mxu1 %v1877_v12  ;;  %2371 = vmatpush3.msra.mxu0 %v1857_v13 }
  0x8a   : > { %2415 = vmatprep.subr.mxu1 %v2566_v2  ;;  %2305 = vmatprep.mubr.msk.f32.mxu0 %vm2567_vm1, %v2566_v2 }
  0x8b   : > { %2350 = vmatprep.mubr.msk.f32.mxu1 %vm2567_vm1, %v2566_v2  ;;  %2372 = vmatprep.subr.mxu0 %v2566_v2 }
  0x8c   : > { %2416 = vmatpush3.msra.mxu1 %v1876_v14  ;;  %2306 = vmatmul.mubr.msk.f32.gmra.mxu0 %vm302_vm0, %v846_v16 }
  0x8d   : > { %2351 = vmatmul.mubr.msk.f32.gmra.mxu1 %vm302_vm0, %v994_v17  ;;  %2373 = vmatpush3.msra.mxu0 %v1856_v18 }
  0x8e   : > { %2417 = vmatprep.subr.mxu1 %v2566_v2  ;;  %2374 = vmatprep.subr.mxu0 %v2566_v2 }
  0x8f   : > { %2418 = vmatpush3.msra.mxu1 %v1875_v19  ;;  %2375 = vmatpush3.msra.mxu0 %v1855_v20 }
  0x90   : > { %2419 = vmatprep.subr.mxu1 %v2566_v2  ;;  %2308 = vmatprep.mubr.msk.f32.mxu0 %vm2567_vm1, %v2566_v2 }
  0x91   : > { %2353 = vmatprep.mubr.msk.f32.mxu1 %vm2567_vm1, %v2566_v2  ;;  %2420 = vmatpush3.msra.mxu1 %v1874_v22 }
  0x92   : > { %2309 = vmatmul.mubr.msk.f32.gmra.mxu0 %vm302_vm0, %v847_v23  ;;  %2354 = vmatmul.mubr.msk.f32.gmra.mxu1 %vm302_vm0, %v995_v24 }
  0x93   : > { %2376 = vmatprep.subr.mxu0 %v2566_v2  ;;  %2421 = vmatprep.subr.mxu1 %v2566_v2 }
  0x94   : > { %2377 = vmatpush3.msra.mxu0 %v1854_v25  ;;  %2422 = vmatpush3.msra.mxu1 %v1873_v27 }
  0x95   : > { %2378 = vmatprep.subr.mxu0 %v2566_v2  ;;  %2423 = vmatprep.subr.mxu1 %v2566_v2 }
  0x96   : > { %2379 = vmatpush3.msra.mxu0 %v1853_v30  ;;  %2380 = vmatprep.mubr.msk.f32.mxu0 %vm2567_vm1, %v2566_v2 }
  0x97   : > { %2424 = vmatpush3.msra.mxu1 %v1872_v31  ;;  %2425 = vmatprep.mubr.msk.f32.mxu1 %vm2567_vm1, %v2566_v2 }
  0x98   : > { %2381 = vmatmul.mubr.msk.f32.vlgmr.msra.gmra.mxu0 %vm302_vm0, %v2737_v29  ;;  %2426 = vmatmul.mubr.msk.f32.vlgmr.msra.gmra.mxu1 %vm302_vm0, %v2734_v28  ;;  %v1900_v28 = vld [vmem:[%s3427_s1 + $0x348] sm:$0xff]  ;;  %v1899_v29 = vld [vmem:[%s3427_s1 + $0x340] sm:$0xff] }
  0x99   : > { %2446 = vmatprep.subr.mxu0 %v2566_v2  ;;  %2383 = vmatprep.mubr.msk.f32.mxu0 %vm2567_vm1, %v2566_v2 }
  0x9a   : > { %2447 = vmatpush3.msra.mxu0 %v1902_v32  ;;  %2428 = vmatprep.mubr.msk.f32.mxu1 %vm2567_vm1, %v2566_v2 }
  0x9b   : > { %2448 = vmatprep.subr.mxu0 %v2566_v2  ;;  %2491 = vmatprep.subr.mxu1 %v2566_v2 }
  0x9c   : > { %2384 = vmatmul.mubr.msk.f32.gmra.mxu0 %vm302_vm0, %v2767_v35  ;;  %2429 = vmatmul.mubr.msk.f32.gmra.mxu1 %vm302_vm0, %v2762_v34  ;;  %v1898_v34 = vld [vmem:[%s3427_s1 + $0x338] sm:$0xff]  ;;  %v1897_v35 = vld [vmem:[%s3427_s1 + $0x330] sm:$0xff] }
  0x9d   : > { %2449 = vmatpush3.msra.mxu0 %v1901_v33  ;;  %2503 = vmatpush3.msra.mxu1 %v1902_v32 }
  0x9e   : > { %2450 = vmatprep.subr.mxu0 %v2566_v2  ;;  %2492 = vmatprep.subr.mxu1 %v2566_v2 }
  0x9f   : > { %2451 = vmatpush3.msra.mxu0 %v1900_v28  ;;  %2386 = vmatprep.mubr.msk.f32.mxu0 %vm2567_vm1, %v2566_v2 }
  0xa0   : > { %2431 = vmatprep.mubr.msk.f32.mxu1 %vm2567_vm1, %v2566_v2  ;;  %2504 = vmatpush3.msra.mxu1 %v1901_v33 }
  0xa1   : > { %2452 = vmatprep.subr.mxu0 %v2566_v2  ;;  %2387 = vmatmul.mubr.msk.f32.gmra.mxu0 %vm302_vm0, %v2796_v41  ;;  %v1895_v41 = vld [vmem:[%s3427_s1 + $0x320] sm:$0xff] }
  0xa2   : > { %2432 = vmatmul.mubr.msk.f32.gmra.mxu1 %vm302_vm0, %v2793_v40  ;;  %2493 = vmatprep.subr.mxu1 %v2566_v2  ;;  %v1896_v40 = vld [vmem:[%s3427_s1 + $0x328] sm:$0xff] }
  0xa3   : > { %2453 = vmatpush3.msra.mxu0 %v1899_v29  ;;  %2505 = vmatpush3.msra.mxu1 %v1900_v28 }
  0xa4   : > { %2494 = vmatprep.subr.mxu1 %v2566_v2  ;;  %2454 = vmatprep.subr.mxu0 %v2566_v2 }
  0xa5   : > { %2389 = vmatprep.mubr.msk.f32.mxu0 %vm2567_vm1, %v2566_v2  ;;  %2434 = vmatprep.mubr.msk.f32.mxu1 %vm2567_vm1, %v2566_v2 }
  0xa6   : > { %2506 = vmatpush3.msra.mxu1 %v1899_v29  ;;  %2455 = vmatpush3.msra.mxu0 %v1898_v34 }
  0xa7   : > { %2390 = vmatmul.mubr.msk.f32.gmra.mxu0 %vm302_vm0, %v2825_v47  ;;  %2435 = vmatmul.mubr.msk.f32.gmra.mxu1 %vm302_vm0, %v2822_v46  ;;  %v1894_v46 = vld [vmem:[%s3427_s1 + $0x318] sm:$0xff]  ;;  %v1893_v47 = vld [vmem:[%s3427_s1 + $0x310] sm:$0xff] }
  0xa8   : > { %2495 = vmatprep.subr.mxu1 %v2566_v2  ;;  %2456 = vmatprep.subr.mxu0 %v2566_v2 }
  0xa9   : > { %2507 = vmatpush3.msra.mxu1 %v1898_v34  ;;  %2457 = vmatpush3.msra.mxu0 %v1897_v35 }
  0xaa   : > { %2496 = vmatprep.subr.mxu1 %v2566_v2  ;;  %2458 = vmatprep.subr.mxu0 %v2566_v2 }
  0xab   : > { %2392 = vmatprep.mubr.msk.f32.mxu0 %vm2567_vm1, %v2566_v2  ;;  %2437 = vmatprep.mubr.msk.f32.mxu1 %vm2567_vm1, %v2566_v2 }
  0xac   : > { %2508 = vmatpush3.msra.mxu1 %v1897_v35  ;;  %2459 = vmatpush3.msra.mxu0 %v1896_v40 }
  0xad   : > { %2393 = vmatmul.mubr.msk.f32.gmra.mxu0 %vm302_vm0, %v2853_v52  ;;  %2438 = vmatmul.mubr.msk.f32.gmra.mxu1 %vm302_vm0, %v2847_v51  ;;  %v1143_v51 = vld [vmem:[%s2707_s22 + $0x38] sm:$0xff] }
  0xae   : > { %2497 = vmatprep.subr.mxu1 %v2566_v2  ;;  %2460 = vmatprep.subr.mxu0 %v2566_v2  ;;  %v1291_v52 = vld [vmem:[%s2707_s22 + $0x78] sm:$0xff] }
  0xaf   : > { %2509 = vmatpush3.msra.mxu1 %v1896_v40  ;;  %2461 = vmatpush3.msra.mxu0 %v1895_v41 }
  0xb0   : > { %2498 = vmatprep.subr.mxu1 %v2566_v2  ;;  %2395 = vmatprep.mubr.msk.f32.mxu0 %vm2567_vm1, %v2566_v2 }
  0xb1   : > { %2440 = vmatprep.mubr.msk.f32.mxu1 %vm2567_vm1, %v2566_v2  ;;  %2510 = vmatpush3.msra.mxu1 %v1895_v41 }
  0xb2   : > { %2462 = vmatprep.subr.mxu0 %v2566_v2  ;;  %2396 = vmatmul.mubr.msk.f32.gmra.mxu0 %vm302_vm0, %v2880_v58  ;;  %v1891_v58 = vld [vmem:[%s3427_s1 + $0x300] sm:$0xff] }
  0xb3   : > { %2441 = vmatmul.mubr.msk.f32.gmra.mxu1 %vm302_vm0, %v2877_v57  ;;  %2499 = vmatprep.subr.mxu1 %v2566_v2  ;;  %v1892_v57 = vld [vmem:[%s3427_s1 + $0x308] sm:$0xff] }
  0xb4   : > { %2463 = vmatpush3.msra.mxu0 %v1894_v46  ;;  %2511 = vmatpush3.msra.mxu1 %v1894_v46 }
  0xb5   : > { %2464 = vmatprep.subr.mxu0 %v2566_v2  ;;  %2500 = vmatprep.subr.mxu1 %v2566_v2 }
  0xb6   : > { %2465 = vmatpush3.msra.mxu0 %v1893_v47  ;;  %2398 = vmatprep.mubr.msk.f32.mxu0 %vm2567_vm1, %v2566_v2 }
  0xb7   : > { %2443 = vmatprep.mubr.msk.f32.mxu1 %vm2567_vm1, %v2566_v2  ;;  %2512 = vmatpush3.msra.mxu1 %v1893_v47 }
  0xb8   : > { %2399 = vmatmul.mubr.msk.f32.gmra.mxu0 %vm302_vm0, %v1143_v51  ;;  %2444 = vmatmul.mubr.msk.f32.gmra.mxu1 %vm302_vm0, %v1291_v52 }
  0xb9   : > { %2466 = vmatprep.subr.mxu0 %v2566_v2  ;;  %2501 = vmatprep.subr.mxu1 %v2566_v2 }
  0xba   : > { %2467 = vmatpush3.msra.mxu0 %v1892_v57  ;;  %2513 = vmatpush3.msra.mxu1 %v1892_v57 }
  0xbb   : > { %2468 = vmatprep.subr.mxu0 %v2566_v2  ;;  %2502 = vmatprep.subr.mxu1 %v2566_v2 }
  0xbc   : > { %2469 = vmatpush3.msra.mxu0 %v1891_v58  ;;  %2514 = vmatpush3.msra.mxu1 %v1891_v58 }
  0xbd   : > { %2470 = vmatprep.mubr.msk.f32.mxu0 %vm2567_vm1, %v2566_v2  ;;  %2482 = vmatprep.mubr.msk.f32.mxu1 %vm2567_vm1, %v2566_v2 }
  0xbe   : > { %2471 = vmatmul.mubr.msk.f32.vlgmr.msra.gmra.mxu0 %vm302_vm0, %v2922_v3  ;;  %2483 = vmatmul.mubr.msk.f32.vlgmr.msra.gmra.mxu1 %vm302_vm0, %v3023_v26  ;;  %v1439_v3 = vld [vmem:[%s2707_s22 + $0x39] sm:$0xff] }
  0xbf   : > { %2473 = vmatprep.mubr.msk.f32.mxu0 %vm2567_vm1, %v2566_v2  ;;  %2485 = vmatprep.mubr.msk.f32.mxu1 %vm2567_vm1, %v2566_v2 }
  0xc2   : > { %2474 = vmatmul.mubr.msk.f32.gmra.mxu0 %vm302_vm0, %v2947_v9  ;;  %2486 = vmatmul.mubr.msk.f32.gmra.mxu1 %vm302_vm0, %v3050_v36 }
  0xc3   : > { %2476 = vmatprep.mubr.msk.f32.mxu0 %vm2567_vm1, %v2566_v2  ;;  %2488 = vmatprep.mubr.msk.f32.mxu1 %vm2567_vm1, %v2566_v2 }
  0xc6   : > { %2477 = vmatmul.mubr.msk.f32.gmra.mxu0 %vm302_vm0, %v2975_v15  ;;  %2489 = vmatmul.mubr.msk.f32.gmra.mxu1 %vm302_vm0, %v1439_v3 }
  0xc7   : > { %2479 = vmatprep.mubr.msk.f32.mxu0 %vm2567_vm1, %v2566_v2 }
  0xca   : > { %2480 = vmatmul.mubr.msk.f32.gmra.mxu0 %vm302_vm0, %v3001_v21 }
  0xe6   : > { %v390_v9 = vpop.f32.mrf.mxu0  ;;  %v511_v26 = vpop.f32.mrf.mxu1 }
  0xe7   : > { %v512_v36 = vadd.f32 %v511_v26, %v390_v9 }
  0xe8   : > { %v2112_v37 = vpop.f32.mrf.mxu0  ;;  %v2157_v38 = vpop.f32.mrf.mxu1 }
  0xea   : > { %v395_v39 = vpop.f32.mrf.mxu0  ;;  %v516_v42 = vpop.f32.mrf.mxu1 }
  0xeb   : > { %v517_v43 = vadd.f32 %v516_v42, %v395_v39 }
  0xec   : > { %v2115_v44 = vpop.f32.mrf.mxu0  ;;  %v2160_v45 = vpop.f32.mrf.mxu1 }
  0xef   : > { %v400_v48 = vpop.f32.mrf.mxu0 }
  0xf0   : > { %v521_v15 = vpop.f32.mrf.mxu1 }
  0xf1   : > { %v522_v49 = vadd.f32 %v521_v15, %v400_v48  ;;  %v2118_v50 = vpop.f32.mrf.mxu0 }
  0xf2   : > { %v2163_v53 = vpop.f32.mrf.mxu1 }
  0xf5   : > { %v405_v54 = vpop.f32.mrf.mxu0  ;;  %v526_v2 = vpop.f32.mrf.mxu1 }
  0xf6   : > { %v527_v55 = vadd.f32 %v526_v2, %v405_v54 }
  0xf7   : > { %v2121_v56 = vpop.f32.mrf.mxu0  ;;  %v2166_v21 = vpop.f32.mrf.mxu1 }
  0xfb   : > { %v410_v59 = vpop.f32.mrf.mxu0  ;;  %v531_v60 = vpop.f32.mrf.mxu1 }
  0xfc   : > { %v532_v61 = vadd.f32 %v531_v60, %v410_v59 }
  0xfd   : > { %v2124_v62 = vpop.f32.mrf.mxu0  ;;  %v2169_v63 = vpop.f32.mrf.mxu1 }
 0x100   : > { %v415_v0 = vpop.f32.mrf.mxu0 }
 0x101   : > { %v536_v1 = vpop.f32.mrf.mxu1 }
 0x102   : > { %v537_v4 = vadd.f32 %v536_v1, %v415_v0  ;;  %v2127_v5 = vpop.f32.mrf.mxu0 }
 0x103   : > { %v2172_v6 = vpop.f32.mrf.mxu1 }
 0x106   : > { %v420_v7 = vpop.f32.mrf.mxu0  ;;  %v541_v8 = vpop.f32.mrf.mxu1 }
 0x107   : > { %v542_v10 = vadd.f32 %v541_v8, %v420_v7 }
 0x108   : > { %v2130_v11 = vpop.f32.mrf.mxu0  ;;  %v2175_v12 = vpop.f32.mrf.mxu1 }
 0x10c   : > { %v652_v13 = vpop.f32.mrf.mxu0  ;;  %v800_v14 = vpop.f32.mrf.mxu1 }
 0x10d   : > { %v686_v16 = vadd.f32 %v652_v13, %v512_v36 }
 0x10e   : > { %v2202_v17 = vpop.f32.mrf.mxu0  ;;  %v2247_v18 = vpop.f32.mrf.mxu1 }
 0x10f   : > { %v834_v19 = vadd.f32 %v800_v14, %v686_v16 }
 0x110   : > { %v657_v20 = vpop.f32.mrf.mxu0  ;;  %v805_v22 = vpop.f32.mrf.mxu1 }
 0x111   : > { %v687_v23 = vadd.f32 %v657_v20, %v517_v43 }
 0x112   : > { %v2205_v24 = vpop.f32.mrf.mxu0  ;;  %v2250_v25 = vpop.f32.mrf.mxu1 }
 0x113   : > { %v835_v27 = vadd.f32 %v805_v22, %v687_v23 }
 0x115   : > { %v662_v30 = vpop.f32.mrf.mxu0 }
 0x116   : > { %v688_v31 = vadd.f32 %v662_v30, %v522_v49  ;;  %v810_v32 = vpop.f32.mrf.mxu1 }
 0x117   : > { %v2208_v33 = vpop.f32.mrf.mxu0 }
 0x118   : > { %v836_v28 = vadd.f32 %v810_v32, %v688_v31  ;;  %v2253_v29 = vpop.f32.mrf.mxu1 }
 0x11b   : > { %v667_v34 = vpop.f32.mrf.mxu0  ;;  %v815_v35 = vpop.f32.mrf.mxu1 }
 0x11c   : > { %v689_v40 = vadd.f32 %v667_v34, %v527_v55 }
 0x11d   : > { %v2211_v41 = vpop.f32.mrf.mxu0  ;;  %v2256_v46 = vpop.f32.mrf.mxu1 }
 0x11e   : > { %v837_v47 = vadd.f32 %v815_v35, %v689_v40 }
 0x121   : > { %v672_v51 = vpop.f32.mrf.mxu0  ;;  %v820_v52 = vpop.f32.mrf.mxu1 }
 0x122   : > { %v690_v57 = vadd.f32 %v672_v51, %v532_v61 }
 0x123   : > { %v2214_v58 = vpop.f32.mrf.mxu0  ;;  %v2259_v3 = vpop.f32.mrf.mxu1 }
 0x124   : > { %v3373_v9 = vadd.f32 %v820_v52, %v690_v57 }
 0x126   : > { %v677_v26 = vpop.f32.mrf.mxu0 }
 0x127   : > { %v691_v36 = vadd.f32 %v677_v26, %v537_v4  ;;  %v825_v37 = vpop.f32.mrf.mxu1 }
 0x128   : > { %v2217_v38 = vpop.f32.mrf.mxu0 }
 0x129   : > { %v3375_v39 = vadd.f32 %v825_v37, %v691_v36  ;;  %v2262_v42 = vpop.f32.mrf.mxu1 }
 0x12c   : > { %v682_v43 = vpop.f32.mrf.mxu0  ;;  %v830_v44 = vpop.f32.mrf.mxu1 }
 0x12d   : > { %v692_v45 = vadd.f32 %v682_v43, %v542_v10 }
 0x12e   : > { %v2220_v48 = vpop.f32.mrf.mxu0  ;;  %v2265_v15 = vpop.f32.mrf.mxu1 }
 0x12f   : > { %v3377_v49 = vadd.f32 %v830_v44, %v692_v45 }
 0x132   : > { %v948_v50 = vpop.f32.mrf.mxu0  ;;  %v1096_v53 = vpop.f32.mrf.mxu1 }
 0x133   : > { %v982_v54 = vadd.f32 %v948_v50, %v834_v19 }
 0x134   : > { %v2292_v2 = vpop.f32.mrf.mxu0  ;;  %v2337_v55 = vpop.f32.mrf.mxu1 }
 0x135   : > { %v1130_v56 = vadd.f32 %v1096_v53, %v982_v54 }
 0x136   : > { %v953_v21 = vpop.f32.mrf.mxu0  ;;  %v1101_v59 = vpop.f32.mrf.mxu1 }
 0x137   : > { %v983_v60 = vadd.f32 %v953_v21, %v835_v27 }
 0x138   : > { %v2295_v61 = vpop.f32.mrf.mxu0  ;;  %v2340_v62 = vpop.f32.mrf.mxu1 }
 0x139   : > { %v1131_v63 = vadd.f32 %v1101_v59, %v983_v60 }
 0x13b   : > { %v958_v0 = vpop.f32.mrf.mxu0 }
 0x13c   : > { %v984_v1 = vadd.f32 %v958_v0, %v836_v28  ;;  %v1106_v4 = vpop.f32.mrf.mxu1 }
 0x13d   : > { %v2298_v5 = vpop.f32.mrf.mxu0 }
 0x13e   : > { %v3379_v6 = vadd.f32 %v1106_v4, %v984_v1  ;;  %v2343_v7 = vpop.f32.mrf.mxu1 }
 0x141   : > { %v963_v8 = vpop.f32.mrf.mxu0  ;;  %v1111_v10 = vpop.f32.mrf.mxu1 }
 0x142   : > { %v985_v11 = vadd.f32 %v963_v8, %v837_v47 }
 0x143   : > { %v2301_v12 = vpop.f32.mrf.mxu0  ;;  %v2346_v13 = vpop.f32.mrf.mxu1 }
 0x144   : > { %v3381_v14 = vadd.f32 %v1111_v10, %v985_v11  ;;  %v1911_v12 = vld [vmem:[%s3429_s3] ss:$0 sm:$0xff] }
 0x147   : > { %v968_v16 = vpop.f32.mrf.mxu0  ;;  %v1116_v17 = vpop.f32.mrf.mxu1 }
 0x148   : > { %v986_v44 = vadd.f32 %v968_v16, %v3373_v9 }
 0x149   : > { %v2304_v18 = vpop.f32.mrf.mxu0  ;;  %v2349_v19 = vpop.f32.mrf.mxu1 }
 0x14a   : > { %v1134_v50 = vadd.f32 %v1116_v17, %v986_v44 }
 0x14c   : > { %v973_v20 = vpop.f32.mrf.mxu0 }
 0x14d   : > { %v1121_v22 = vpop.f32.mrf.mxu1  ;;  %v987_v53 = vadd.f32 %v973_v20, %v3375_v39  ;;  %v1910_v39 = vld [vmem:[%s3428_s2] ss:$0 sm:$0xff] }
 0x14e   : > { %v2307_v23 = vpop.f32.mrf.mxu0 }
 0x14f   : > { %v2352_v24 = vpop.f32.mrf.mxu1  ;;  %v1135_v62 = vadd.f32 %v1121_v22, %v987_v53 }
 0x152   : > { %v978_v25 = vpop.f32.mrf.mxu0  ;;  %v1126_v27 = vpop.f32.mrf.mxu1 }
 0x153   : > { %v988_v59 = vadd.f32 %v978_v25, %v3377_v49 }
 0x154   : > { %v2310_v30 = vpop.f32.mrf.mxu0  ;;  %v2355_v31 = vpop.f32.mrf.mxu1 }
 0x155   : > { %v1136_v5 = vadd.f32 %v1126_v27, %v988_v59 }
 0x158   : > { %v1244_v32 = vpop.f32.mrf.mxu0  ;;  %v1392_v33 = vpop.f32.mrf.mxu1 }
 0x159   : > { %v1278_v55 = vadd.f32 %v1244_v32, %v1130_v56 }
 0x15a   : > { %v2382_v28 = vpop.f32.mrf.mxu0  ;;  %v2427_v29 = vpop.f32.mrf.mxu1 }
 0x15b   : > { %v1426_v0 = vadd.f32 %v1392_v33, %v1278_v55 }
 0x15c   : > { %v1249_v34 = vpop.f32.mrf.mxu0  ;;  %v1397_v35 = vpop.f32.mrf.mxu1 }
 0x15d   : > { %v1279_v1 = vadd.f32 %v1249_v34, %v1131_v63 }
 0x15e   : > { %v2385_v40 = vpop.f32.mrf.mxu0  ;;  %v2430_v41 = vpop.f32.mrf.mxu1 }
 0x15f   : > { %v1427_v16 = vadd.f32 %v1397_v35, %v1279_v1 }
 0x161   : > { %v1254_v46 = vpop.f32.mrf.mxu0 }
 0x162   : > { %v1402_v47 = vpop.f32.mrf.mxu1  ;;  %v1280_v11 = vadd.f32 %v1254_v46, %v3379_v6 }
 0x163   : > { %v2388_v51 = vpop.f32.mrf.mxu0 }
 0x164   : > { %v2433_v52 = vpop.f32.mrf.mxu1  ;;  %v1428_v30 = vadd.f32 %v1402_v47, %v1280_v11 }
 0x167   : > { %v1259_v57 = vpop.f32.mrf.mxu0  ;;  %v3383_v58 = vpop.f32.mrf.mxu1 }
 0x168   : > { %v1281_v6 = vadd.f32 %v1259_v57, %v3381_v14 }
 0x169   : > { %v2391_v3 = vpop.f32.mrf.mxu0  ;;  %v2436_v26 = vpop.f32.mrf.mxu1 }
 0x16a   : > { %v1429_v52 = vadd.f32 %v3383_v58, %v1281_v6 }
 0x16d   : > { %v1264_v36 = vpop.f32.mrf.mxu0  ;;  %v1412_v37 = vpop.f32.mrf.mxu1 }
 0x16e   : > { %v1282_v21 = vadd.f32 %v1264_v36, %v1134_v50 }
 0x16f   : > { %v2394_v38 = vpop.f32.mrf.mxu0  ;;  %v2439_v42 = vpop.f32.mrf.mxu1 }
 0x170   : > { %v1430_v4 = vadd.f32 %v1412_v37, %v1282_v21 }
 0x172   : > { %v1269_v43 = vpop.f32.mrf.mxu0 }
 0x173   : > { %v1417_v45 = vpop.f32.mrf.mxu1  ;;  %v1283_v9 = vadd.f32 %v1269_v43, %v1135_v62 }
 0x174   : > { %v2397_v48 = vpop.f32.mrf.mxu0 }
 0x175   : > { %v2442_v15 = vpop.f32.mrf.mxu1  ;;  %v1431_v17 = vadd.f32 %v1417_v45, %v1283_v9 }
 0x178   : > { %v1274_v54 = vpop.f32.mrf.mxu0  ;;  %v1422_v2 = vpop.f32.mrf.mxu1 }
 0x179   : > { %v1284_v49 = vadd.f32 %v1274_v54, %v1136_v5 }
 0x17a   : > { %v2400_v60 = vpop.f32.mrf.mxu0  ;;  %v2445_v61 = vpop.f32.mrf.mxu1 }
 0x17b   : > { %v1432_v31 = vadd.f32 %v1422_v2, %v1284_v49 }
 0x17e   : > { %v1540_v7 = vpop.f32.mrf.mxu0  ;;  %v1560_v8 = vpop.f32.mrf.mxu1 }
 0x17f   : > { %v1574_v10 = vadd.f32 %v1540_v7, %v1426_v0  ;;  %v1578_v56 = vadd.f32 %v1560_v8, %v1430_v4 }
 0x180   : > { %v2472_v63 = vpop.f32.mrf.mxu0  ;;  %v2484_v13 = vpop.f32.mrf.mxu1 }
 0x181   : > { %v1588_v18 = vmul.f32 %v1910_v39, %v1574_v10  ;;  %v1592_v19 = vmul.f32 %v1910_v39, %v1578_v56 }
 0x182   : > { %v1545_v20 = vpop.f32.mrf.mxu0  ;;  %v1565_v22 = vpop.f32.mrf.mxu1 }
 0x183   : > { %v1602_v23 = vadd.f32 %v1911_v12, %v1588_v18  ;;  %v1606_v24 = vadd.f32 %v1911_v12, %v1592_v19  ;;  %v1575_v25 = vadd.f32 %v1545_v20, %v1427_v16  ;;  %v1579_v27 = vadd.f32 %v1565_v22, %v1431_v17 }
 0x184   : > { %v2475_v32 = vpop.f32.mrf.mxu0  ;;  %v2487_v33 = vpop.f32.mrf.mxu1 }
 0x185   : > { %v1609_v28 = vmax.f32 %v1602_v23, 0.0  ;;  %v1613_v29 = vmax.f32 %v1606_v24, 0.0  ;;  %v1589_v34 = vmul.f32 %v1910_v39, %v1575_v25  ;;  %v1593_v35 = vmul.f32 %v1910_v39, %v1579_v27 }
 0x186   : > { %v1550_v40 = vpop.f32.mrf.mxu0  ;;  %v1570_v41 = vpop.f32.mrf.mxu1 }
 0x187   : > { %1616 = vst.msk [vmem:[%s3400_s6] sm:$0xff] %vm302_vm0, %v1609_v28  ;;  %1620 = vst.msk [vmem:[%s3400_s6 + $0x20] sm:$0xff] %vm302_vm0, %v1613_v29  ;;  %v1603_v14 = vadd.f32 %v1911_v12, %v1589_v34  ;;  %v1607_v46 = vadd.f32 %v1911_v12, %v1593_v35  ;;  %v1576_v47 = vadd.f32 %v1550_v40, %v1428_v30 }
 0x188   : > { %v1580_v51 = vadd.f32 %v1570_v41, %v1432_v31  ;;  %v2478_v57 = vpop.f32.mrf.mxu0  ;;  %v2490_v3 = vpop.f32.mrf.mxu1 }
 0x189   : > { %v1610_v26 = vmax.f32 %v1603_v14, 0.0  ;;  %v1614_v36 = vmax.f32 %v1607_v46, 0.0  ;;  %v1590_v37 = vmul.f32 %v1910_v39, %v1576_v47 }
 0x18a   : > { %v1594_v38 = vmul.f32 %v1910_v39, %v1580_v51  ;;  %v1555_v42 = vpop.f32.mrf.mxu0 }
 0x18b   : > { %1617 = vst.msk [vmem:[%s3400_s6 + $0x8] sm:$0xff] %vm302_vm0, %v1610_v26  ;;  %1621 = vst.msk [vmem:[%s3400_s6 + $0x28] sm:$0xff] %vm302_vm0, %v1614_v36  ;;  %v1604_v43 = vadd.f32 %v1911_v12, %v1590_v37  ;;  %v1577_v45 = vadd.f32 %v1555_v42, %v1429_v52 }
 0x18c   : > { %v1608_v44 = vadd.f32 %v1911_v12, %v1594_v38  ;;  %v2481_v48 = vpop.f32.mrf.mxu0 }
 0x18d   : > { %v1611_v15 = vmax.f32 %v1604_v43, 0.0  ;;  %v1591_v50 = vmul.f32 %v1910_v39, %v1577_v45 }
 0x18e   : > { %v1615_v58 = vmax.f32 %v1608_v44, 0.0 }
 0x18f   : > { %1618 = vst.msk [vmem:[%s3400_s6 + $0x10] sm:$0xff] %vm302_vm0, %v1611_v15  ;;  %v1605_v53 = vadd.f32 %v1911_v12, %v1591_v50 }
 0x190   : > { %1622 = vst.msk [vmem:[%s3400_s6 + $0x30] sm:$0xff] %vm302_vm0, %v1615_v58 }
 0x191   : > { %v1612_v54 = vmax.f32 %v1605_v53, 0.0 }
 0x193   : > { %1619 = vst.msk [vmem:[%s3400_s6 + $0x18] sm:$0xff] %vm302_vm0, %v1612_v54 }
 0x194 PF: > { %s14_s17 = sadd.s32 1, %s2564_s17   ;;  %s3431_s15 = smov %s2560_s16 }
 0x195   : > { %p11_p5 = scmp.ge.s32.totalorder %s14_s17, 4   ;;  %s3432_s16 = smov %s3434_s18 }
 0x197   :  { %13 = sbr.rel (!%p11_p5) target bundleno = 2 (0x2), region = 83 }

// kernel: inception_b.7
= control target key start
LH: loop header
LB: loop body
LE: loop exit
PB: predicated region body
PF: predicated region fallthrough
CT: control target
= control target key end

     0   :  { %s5400_s15 = smov 0   ;;  %s5402_s16 = smov 0   ;;  %s7116_s0 = inlined_call_operand.vmem [shape: f32[2,291,64], index: 0, kind: input, shape index: {}]   ;;  %s7117_s1 = inlined_call_operand.vmem [shape: f32[9,64,96], index: 1, kind: input, shape index: {}]   ;;  %s7118_s2 = inlined_call_operand.vmem [shape: f32[1,96], index: 2, kind: input, shape index: {}]   ;;  %s7119_s3 = inlined_call_operand.vmem [shape: f32[1,96], index: 3, kind: input, shape index: {}]   ;;  %s7120_s4 = inlined_call_operand.vmem [shape: f32[2,255,96], index: 4, kind: output, shape index: {}]  }
   0x1   :  { %s5404_s17 = smov 0  }
   0x2 LB: > { %s26_s18 = sadd.s32 1, %s5369_s16  ;;  %p4013_p0 = scmp.ge.s32.totalorder %s5373_s17, 1  ;;  %s5373_s17 = sphi %s5404_s17, %s14_s17   ;;  %s5369_s16 = sphi %s5402_s16, %s7217_s16   ;;  %s5365_s15 = sphi %s5400_s15, %s7216_s15  }
   0x3   : > { %p28_p1 = scmp.ge.s32.totalorder %s26_s18, 2  ;;  %p201_p2 = scmp.lt.s32.totalorder %s5373_s17, 3 }
   0x5   : > { %s7219_s18 = smov (%p28_p1, %s26_s18), 0  ;;  %p202_p3 = pnand %p4013_p0, %p201_p2 }
   0x7   : > { %205 = sbr.rel (%p202_p3) target bundleno = 520 (0x208), region = 36 }
   0xc   : > { %v4024_v0 = vld [vmem:[%s7117_s1 + $0x78] sm:$0xff]  ;;  %v4023_v1 = vld [vmem:[%s7117_s1 + $0x70] sm:$0xff]  ;;  %p240_p4 = scmp.lt.s32.totalorder %s5365_s15, 1  ;;  %v4022_v2 = vld [vmem:[%s7117_s1 + $0x68] sm:$0xff]  ;;  %vm344_vm0 = vcmask 523264   ;;  %vm3855_vm1 = vcmask 785408  }
   0xd   : > { %5310 = vmatprep.subr.mxu1 %v4024_v0  ;;  %4734 = vmatprep.subr.mxu0 %v4024_v0  ;;  %v4021_v3 = vld [vmem:[%s7117_s1 + $0x60] sm:$0xff]  ;;  %v4020_v4 = vld [vmem:[%s7117_s1 + $0x58] sm:$0xff]  ;;  %v4019_v5 = vld [vmem:[%s7117_s1 + $0x50] sm:$0xff]  ;;  %vm3887_vm2 = vcmask 784384  }
   0xe   : > { %5318 = vmatpush3.msra.mxu1 %v4024_v0  ;;  %4735 = vmatpush3.msra.mxu0 %v4024_v0  ;;  %s7221_s15 = smov (!%p240_p4, %s5365_s15), 1  ;;  %v4018_v6 = vld [vmem:[%s7117_s1 + $0x48] sm:$0xff]  ;;  %v4017_v7 = vld [vmem:[%s7117_s1 + $0x40] sm:$0xff]  ;;  %v302_v11 = vld [vmem:[%s7117_s1 + $0x38] sm:$0xff] }
   0xf   : > { %5311 = vmatprep.subr.mxu1 %v4023_v1  ;;  %4736 = vmatprep.subr.mxu0 %v4023_v1  ;;  %s5326_s29 = smul.u32 296, %s7221_s15  ;;  %v4096_v13 = vld [vmem:[%s7117_s1 + $0xb8] sm:$0xff]  ;;  %v301_v17 = vld [vmem:[%s7117_s1 + $0x30] sm:$0xff]  ;;  %v300_v23 = vld [vmem:[%s7117_s1 + $0x28] sm:$0xff]  ;;  %s4373_s22 = sshll.u32 %s7221_s15, 8 }
  0x10   : > { %5319 = vmatpush3.msra.mxu1 %v4023_v1  ;;  %4737 = vmatpush3.msra.mxu0 %v4023_v1  ;;  %v4095_v19 = vld [vmem:[%s7117_s1 + $0xb0] sm:$0xff]  ;;  %v4094_v25 = vld [vmem:[%s7117_s1 + $0xa8] sm:$0xff]  ;;  %v299_v29 = vld [vmem:[%s7117_s1 + $0x20] sm:$0xff]  ;;  %s6907_s24 = scalar_lea.vmem %s7120_s4, %s4373_s22 }
  0x11   : > { %5312 = vmatprep.subr.mxu1 %v4022_v2  ;;  %4738 = vmatprep.subr.mxu0 %v4022_v2  ;;  %s5445_s10 = scalar_lea.vmem %s7116_s0, %s5326_s29  ;;  %v4093_v31 = vld [vmem:[%s7117_s1 + $0xa0] sm:$0xff]  ;;  %v298_v35 = vld [vmem:[%s7117_s1 + $0x18] sm:$0xff]  ;;  %v297_v41 = vld [vmem:[%s7117_s1 + $0x10] sm:$0xff] }
  0x12   : > { %5320 = vmatpush3.msra.mxu1 %v4022_v2  ;;  %4739 = vmatpush3.msra.mxu0 %v4022_v2  ;;  %v5451_v8 = vld [vmem:[%s5445_s10 + $0x81] sm:$0xff]  ;;  %v5455_v10 = vld [vmem:[%s5445_s10 + $0x89] sm:$0xff]  ;;  %v5468_v14 = vld [vmem:[%s5445_s10 + $0x91] sm:$0xff] }
  0x13   : > { %5313 = vmatprep.subr.mxu1 %v4021_v3  ;;  %4740 = vmatprep.subr.mxu0 %v4021_v3  ;;  %v303_v9 = vld [vmem:[%s5445_s10 + $0x1] sm:$0xff]  ;;  %v304_v12 = vld [vmem:[%s5445_s10 + $0x9] sm:$0xff]  ;;  %v5473_v15 = vld [vmem:[%s5445_s10 + $0x11] sm:$0xff] }
  0x14   : > { %5321 = vmatpush3.msra.mxu1 %v4021_v3  ;;  %4741 = vmatpush3.msra.mxu0 %v4021_v3  ;;  %v5477_v16 = vld [vmem:[%s5445_s10 + $0x99] sm:$0xff]  ;;  %v5493_v20 = vld [vmem:[%s5445_s10 + $0xa1] sm:$0xff]  ;;  %v5503_v22 = vld [vmem:[%s5445_s10 + $0xa9] sm:$0xff] }
  0x15   : > { %5314 = vmatprep.subr.mxu1 %v4020_v4  ;;  %4742 = vmatprep.subr.mxu0 %v4020_v4  ;;  %v5485_v18 = vld [vmem:[%s5445_s10 + $0x19] sm:$0xff]  ;;  %v5498_v21 = vld [vmem:[%s5445_s10 + $0x21] sm:$0xff]  ;;  %v5511_v24 = vld [vmem:[%s5445_s10 + $0x29] sm:$0xff] }
  0x16   : > { %5322 = vmatpush3.msra.mxu1 %v4020_v4  ;;  %4743 = vmatpush3.msra.mxu0 %v4020_v4  ;;  %v5519_v26 = vld [vmem:[%s5445_s10 + $0xb1] sm:$0xff]  ;;  %v5529_v28 = vld [vmem:[%s5445_s10 + $0xb9] sm:$0xff]  ;;  %v5545_v32 = vld [vmem:[%s5445_s10 + $0xc1] sm:$0xff] }
  0x17   : > { %5315 = vmatprep.subr.mxu1 %v4019_v5  ;;  %4744 = vmatprep.subr.mxu0 %v4019_v5  ;;  %v5524_v27 = vld [vmem:[%s5445_s10 + $0x31] sm:$0xff]  ;;  %v5537_v30 = vld [vmem:[%s5445_s10 + $0x39] sm:$0xff]  ;;  %v5550_v33 = vld [vmem:[%s5445_s10 + $0x41] sm:$0xff] }
  0x18   : > { %5323 = vmatpush3.msra.mxu1 %v4019_v5  ;;  %4745 = vmatpush3.msra.mxu0 %v4019_v5  ;;  %v5555_v34 = vld [vmem:[%s5445_s10 + $0xc9] sm:$0xff]  ;;  %v4092_v37 = vld [vmem:[%s7117_s1 + $0x98] sm:$0xff]  ;;  %v5597_v44 = vld [vmem:[%s5445_s10 + $0xe1] sm:$0xff] }
  0x19   : > { %5316 = vmatprep.subr.mxu1 %v4018_v6  ;;  %4746 = vmatprep.subr.mxu0 %v4018_v6  ;;  %v5563_v36 = vld [vmem:[%s5445_s10 + $0x49] sm:$0xff]  ;;  %v5571_v38 = vld [vmem:[%s5445_s10 + $0xd1] sm:$0xff]  ;;  %v5581_v40 = vld [vmem:[%s5445_s10 + $0xd9] sm:$0xff] }
  0x1a   : > { %5324 = vmatpush3.msra.mxu1 %v4018_v6  ;;  %4747 = vmatpush3.msra.mxu0 %v4018_v6  ;;  %v5576_v39 = vld [vmem:[%s5445_s10 + $0x51] sm:$0xff]  ;;  %v5589_v42 = vld [vmem:[%s5445_s10 + $0x59] sm:$0xff]  ;;  %v5602_v45 = vld [vmem:[%s5445_s10 + $0x61] sm:$0xff] }
  0x1b   : > { %5317 = vmatprep.subr.mxu1 %v4017_v7  ;;  %4748 = vmatprep.subr.mxu0 %v4017_v7  ;;  %v4091_v43 = vld [vmem:[%s7117_s1 + $0x90] sm:$0xff]  ;;  %v296_v47 = vld [vmem:[%s7117_s1 + $0x8] sm:$0xff]  ;;  %v334_v52 = vld [vmem:[%s5445_s10 + $0xf9] sm:$0x7f] }
  0x1c   : > { %5325 = vmatpush3.msra.mxu1 %v4017_v7  ;;  %4774 = vmatprep.mubr.msk.f32.mxu1 %vm344_vm0, %v5451_v8  ;;  %v5607_v46 = vld [vmem:[%s5445_s10 + $0xe9] sm:$0xff]  ;;  %v5623_v50 = vld [vmem:[%s5445_s10 + $0xf1] sm:$0xff]  ;;  %v295_v53 = vld [vmem:[%s7117_s1] sm:$0xff] }
  0x1d   : > { %4749 = vmatpush3.msra.mxu0 %v4017_v7  ;;  %4750 = vmatprep.mubr.msk.f32.mxu0 %vm344_vm0, %v303_v9  ;;  %v5615_v48 = vld [vmem:[%s5445_s10 + $0x69] sm:$0xff]  ;;  %v5628_v51 = vld [vmem:[%s5445_s10 + $0x71] sm:$0xff]  ;;  %v5639_v54 = vld [vmem:[%s5445_s10 + $0x79] sm:$0xff] }
  0x1e   : > { %4775 = vmatmul.mubr.msk.f32.vlgmr.msra.gmra.mxu1 %vm344_vm0, %v5455_v10  ;;  %4798 = vmatprep.subr.mxu1 %v302_v11  ;;  %v4090_v49 = vld [vmem:[%s7117_s1 + $0x88] sm:$0xff]  ;;  %v4089_v55 = vld [vmem:[%s7117_s1 + $0x80] sm:$0xff]  ;;  %v4136_v59 = vld [vmem:[%s7117_s1 + $0xf8] sm:$0xff] }
  0x1f   : > { %4751 = vmatmul.mubr.msk.f32.vlgmr.msra.gmra.mxu0 %vm344_vm0, %v304_v12  ;;  %4799 = vmatpush3.msra.mxu1 %v302_v11  ;;  %v263_v56 = vld [vmem:[%s5445_s10] sm:$0xff]  ;;  %v264_v58 = vld [vmem:[%s5445_s10 + $0x8] sm:$0xff]  ;;  %v4176_v61 = vld [vmem:[%s7117_s1 + $0x138] sm:$0xff] }
  0x20   : > { %4862 = vmatprep.subr.mxu0 %v4096_v13  ;;  %4777 = vmatprep.mubr.msk.f32.mxu1 %vm344_vm0, %v5468_v14  ;;  %v987_v57 = vld [vmem:[%s5445_s10 + $0x2] sm:$0xff]  ;;  %v988_v60 = vld [vmem:[%s5445_s10 + $0xa] sm:$0xff]  ;;  %v5664_v63 = vld [vmem:[%s5445_s10 + $0x12] sm:$0xff] }
  0x21   : > { %4863 = vmatpush3.msra.mxu0 %v4096_v13  ;;  %4753 = vmatprep.mubr.msk.f32.mxu0 %vm344_vm0, %v5473_v15  ;;  %v265_v62 = vld [vmem:[%s5445_s10 + $0x10] sm:$0xff]  ;;  %v266_v0 = vld [vmem:[%s5445_s10 + $0x18] sm:$0xff]  ;;  %v267_v3 = vld [vmem:[%s5445_s10 + $0x20] sm:$0xff] }
  0x22   : > { %4778 = vmatmul.mubr.msk.f32.gmra.mxu1 %vm344_vm0, %v5477_v16  ;;  %4800 = vmatprep.subr.mxu1 %v301_v17  ;;  %v4135_v1 = vld [vmem:[%s7117_s1 + $0xf0] sm:$0xff]  ;;  %v5673_v2 = vld [vmem:[%s5445_s10 + $0x1a] sm:$0xff]  ;;  %v5679_v4 = vld [vmem:[%s5445_s10 + $0x22] sm:$0xff] }
  0x23   : > { %4754 = vmatmul.mubr.msk.f32.gmra.mxu0 %vm344_vm0, %v5485_v18  ;;  %4801 = vmatpush3.msra.mxu1 %v301_v17  ;;  %v4175_v5 = vld [vmem:[%s7117_s1 + $0x130] sm:$0xff]  ;;  %v4134_v6 = vld [vmem:[%s7117_s1 + $0xe8] sm:$0xff]  ;;  %v4133_v17 = vld [vmem:[%s7117_s1 + $0xe0] sm:$0xff] }
  0x24   : > { %4864 = vmatprep.subr.mxu0 %v4095_v19  ;;  %4780 = vmatprep.mubr.msk.f32.mxu1 %vm344_vm0, %v5493_v20  ;;  %v268_v7 = vld [vmem:[%s5445_s10 + $0x28] sm:$0xff]  ;;  %v269_v11 = vld [vmem:[%s5445_s10 + $0x30] sm:$0xff] }
  0x25   : > { %4865 = vmatpush3.msra.mxu0 %v4095_v19  ;;  %4756 = vmatprep.mubr.msk.f32.mxu0 %vm344_vm0, %v5498_v21  ;;  %v5695_v9 = vld [vmem:[%s5445_s10 + $0x2a] sm:$0xff]  ;;  %v5699_v12 = vld [vmem:[%s5445_s10 + $0x32] sm:$0xff] }
  0x26   : > { %4781 = vmatmul.mubr.msk.f32.gmra.mxu1 %vm344_vm0, %v5503_v22  ;;  %4802 = vmatprep.subr.mxu1 %v300_v23  ;;  %v4174_v13 = vld [vmem:[%s7117_s1 + $0x128] sm:$0xff]  ;;  %v270_v19 = vld [vmem:[%s5445_s10 + $0x38] sm:$0xff] }
  0x27   : > { %4757 = vmatmul.mubr.msk.f32.gmra.mxu0 %vm344_vm0, %v5511_v24  ;;  %4803 = vmatpush3.msra.mxu1 %v300_v23  ;;  %v5715_v23 = vld [vmem:[%s5445_s10 + $0x3a] sm:$0xff] }
  0x28   : > { %4866 = vmatprep.subr.mxu0 %v4094_v25  ;;  %4783 = vmatprep.mubr.msk.f32.mxu1 %vm344_vm0, %v5519_v26 }
  0x29   : > { %4867 = vmatpush3.msra.mxu0 %v4094_v25  ;;  %4759 = vmatprep.mubr.msk.f32.mxu0 %vm344_vm0, %v5524_v27  ;;  %v271_v25 = vld [vmem:[%s5445_s10 + $0x40] sm:$0xff] }
  0x2a   : > { %4784 = vmatmul.mubr.msk.f32.gmra.mxu1 %vm344_vm0, %v5529_v28  ;;  %4804 = vmatprep.subr.mxu1 %v299_v29 }
  0x2b   : > { %4760 = vmatmul.mubr.msk.f32.gmra.mxu0 %vm344_vm0, %v5537_v30  ;;  %4805 = vmatpush3.msra.mxu1 %v299_v29  ;;  %v5719_v29 = vld [vmem:[%s5445_s10 + $0x42] sm:$0xff] }
  0x2c   : > { %4868 = vmatprep.subr.mxu0 %v4093_v31  ;;  %4786 = vmatprep.mubr.msk.f32.mxu1 %vm344_vm0, %v5545_v32 }
  0x2d   : > { %4869 = vmatpush3.msra.mxu0 %v4093_v31  ;;  %4762 = vmatprep.mubr.msk.f32.mxu0 %vm344_vm0, %v5550_v33  ;;  %v4173_v31 = vld [vmem:[%s7117_s1 + $0x120] sm:$0xff] }
  0x2e   : > { %4787 = vmatmul.mubr.msk.f32.gmra.mxu1 %vm344_vm0, %v5555_v34  ;;  %4806 = vmatprep.subr.mxu1 %v298_v35 }
  0x2f   : > { %4763 = vmatmul.mubr.msk.f32.gmra.mxu0 %vm344_vm0, %v5563_v36  ;;  %4807 = vmatpush3.msra.mxu1 %v298_v35  ;;  %v4132_v35 = vld [vmem:[%s7117_s1 + $0xd8] sm:$0xff] }
  0x30   : > { %4870 = vmatprep.subr.mxu0 %v4092_v37  ;;  %4789 = vmatprep.mubr.msk.f32.mxu1 %vm344_vm0, %v5571_v38 }
  0x31   : > { %4871 = vmatpush3.msra.mxu0 %v4092_v37  ;;  %4765 = vmatprep.mubr.msk.f32.mxu0 %vm344_vm0, %v5576_v39  ;;  %v272_v37 = vld [vmem:[%s5445_s10 + $0x48] sm:$0xff] }
  0x32   : > { %4790 = vmatmul.mubr.msk.f32.gmra.mxu1 %vm344_vm0, %v5581_v40  ;;  %4808 = vmatprep.subr.mxu1 %v297_v41 }
  0x33   : > { %4766 = vmatmul.mubr.msk.f32.gmra.mxu0 %vm344_vm0, %v5589_v42  ;;  %4809 = vmatpush3.msra.mxu1 %v297_v41  ;;  %v5735_v41 = vld [vmem:[%s5445_s10 + $0x4a] sm:$0xff] }
  0x34   : > { %4872 = vmatprep.subr.mxu0 %v4091_v43  ;;  %4792 = vmatprep.mubr.msk.f32.mxu1 %vm344_vm0, %v5597_v44 }
  0x35   : > { %4873 = vmatpush3.msra.mxu0 %v4091_v43  ;;  %4768 = vmatprep.mubr.msk.f32.mxu0 %vm344_vm0, %v5602_v45  ;;  %v273_v43 = vld [vmem:[%s5445_s10 + $0x50] sm:$0xff] }
  0x36   : > { %4793 = vmatmul.mubr.msk.f32.gmra.mxu1 %vm344_vm0, %v5607_v46  ;;  %4810 = vmatprep.subr.mxu1 %v296_v47 }
  0x37   : > { %4769 = vmatmul.mubr.msk.f32.gmra.mxu0 %vm344_vm0, %v5615_v48  ;;  %4811 = vmatpush3.msra.mxu1 %v296_v47  ;;  %v5739_v47 = vld [vmem:[%s5445_s10 + $0x52] sm:$0xff] }
  0x38   : > { %4874 = vmatprep.subr.mxu0 %v4090_v49  ;;  %4795 = vmatprep.mubr.msk.f32.mxu1 %vm344_vm0, %v5623_v50 }
  0x39   : > { %4875 = vmatpush3.msra.mxu0 %v4090_v49  ;;  %4771 = vmatprep.mubr.msk.f32.mxu0 %vm344_vm0, %v5628_v51  ;;  %v4172_v49 = vld [vmem:[%s7117_s1 + $0x118] sm:$0xff] }
  0x3a   : > { %4796 = vmatmul.mubr.msk.f32.gmra.mxu1 %vm344_vm0, %v334_v52  ;;  %4812 = vmatprep.subr.mxu1 %v295_v53  ;;  %v4131_v52 = vld [vmem:[%s7117_s1 + $0xd0] sm:$0xff] }
  0x3b   : > { %4772 = vmatmul.mubr.msk.f32.gmra.mxu0 %vm344_vm0, %v5639_v54  ;;  %4813 = vmatpush3.msra.mxu1 %v295_v53  ;;  %v274_v53 = vld [vmem:[%s5445_s10 + $0x58] sm:$0xff] }
  0x3c   : > { %4876 = vmatprep.subr.mxu0 %v4089_v55  ;;  %4814 = vmatprep.mubr.msk.f32.mxu1 %vm344_vm0, %v263_v56  ;;  %v275_v56 = vld [vmem:[%s5445_s10 + $0x60] sm:$0xff] }
  0x3d   : > { %4877 = vmatpush3.msra.mxu0 %v4089_v55  ;;  %4878 = vmatprep.mubr.msk.f32.mxu0 %vm344_vm0, %v987_v57  ;;  %v5755_v55 = vld [vmem:[%s5445_s10 + $0x5a] sm:$0xff]  ;;  %v5759_v57 = vld [vmem:[%s5445_s10 + $0x62] sm:$0xff] }
  0x3e   : > { %4815 = vmatmul.mubr.msk.f32.vlgmr.msra.gmra.mxu1 %vm344_vm0, %v264_v58  ;;  %4926 = vmatprep.subr.mxu1 %v4136_v59  ;;  %v4171_v58 = vld [vmem:[%s7117_s1 + $0x110] sm:$0xff] }
  0x3f   : > { %4879 = vmatmul.mubr.msk.f32.vlgmr.msra.gmra.mxu0 %vm344_vm0, %v988_v60  ;;  %4927 = vmatpush3.msra.mxu1 %v4136_v59  ;;  %v4130_v59 = vld [vmem:[%s7117_s1 + $0xc8] sm:$0xff] }
  0x40   : > { %4990 = vmatprep.subr.mxu0 %v4176_v61  ;;  %4817 = vmatprep.mubr.msk.f32.mxu1 %vm344_vm0, %v265_v62  ;;  %v276_v60 = vld [vmem:[%s5445_s10 + $0x68] sm:$0xff]  ;;  %v277_v62 = vld [vmem:[%s5445_s10 + $0x70] sm:$0xff] }
  0x41   : > { %4991 = vmatpush3.msra.mxu0 %v4176_v61  ;;  %4881 = vmatprep.mubr.msk.f32.mxu0 %vm344_vm0, %v5664_v63  ;;  %v5775_v61 = vld [vmem:[%s5445_s10 + $0x6a] sm:$0xff] }
  0x42   : > { %4818 = vmatmul.mubr.msk.f32.gmra.mxu1 %vm344_vm0, %v266_v0  ;;  %4928 = vmatprep.subr.mxu1 %v4135_v1  ;;  %v5779_v0 = vld [vmem:[%s5445_s10 + $0x72] sm:$0xff] }
  0x43   : > { %4882 = vmatmul.mubr.msk.f32.gmra.mxu0 %vm344_vm0, %v5673_v2  ;;  %4820 = vmatprep.mubr.msk.f32.mxu1 %vm344_vm0, %v267_v3  ;;  %v4129_v3 = vld [vmem:[%s7117_s1 + $0xc0] sm:$0xff] }
  0x44   : > { %4884 = vmatprep.mubr.msk.f32.mxu0 %vm344_vm0, %v5679_v4  ;;  %4929 = vmatpush3.msra.mxu1 %v4135_v1  ;;  %v4170_v1 = vld [vmem:[%s7117_s1 + $0x108] sm:$0xff] }
  0x45   : > { %4992 = vmatprep.subr.mxu0 %v4175_v5  ;;  %4930 = vmatprep.subr.mxu1 %v4134_v6 }
  0x46   : > { %4821 = vmatmul.mubr.msk.f32.gmra.mxu1 %vm344_vm0, %v268_v7  ;;  %4993 = vmatpush3.msra.mxu0 %v4175_v5  ;;  %v278_v5 = vld [vmem:[%s5445_s10 + $0x78] sm:$0xff]  ;;  %v279_v7 = vld [vmem:[%s5445_s10 + $0x80] sm:$0xff] }
  0x47   : > { %4885 = vmatmul.mubr.msk.f32.gmra.mxu0 %vm344_vm0, %v5695_v9  ;;  %4823 = vmatprep.mubr.msk.f32.mxu1 %vm344_vm0, %v269_v11  ;;  %v5799_v11 = vld [vmem:[%s5445_s10 + $0x82] sm:$0xff] }
  0x48   : > { %4887 = vmatprep.mubr.msk.f32.mxu0 %vm344_vm0, %v5699_v12  ;;  %4931 = vmatpush3.msra.mxu1 %v4134_v6  ;;  %v5795_v6 = vld [vmem:[%s5445_s10 + $0x7a] sm:$0xff] }
  0x49   : > { %4994 = vmatprep.subr.mxu0 %v4174_v13  ;;  %4932 = vmatprep.subr.mxu1 %v4133_v17 }
  0x4a   : > { %4824 = vmatmul.mubr.msk.f32.gmra.mxu1 %vm344_vm0, %v270_v19  ;;  %4995 = vmatpush3.msra.mxu0 %v4174_v13  ;;  %v4169_v13 = vld [vmem:[%s7117_s1 + $0x100] sm:$0xff]  ;;  %v280_v19 = vld [vmem:[%s5445_s10 + $0x88] sm:$0xff] }
  0x4b   : > { %4888 = vmatmul.mubr.msk.f32.gmra.mxu0 %vm344_vm0, %v5715_v23  ;;  %4826 = vmatprep.mubr.msk.f32.mxu1 %vm344_vm0, %v271_v25  ;;  %v5817_v25 = vld [vmem:[%s5445_s10 + $0x8a] sm:$0xff] }
  0x4c   : > { %4890 = vmatprep.mubr.msk.f32.mxu0 %vm344_vm0, %v5719_v29  ;;  %4933 = vmatpush3.msra.mxu1 %v4133_v17  ;;  %v5808_v17 = vld [vmem:[%s7117_s1 + $0x178] sm:$0xff] }
  0x4d   : > { %4996 = vmatprep.subr.mxu0 %v4173_v31  ;;  %4934 = vmatprep.subr.mxu1 %v4132_v35 }
  0x4e   : > { %4827 = vmatmul.mubr.msk.f32.gmra.mxu1 %vm344_vm0, %v272_v37  ;;  %4997 = vmatpush3.msra.mxu0 %v4173_v31  ;;  %v281_v31 = vld [vmem:[%s5445_s10 + $0x90] sm:$0xff]  ;;  %v5827_v37 = vld [vmem:[%s7117_s1 + $0x1b8] sm:$0xff] }
  0x4f   : > { %4891 = vmatmul.mubr.msk.f32.gmra.mxu0 %vm344_vm0, %v5735_v41  ;;  %4829 = vmatprep.mubr.msk.f32.mxu1 %vm344_vm0, %v273_v43  ;;  %v282_v43 = vld [vmem:[%s5445_s10 + $0x98] sm:$0xff] }
  0x50   : > { %4893 = vmatprep.mubr.msk.f32.mxu0 %vm344_vm0, %v5739_v47  ;;  %4935 = vmatpush3.msra.mxu1 %v4132_v35  ;;  %v5821_v35 = vld [vmem:[%s5445_s10 + $0x92] sm:$0xff] }
  0x51   : > { %4998 = vmatprep.subr.mxu0 %v4172_v49  ;;  %4936 = vmatprep.subr.mxu1 %v4131_v52 }
  0x52   : > { %4830 = vmatmul.mubr.msk.f32.gmra.mxu1 %vm344_vm0, %v274_v53  ;;  %4999 = vmatpush3.msra.mxu0 %v4172_v49  ;;  %v5837_v49 = vld [vmem:[%s5445_s10 + $0x9a] sm:$0xff]  ;;  %v5842_v53 = vld [vmem:[%s5445_s10 + $0xa2] sm:$0xff] }
  0x53   : > { %4894 = vmatmul.mubr.msk.f32.gmra.mxu0 %vm344_vm0, %v5755_v55  ;;  %4832 = vmatprep.mubr.msk.f32.mxu1 %vm344_vm0, %v275_v56  ;;  %v284_v56 = vld [vmem:[%s5445_s10 + $0xa8] sm:$0xff] }
  0x54   : > { %4896 = vmatprep.mubr.msk.f32.mxu0 %vm344_vm0, %v5759_v57  ;;  %4937 = vmatpush3.msra.mxu1 %v4131_v52  ;;  %v283_v52 = vld [vmem:[%s5445_s10 + $0xa0] sm:$0xff] }
  0x55   : > { %5000 = vmatprep.subr.mxu0 %v4171_v58  ;;  %4938 = vmatprep.subr.mxu1 %v4130_v59 }
  0x56   : > { %4833 = vmatmul.mubr.msk.f32.gmra.mxu1 %vm344_vm0, %v276_v60  ;;  %5001 = vmatpush3.msra.mxu0 %v4171_v58  ;;  %v5852_v58 = vld [vmem:[%s5445_s10 + $0xaa] sm:$0xff]  ;;  %v5856_v60 = vld [vmem:[%s5445_s10 + $0xb2] sm:$0xff] }
  0x57   : > { %4897 = vmatmul.mubr.msk.f32.gmra.mxu0 %vm344_vm0, %v5775_v61  ;;  %4835 = vmatprep.mubr.msk.f32.mxu1 %vm344_vm0, %v277_v62  ;;  %v286_v62 = vld [vmem:[%s5445_s10 + $0xb8] sm:$0xff] }
  0x58   : > { %4899 = vmatprep.mubr.msk.f32.mxu0 %vm344_vm0, %v5779_v0  ;;  %4939 = vmatpush3.msra.mxu1 %v4130_v59  ;;  %v285_v59 = vld [vmem:[%s5445_s10 + $0xb0] sm:$0xff] }
  0x59   : > { %5002 = vmatprep.subr.mxu0 %v4170_v1  ;;  %4940 = vmatprep.subr.mxu1 %v4129_v3 }
  0x5a   : > { %4836 = vmatmul.mubr.msk.f32.gmra.mxu1 %vm344_vm0, %v278_v5  ;;  %5003 = vmatpush3.msra.mxu0 %v4170_v1  ;;  %v5866_v1 = vld [vmem:[%s5445_s10 + $0xba] sm:$0xff]  ;;  %v5870_v5 = vld [vmem:[%s5445_s10 + $0xc2] sm:$0xff] }
  0x5b   : > { %4900 = vmatmul.mubr.msk.f32.gmra.mxu0 %vm344_vm0, %v5795_v6  ;;  %4838 = vmatprep.mubr.msk.f32.mxu1 %vm344_vm0, %v279_v7  ;;  %v288_v7 = vld [vmem:[%s5445_s10 + $0xc8] sm:$0xff] }
  0x5c   : > { %4902 = vmatprep.mubr.msk.f32.mxu0 %vm344_vm0, %v5799_v11  ;;  %4941 = vmatpush3.msra.mxu1 %v4129_v3  ;;  %v287_v3 = vld [vmem:[%s5445_s10 + $0xc0] sm:$0xff] }
  0x5d   : > { %5004 = vmatprep.subr.mxu0 %v4169_v13  ;;  %5054 = vmatprep.subr.mxu1 %v5808_v17 }
  0x5e   : > { %4839 = vmatmul.mubr.msk.f32.gmra.mxu1 %vm344_vm0, %v280_v19  ;;  %5005 = vmatpush3.msra.mxu0 %v4169_v13  ;;  %v5880_v13 = vld [vmem:[%s5445_s10 + $0xca] sm:$0xff] }
  0x5f   : > { %4903 = vmatmul.mubr.msk.f32.gmra.mxu0 %vm344_vm0, %v5817_v25  ;;  %4841 = vmatprep.mubr.msk.f32.mxu1 %vm344_vm0, %v281_v31  ;;  %v289_v19 = vld [vmem:[%s5445_s10 + $0xd0] sm:$0xff] }
  0x60   : > { %4905 = vmatprep.mubr.msk.f32.mxu0 %vm344_vm0, %v5821_v35  ;;  %5118 = vmatprep.subr.mxu0 %v5827_v37  ;;  %v5884_v31 = vld [vmem:[%s5445_s10 + $0xd2] sm:$0xff] }
  0x62   : > { %4842 = vmatmul.mubr.msk.f32.gmra.mxu1 %vm344_vm0, %v282_v43  ;;  %v290_v43 = vld [vmem:[%s5445_s10 + $0xd8] sm:$0xff] }
  0x63   : > { %4906 = vmatmul.mubr.msk.f32.gmra.mxu0 %vm344_vm0, %v5837_v49  ;;  %4844 = vmatprep.mubr.msk.f32.mxu1 %vm344_vm0, %v283_v52  ;;  %v5894_v52 = vld [vmem:[%s5445_s10 + $0xda] sm:$0xff] }
  0x64   : > { %4908 = vmatprep.mubr.msk.f32.mxu0 %vm344_vm0, %v5842_v53 }
  0x66   : > { %4845 = vmatmul.mubr.msk.f32.gmra.mxu1 %vm344_vm0, %v284_v56  ;;  %v291_v56 = vld [vmem:[%s5445_s10 + $0xe0] sm:$0xff] }
  0x67   : > { %4909 = vmatmul.mubr.msk.f32.gmra.mxu0 %vm344_vm0, %v5852_v58  ;;  %4847 = vmatprep.mubr.msk.f32.mxu1 %vm344_vm0, %v285_v59  ;;  %v5898_v59 = vld [vmem:[%s5445_s10 + $0xe2] sm:$0xff] }
  0x68   : > { %4911 = vmatprep.mubr.msk.f32.mxu0 %vm344_vm0, %v5856_v60 }
  0x6a   : > { %4848 = vmatmul.mubr.msk.f32.gmra.mxu1 %vm344_vm0, %v286_v62  ;;  %v292_v62 = vld [vmem:[%s5445_s10 + $0xe8] sm:$0xff] }
  0x6b   : > { %4912 = vmatmul.mubr.msk.f32.gmra.mxu0 %vm344_vm0, %v5866_v1  ;;  %4850 = vmatprep.mubr.msk.f32.mxu1 %vm344_vm0, %v287_v3  ;;  %v5908_v3 = vld [vmem:[%s5445_s10 + $0xea] sm:$0xff] }
  0x6c   : > { %4914 = vmatprep.mubr.msk.f32.mxu0 %vm344_vm0, %v5870_v5 }
  0x6e   : > { %4851 = vmatmul.mubr.msk.f32.gmra.mxu1 %vm344_vm0, %v288_v7  ;;  %v293_v7 = vld [vmem:[%s5445_s10 + $0xf0] sm:$0xff] }
  0x6f   : > { %4915 = vmatmul.mubr.msk.f32.gmra.mxu0 %vm344_vm0, %v5880_v13  ;;  %4853 = vmatprep.mubr.msk.f32.mxu1 %vm344_vm0, %v289_v19  ;;  %v5912_v19 = vld [vmem:[%s5445_s10 + $0xf2] sm:$0xff] }
  0x70   : > { %4917 = vmatprep.mubr.msk.f32.mxu0 %vm344_vm0, %v5884_v31 }
  0x72   : > { %4854 = vmatmul.mubr.msk.f32.gmra.mxu1 %vm344_vm0, %v290_v43  ;;  %v294_v43 = vld [vmem:[%s5445_s10 + $0xf8] sm:$0x7f] }
  0x73   : > { %4918 = vmatmul.mubr.msk.f32.gmra.mxu0 %vm344_vm0, %v5894_v52  ;;  %4856 = vmatprep.mubr.msk.f32.mxu1 %vm344_vm0, %v291_v56  ;;  %v1018_v56 = vld [vmem:[%s5445_s10 + $0xfa] sm:$0x7f] }
  0x74   : > { %4920 = vmatprep.mubr.msk.f32.mxu0 %vm344_vm0, %v5898_v59 }
  0x76   : > { %4857 = vmatmul.mubr.msk.f32.gmra.mxu1 %vm344_vm0, %v292_v62  ;;  %v4215_v62 = vld [vmem:[%s7117_s1 + $0x170] sm:$0xff] }
  0x77   : > { %4921 = vmatmul.mubr.msk.f32.gmra.mxu0 %vm344_vm0, %v5908_v3  ;;  %4859 = vmatprep.mubr.msk.f32.mxu1 %vm344_vm0, %v293_v7  ;;  %v4255_v7 = vld [vmem:[%s7117_s1 + $0x1b0] sm:$0xff] }
  0x78   : > { %4923 = vmatprep.mubr.msk.f32.mxu0 %vm344_vm0, %v5912_v19 }
  0x7a   : > { %4860 = vmatmul.mubr.msk.f32.gmra.mxu1 %vm344_vm0, %v294_v43  ;;  %v6213_v43 = vld [vmem:[%s5445_s10 + $0x73] sm:$0xff] }
  0x7b   : > { %4924 = vmatmul.mubr.msk.f32.gmra.mxu0 %vm344_vm0, %v1018_v56  ;;  %4942 = vmatprep.mubr.msk.f32.mxu1 %vm344_vm0, %v5473_v15  ;;  %v4214_v15 = vld [vmem:[%s7117_s1 + $0x168] sm:$0xff] }
  0x7c   : > { %5006 = vmatprep.mubr.msk.f32.mxu0 %vm344_vm0, %v5664_v63  ;;  %v4334_v63 = vld [vmem:[%s7117_s1 + $0x228] sm:$0xff] }
  0x7d   : > { %v4330_v56 = vld [vmem:[%s7117_s1 + $0x208] sm:$0xff] }
  0x7e   : > { %4943 = vmatmul.mubr.msk.f32.vlgmr.msra.gmra.mxu1 %vm344_vm0, %v5485_v18  ;;  %v4254_v18 = vld [vmem:[%s7117_s1 + $0x1a8] sm:$0xff] }
  0x7f   : > { %5007 = vmatmul.mubr.msk.f32.vlgmr.msra.gmra.mxu0 %vm344_vm0, %v5673_v2  ;;  %5055 = vmatpush3.msra.mxu1 %v5808_v17  ;;  %v6153_v2 = vld [vmem:[%s5445_s10 + $0x43] sm:$0xff] }
  0x80   : > { %4945 = vmatprep.mubr.msk.f32.mxu1 %vm344_vm0, %v5498_v21  ;;  %5119 = vmatpush3.msra.mxu0 %v5827_v37  ;;  %v4213_v21 = vld [vmem:[%s7117_s1 + $0x160] sm:$0xff]  ;;  %v4331_v37 = vld [vmem:[%s7117_s1 + $0x210] sm:$0xff] }
  0x81   : > { %5009 = vmatprep.mubr.msk.f32.mxu0 %vm344_vm0, %v5679_v4  ;;  %5056 = vmatprep.subr.mxu1 %v4215_v62  ;;  %v6193_v17 = vld [vmem:[%s5445_s10 + $0x63] sm:$0xff] }
  0x82   : > { %4946 = vmatmul.mubr.msk.f32.gmra.mxu1 %vm344_vm0, %v5511_v24  ;;  %5120 = vmatprep.subr.mxu0 %v4255_v7  ;;  %v4253_v24 = vld [vmem:[%s7117_s1 + $0x1a0] sm:$0xff] }
  0x83   : > { %5010 = vmatmul.mubr.msk.f32.gmra.mxu0 %vm344_vm0, %v5695_v9  ;;  %4948 = vmatprep.mubr.msk.f32.mxu1 %vm344_vm0, %v5524_v27  ;;  %v4212_v27 = vld [vmem:[%s7117_s1 + $0x158] sm:$0xff] }
  0x84   : > { %5012 = vmatprep.mubr.msk.f32.mxu0 %vm344_vm0, %v5699_v12  ;;  %5057 = vmatpush3.msra.mxu1 %v4215_v62  ;;  %v6233_v62 = vld [vmem:[%s5445_s10 + $0x83] sm:$0xff] }
  0x85   : > { %5121 = vmatpush3.msra.mxu0 %v4255_v7  ;;  %5058 = vmatprep.subr.mxu1 %v4214_v15  ;;  %v4329_v7 = vld [vmem:[%s7117_s1 + $0x200] sm:$0xff] }
  0x86   : > { %4949 = vmatmul.mubr.msk.f32.gmra.mxu1 %vm344_vm0, %v5537_v30  ;;  %5122 = vmatprep.subr.mxu0 %v4254_v18  ;;  %v4252_v30 = vld [vmem:[%s7117_s1 + $0x198] sm:$0xff] }
  0x87   : > { %5013 = vmatmul.mubr.msk.f32.gmra.mxu0 %vm344_vm0, %v5715_v23  ;;  %4951 = vmatprep.mubr.msk.f32.mxu1 %vm344_vm0, %v5550_v33  ;;  %v4211_v33 = vld [vmem:[%s7117_s1 + $0x150] sm:$0xff] }
  0x88   : > { %5015 = vmatprep.mubr.msk.f32.mxu0 %vm344_vm0, %v5719_v29  ;;  %5059 = vmatpush3.msra.mxu1 %v4214_v15  ;;  %v6253_v15 = vld [vmem:[%s5445_s10 + $0x93] sm:$0xff] }
  0x89   : > { %5123 = vmatpush3.msra.mxu0 %v4254_v18  ;;  %5060 = vmatprep.subr.mxu1 %v4213_v21 }
  0x8a   : > { %4952 = vmatmul.mubr.msk.f32.gmra.mxu1 %vm344_vm0, %v5563_v36  ;;  %5124 = vmatprep.subr.mxu0 %v4253_v24  ;;  %v4251_v36 = vld [vmem:[%s7117_s1 + $0x190] sm:$0xff] }
  0x8b   : > { %5016 = vmatmul.mubr.msk.f32.gmra.mxu0 %vm344_vm0, %v5735_v41  ;;  %4954 = vmatprep.mubr.msk.f32.mxu1 %vm344_vm0, %v5576_v39  ;;  %v4210_v39 = vld [vmem:[%s7117_s1 + $0x148] sm:$0xff] }
  0x8c   : > { %5018 = vmatprep.mubr.msk.f32.mxu0 %vm344_vm0, %v5739_v47  ;;  %5061 = vmatpush3.msra.mxu1 %v4213_v21 }
  0x8d   : > { %5125 = vmatpush3.msra.mxu0 %v4253_v24  ;;  %5062 = vmatprep.subr.mxu1 %v4212_v27  ;;  %v6287_v24 = vld [vmem:[%s5445_s10 + $0xb3] sm:$0xff] }
  0x8e   : > { %4955 = vmatmul.mubr.msk.f32.gmra.mxu1 %vm344_vm0, %v5589_v42  ;;  %5126 = vmatprep.subr.mxu0 %v4252_v30  ;;  %v4250_v42 = vld [vmem:[%s7117_s1 + $0x188] sm:$0xff] }
  0x8f   : > { %5019 = vmatmul.mubr.msk.f32.gmra.mxu0 %vm344_vm0, %v5755_v55  ;;  %4957 = vmatprep.mubr.msk.f32.mxu1 %vm344_vm0, %v5602_v45  ;;  %v4209_v45 = vld [vmem:[%s7117_s1 + $0x140] sm:$0xff] }
  0x90   : > { %5021 = vmatprep.mubr.msk.f32.mxu0 %vm344_vm0, %v5759_v57  ;;  %5063 = vmatpush3.msra.mxu1 %v4212_v27 }
  0x91   : > { %5127 = vmatpush3.msra.mxu0 %v4252_v30  ;;  %5064 = vmatprep.subr.mxu1 %v4211_v33 }
  0x92   : > { %4958 = vmatmul.mubr.msk.f32.gmra.mxu1 %vm344_vm0, %v5615_v48  ;;  %5128 = vmatprep.subr.mxu0 %v4251_v36  ;;  %v4249_v48 = vld [vmem:[%s7117_s1 + $0x180] sm:$0xff] }
  0x93   : > { %5022 = vmatmul.mubr.msk.f32.gmra.mxu0 %vm344_vm0, %v5775_v61  ;;  %4960 = vmatprep.mubr.msk.f32.mxu1 %vm344_vm0, %v5628_v51  ;;  %v4296_v51 = vld [vmem:[%s7117_s1 + $0x1f8] sm:$0xff] }
  0x94   : > { %5024 = vmatprep.mubr.msk.f32.mxu0 %vm344_vm0, %v5779_v0  ;;  %5065 = vmatpush3.msra.mxu1 %v4211_v33 }
  0x95   : > { %5129 = vmatpush3.msra.mxu0 %v4251_v36  ;;  %5066 = vmatprep.subr.mxu1 %v4210_v39  ;;  %v6309_v36 = vld [vmem:[%s5445_s10 + $0xc3] sm:$0xff] }
  0x96   : > { %4961 = vmatmul.mubr.msk.f32.gmra.mxu1 %vm344_vm0, %v5639_v54  ;;  %5130 = vmatprep.subr.mxu0 %v4250_v42  ;;  %v6145_v54 = vld [vmem:[%s5445_s10 + $0x3b] sm:$0xff] }
  0x97   : > { %5025 = vmatmul.mubr.msk.f32.gmra.mxu0 %vm344_vm0, %v5795_v6  ;;  %4963 = vmatprep.mubr.msk.f32.mxu1 %vm344_vm0, %v5451_v8  ;;  %v4336_v8 = vld [vmem:[%s7117_s1 + $0x238] sm:$0xff] }
  0x98   : > { %5027 = vmatprep.mubr.msk.f32.mxu0 %vm344_vm0, %v5799_v11  ;;  %5067 = vmatpush3.msra.mxu1 %v4210_v39 }
  0x99   : > { %5131 = vmatpush3.msra.mxu0 %v4250_v42  ;;  %5068 = vmatprep.subr.mxu1 %v4209_v45 }
  0x9a   : > { %4964 = vmatmul.mubr.msk.f32.gmra.mxu1 %vm344_vm0, %v5455_v10  ;;  %5132 = vmatprep.subr.mxu0 %v4249_v48  ;;  %v1410_v10 = vld [vmem:[%s5445_s10 + $0xf9] sm:$0xff] }
  0x9b   : > { %5028 = vmatmul.mubr.msk.f32.gmra.mxu0 %vm344_vm0, %v5817_v25  ;;  %4966 = vmatprep.mubr.msk.f32.mxu1 %vm344_vm0, %v5468_v14  ;;  %v6092_v14 = vld [vmem:[%s5445_s10 + $0xfa] sm:$0xff] }
  0x9c   : > { %5030 = vmatprep.mubr.msk.f32.mxu0 %vm344_vm0, %v5821_v35  ;;  %5069 = vmatpush3.msra.mxu1 %v4209_v45 }
  0x9d   : > { %5133 = vmatpush3.msra.mxu0 %v4249_v48  ;;  %5182 = vmatprep.subr.mxu1 %v4296_v51  ;;  %v6331_v48 = vld [vmem:[%s5445_s10 + $0xd3] sm:$0xff] }
  0x9e   : > { %4967 = vmatmul.mubr.msk.f32.gmra.mxu1 %vm344_vm0, %v5477_v16  ;;  %5246 = vmatprep.subr.mxu0 %v4336_v8  ;;  %v1411_v16 = vld [vmem:[%s5445_s10 + $0x101] sm:$0xff] }
  0x9f   : > { %5031 = vmatmul.mubr.msk.f32.gmra.mxu0 %vm344_vm0, %v5837_v49  ;;  %4969 = vmatprep.mubr.msk.f32.mxu1 %vm344_vm0, %v5493_v20  ;;  %v6096_v20 = vld [vmem:[%s5445_s10 + $0x102] sm:$0xff] }
  0xa0   : > { %5033 = vmatprep.mubr.msk.f32.mxu0 %vm344_vm0, %v5842_v53 }
  0xa2   : > { %4970 = vmatmul.mubr.msk.f32.gmra.mxu1 %vm344_vm0, %v5503_v22  ;;  %v1412_v22 = vld [vmem:[%s5445_s10 + $0x109] sm:$0x7f] }
  0xa3   : > { %5034 = vmatmul.mubr.msk.f32.gmra.mxu0 %vm344_vm0, %v5852_v58  ;;  %4972 = vmatprep.mubr.msk.f32.mxu1 %vm344_vm0, %v5519_v26  ;;  %v1806_v26 = vld [vmem:[%s5445_s10 + $0x10a] sm:$0x7f] }
  0xa4   : > { %5036 = vmatprep.mubr.msk.f32.mxu0 %vm344_vm0, %v5856_v60 }
  0xa6   : > { %4973 = vmatmul.mubr.msk.f32.gmra.mxu1 %vm344_vm0, %v5529_v28  ;;  %v2169_v28 = vld [vmem:[%s5445_s10 + $0x13] sm:$0xff] }
  0xa7   : > { %5037 = vmatmul.mubr.msk.f32.gmra.mxu0 %vm344_vm0, %v5866_v1  ;;  %4975 = vmatprep.mubr.msk.f32.mxu1 %vm344_vm0, %v5545_v32  ;;  %v2170_v32 = vld [vmem:[%s5445_s10 + $0x1b] sm:$0xff] }
  0xa8   : > { %5039 = vmatprep.mubr.msk.f32.mxu0 %vm344_vm0, %v5870_v5 }
  0xaa   : > { %4976 = vmatmul.mubr.msk.f32.gmra.mxu1 %vm344_vm0, %v5555_v34  ;;  %v6114_v34 = vld [vmem:[%s5445_s10 + $0x23] sm:$0xff] }
  0xab   : > { %5040 = vmatmul.mubr.msk.f32.gmra.mxu0 %vm344_vm0, %v5880_v13  ;;  %4978 = vmatprep.mubr.msk.f32.mxu1 %vm344_vm0, %v5571_v38  ;;  %v4295_v38 = vld [vmem:[%s7117_s1 + $0x1f0] sm:$0xff] }
  0xac   : > { %5042 = vmatprep.mubr.msk.f32.mxu0 %vm344_vm0, %v5884_v31 }
  0xae   : > { %4979 = vmatmul.mubr.msk.f32.gmra.mxu1 %vm344_vm0, %v5581_v40  ;;  %v6123_v40 = vld [vmem:[%s5445_s10 + $0x2b] sm:$0xff] }
  0xaf   : > { %5043 = vmatmul.mubr.msk.f32.gmra.mxu0 %vm344_vm0, %v5894_v52  ;;  %4981 = vmatprep.mubr.msk.f32.mxu1 %vm344_vm0, %v5597_v44  ;;  %v4335_v44 = vld [vmem:[%s7117_s1 + $0x230] sm:$0xff] }
  0xb0   : > { %5045 = vmatprep.mubr.msk.f32.mxu0 %vm344_vm0, %v5898_v59 }
  0xb2   : > { %4982 = vmatmul.mubr.msk.f32.gmra.mxu1 %vm344_vm0, %v5607_v46  ;;  %v6131_v46 = vld [vmem:[%s5445_s10 + $0x33] sm:$0xff] }
  0xb3   : > { %5046 = vmatmul.mubr.msk.f32.gmra.mxu0 %vm344_vm0, %v5908_v3  ;;  %4984 = vmatprep.mubr.msk.f32.mxu1 %vm344_vm0, %v5623_v50  ;;  %v4294_v50 = vld [vmem:[%s7117_s1 + $0x1e8] sm:$0xff] }
  0xb4   : > { %5048 = vmatprep.mubr.msk.f32.mxu0 %vm344_vm0, %v5912_v19 }
  0xb6   : > { %4985 = vmatmul.mubr.msk.f32.gmra.mxu1 %vm344_vm0, %v1410_v10 }
  0xb7   : > { %5049 = vmatmul.mubr.msk.f32.gmra.mxu0 %vm344_vm0, %v6092_v14  ;;  %4987 = vmatprep.mubr.msk.f32.mxu1 %vm344_vm0, %v1411_v16  ;;  %v6353_v16 = vld [vmem:[%s5445_s10 + $0xe3] sm:$0xff] }
  0xb8   : > { %5051 = vmatprep.mubr.msk.f32.mxu0 %vm344_vm0, %v6096_v20 }
  0xba   : > { %4988 = vmatmul.mubr.msk.f32.gmra.mxu1 %vm344_vm0, %v1412_v22 }
  0xbb   : > { %5052 = vmatmul.mubr.msk.f32.gmra.mxu0 %vm344_vm0, %v1806_v26  ;;  %5070 = vmatprep.mubr.msk.f32.mxu1 %vm344_vm0, %v2169_v28 }
  0xbc   : > { %5134 = vmatprep.mubr.msk.f32.mxu0 %vm344_vm0, %v5679_v4  ;;  %v4293_v4 = vld [vmem:[%s7117_s1 + $0x1e0] sm:$0xff] }
  0xbe   : > { %5071 = vmatmul.mubr.msk.f32.vlgmr.msra.gmra.mxu1 %vm344_vm0, %v2170_v32  ;;  %v6375_v32 = vld [vmem:[%s5445_s10 + $0xf3] sm:$0xff] }
  0xbf   : > { %5135 = vmatmul.mubr.msk.f32.vlgmr.msra.gmra.mxu0 %vm344_vm0, %v5695_v9  ;;  %5183 = vmatpush3.msra.mxu1 %v4296_v51  ;;  %v6165_v9 = vld [vmem:[%s5445_s10 + $0x4b] sm:$0xff] }
  0xc0   : > { %5073 = vmatprep.mubr.msk.f32.mxu1 %vm344_vm0, %v6114_v34  ;;  %5247 = vmatpush3.msra.mxu0 %v4336_v8 }
  0xc1   : > { %5137 = vmatprep.mubr.msk.f32.mxu0 %vm344_vm0, %v5699_v12  ;;  %5184 = vmatprep.subr.mxu1 %v4295_v38  ;;  %v4333_v12 = vld [vmem:[%s7117_s1 + $0x220] sm:$0xff] }
  0xc2   : > { %5074 = vmatmul.mubr.msk.f32.gmra.mxu1 %vm344_vm0, %v6123_v40  ;;  %5248 = vmatprep.subr.mxu0 %v4335_v44 }
  0xc3   : > { %5138 = vmatmul.mubr.msk.f32.gmra.mxu0 %vm344_vm0, %v5715_v23  ;;  %5076 = vmatprep.mubr.msk.f32.mxu1 %vm344_vm0, %v6131_v46  ;;  %v6173_v23 = vld [vmem:[%s5445_s10 + $0x53] sm:$0xff] }
  0xc4   : > { %5140 = vmatprep.mubr.msk.f32.mxu0 %vm344_vm0, %v5719_v29  ;;  %5185 = vmatpush3.msra.mxu1 %v4295_v38  ;;  %v4292_v29 = vld [vmem:[%s7117_s1 + $0x1d8] sm:$0xff] }
  0xc5   : > { %5249 = vmatpush3.msra.mxu0 %v4335_v44  ;;  %5186 = vmatprep.subr.mxu1 %v4294_v50 }
  0xc6   : > { %5077 = vmatmul.mubr.msk.f32.gmra.mxu1 %vm344_vm0, %v6145_v54  ;;  %5250 = vmatprep.subr.mxu0 %v4334_v63 }
  0xc7   : > { %5141 = vmatmul.mubr.msk.f32.gmra.mxu0 %vm344_vm0, %v5735_v41  ;;  %5079 = vmatprep.mubr.msk.f32.mxu1 %vm344_vm0, %v6153_v2  ;;  %v6185_v41 = vld [vmem:[%s5445_s10 + $0x5b] sm:$0xff] }
  0xc8   : > { %5143 = vmatprep.mubr.msk.f32.mxu0 %vm344_vm0, %v5739_v47  ;;  %5187 = vmatpush3.msra.mxu1 %v4294_v50  ;;  %v4332_v47 = vld [vmem:[%s7117_s1 + $0x218] sm:$0xff] }
  0xc9   : > { %5251 = vmatpush3.msra.mxu0 %v4334_v63  ;;  %5188 = vmatprep.subr.mxu1 %v4293_v4  ;;  %v2592_v63 = vld [vmem:[%s5445_s10 + $0x10a] sm:$0xff] }
  0xca   : > { %5080 = vmatmul.mubr.msk.f32.gmra.mxu1 %vm344_vm0, %v6165_v9  ;;  %5252 = vmatprep.subr.mxu0 %v4333_v12 }
  0xcb   : > { %5144 = vmatmul.mubr.msk.f32.gmra.mxu0 %vm344_vm0, %v5755_v55  ;;  %5082 = vmatprep.mubr.msk.f32.mxu1 %vm344_vm0, %v6173_v23  ;;  %v4291_v55 = vld [vmem:[%s7117_s1 + $0x1d0] sm:$0xff] }
  0xcc   : > { %5146 = vmatprep.mubr.msk.f32.mxu0 %vm344_vm0, %v5759_v57  ;;  %5189 = vmatpush3.msra.mxu1 %v4293_v4  ;;  %v6205_v57 = vld [vmem:[%s5445_s10 + $0x6b] sm:$0xff]  ;;  %v6398_v4 = vld [vmem:[%s5445_s10 + $0x103] sm:$0xff] }
  0xcd   : > { %5253 = vmatpush3.msra.mxu0 %v4333_v12  ;;  %5190 = vmatprep.subr.mxu1 %v4292_v29  ;;  %7124 = vst [vmem:[#allocation4_spill] sm:$0xff] %v6398_v4 }
  0xce   : > { %5083 = vmatmul.mubr.msk.f32.gmra.mxu1 %vm344_vm0, %v6185_v41  ;;  %5254 = vmatprep.subr.mxu0 %v4332_v47 }
  0xcf   : > { %5147 = vmatmul.mubr.msk.f32.gmra.mxu0 %vm344_vm0, %v5775_v61  ;;  %5085 = vmatprep.mubr.msk.f32.mxu1 %vm344_vm0, %v6193_v17  ;;  %v4290_v61 = vld [vmem:[%s7117_s1 + $0x1c8] sm:$0xff] }
  0xd0   : > { %5149 = vmatprep.mubr.msk.f32.mxu0 %vm344_vm0, %v5779_v0  ;;  %5191 = vmatpush3.msra.mxu1 %v4292_v29  ;;  %v6225_v0 = vld [vmem:[%s5445_s10 + $0x7b] sm:$0xff]  ;;  %v2593_v29 = vld [vmem:[%s5445_s10 + $0x112] sm:$0xff] }
  0xd1   : > { %5255 = vmatpush3.msra.mxu0 %v4332_v47  ;;  %5192 = vmatprep.subr.mxu1 %v4291_v55 }
  0xd2   : > { %5086 = vmatmul.mubr.msk.f32.gmra.mxu1 %vm344_vm0, %v6205_v57  ;;  %5256 = vmatprep.subr.mxu0 %v4331_v37 }
  0xd3   : > { %5150 = vmatmul.mubr.msk.f32.gmra.mxu0 %vm344_vm0, %v5795_v6  ;;  %5088 = vmatprep.mubr.msk.f32.mxu1 %vm344_vm0, %v6213_v43  ;;  %v4289_v6 = vld [vmem:[%s7117_s1 + $0x1c0] sm:$0xff] }
  0xd4   : > { %5152 = vmatprep.mubr.msk.f32.mxu0 %vm344_vm0, %v5799_v11  ;;  %5193 = vmatpush3.msra.mxu1 %v4291_v55  ;;  %v6245_v11 = vld [vmem:[%s5445_s10 + $0x8b] sm:$0xff] }
  0xd5   : > { %5257 = vmatpush3.msra.mxu0 %v4331_v37  ;;  %5194 = vmatprep.subr.mxu1 %v4290_v61  ;;  %v2594_v37 = vld [vmem:[%s5445_s10 + $0x11a] sm:$0x7f] }
  0xd6   : > { %5089 = vmatmul.mubr.msk.f32.gmra.mxu1 %vm344_vm0, %v6225_v0  ;;  %5258 = vmatprep.subr.mxu0 %v4330_v56 }
  0xd7   : > { %5153 = vmatmul.mubr.msk.f32.gmra.mxu0 %vm344_vm0, %v5817_v25  ;;  %5091 = vmatprep.mubr.msk.f32.mxu1 %vm344_vm0, %v6233_v62  ;;  %v6262_v25 = vld [vmem:[%s5445_s10 + $0x9b] sm:$0xff] }
  0xd8   : > { %5155 = vmatprep.mubr.msk.f32.mxu0 %vm344_vm0, %v5821_v35  ;;  %5195 = vmatpush3.msra.mxu1 %v4290_v61  ;;  %v6267_v35 = vld [vmem:[%s5445_s10 + $0xa3] sm:$0xff] }
  0xd9   : > { %5259 = vmatpush3.msra.mxu0 %v4330_v56  ;;  %5196 = vmatprep.subr.mxu1 %v4289_v6  ;;  %v3351_v56 = vld [vmem:[%s5445_s10 + $0x24] sm:$0xff] }
  0xda   : > { %5092 = vmatmul.mubr.msk.f32.gmra.mxu1 %vm344_vm0, %v6245_v11  ;;  %5260 = vmatprep.subr.mxu0 %v4329_v7 }
  0xdb   : > { %5156 = vmatmul.mubr.msk.f32.gmra.mxu0 %vm344_vm0, %v5837_v49  ;;  %5094 = vmatprep.mubr.msk.f32.mxu1 %vm344_vm0, %v6253_v15  ;;  %v6280_v49 = vld [vmem:[%s5445_s10 + $0xab] sm:$0xff] }
  0xdc   : > { %5158 = vmatprep.mubr.msk.f32.mxu0 %vm344_vm0, %v5842_v53  ;;  %5197 = vmatpush3.msra.mxu1 %v4289_v6 }
  0xdd   : > { %5261 = vmatpush3.msra.mxu0 %v4329_v7 }
  0xde   : > { %v6269_v18 = vpop.f32.mrf.mxu1  ;;  %5095 = vmatmul.mubr.msk.f32.gmra.mxu1 %vm344_vm0, %v6262_v25 }
  0xdf   : > { %v6273_v21 = vpop.f32.mrf.mxu0  ;;  %5159 = vmatmul.mubr.msk.f32.gmra.mxu0 %vm344_vm0, %v5852_v58  ;;  %5097 = vmatprep.mubr.msk.f32.mxu1 %vm344_vm0, %v6267_v35 }
  0xe0   : > { %v6282_v53 = vpop.f32.mrf.mxu1  ;;  %5161 = vmatprep.mubr.msk.f32.mxu0 %vm344_vm0, %v5856_v60  ;;  %v6302_v60 = vld [vmem:[%s5445_s10 + $0xbb] sm:$0xff] }
  0xe1   : > { %v6289_v27 = vpop.f32.mrf.mxu0 }
  0xe2   : > { %v6291_v30 = vpop.f32.mrf.mxu1  ;;  %5098 = vmatmul.mubr.msk.f32.gmra.mxu1 %vm344_vm0, %v6280_v49 }
  0xe3   : > { %v6295_v58 = vpop.f32.mrf.mxu0  ;;  %5162 = vmatmul.mubr.msk.f32.gmra.mxu0 %vm344_vm0, %v5866_v1  ;;  %5100 = vmatprep.mubr.msk.f32.mxu1 %vm344_vm0, %v6287_v24 }
  0xe4   : > { %v6304_v33 = vpop.f32.mrf.mxu1  ;;  %5164 = vmatprep.mubr.msk.f32.mxu0 %vm344_vm0, %v5870_v5  ;;  %v6324_v5 = vld [vmem:[%s5445_s10 + $0xcb] sm:$0xff] }
  0xe5   : > { %v6311_v39 = vpop.f32.mrf.mxu0 }
  0xe6   : > { %v6313_v42 = vpop.f32.mrf.mxu1  ;;  %5101 = vmatmul.mubr.msk.f32.gmra.mxu1 %vm344_vm0, %v6302_v60 }
  0xe7   : > { %v6317_v1 = vpop.f32.mrf.mxu0  ;;  %5165 = vmatmul.mubr.msk.f32.gmra.mxu0 %vm344_vm0, %v5880_v13  ;;  %5103 = vmatprep.mubr.msk.f32.mxu1 %vm344_vm0, %v6309_v36 }
  0xe8   : > { %v6326_v45 = vpop.f32.mrf.mxu1  ;;  %5167 = vmatprep.mubr.msk.f32.mxu0 %vm344_vm0, %v5884_v31  ;;  %v6346_v31 = vld [vmem:[%s5445_s10 + $0xdb] sm:$0xff] }
  0xe9   : > { %v6333_v51 = vpop.f32.mrf.mxu0 }
  0xea   : > { %v6335_v8 = vpop.f32.mrf.mxu1  ;;  %5104 = vmatmul.mubr.msk.f32.gmra.mxu1 %vm344_vm0, %v6324_v5 }
  0xeb   : > { %v6339_v13 = vpop.f32.mrf.mxu0  ;;  %5168 = vmatmul.mubr.msk.f32.gmra.mxu0 %vm344_vm0, %v5894_v52  ;;  %5106 = vmatprep.mubr.msk.f32.mxu1 %vm344_vm0, %v6331_v48 }
  0xec   : > { %v6348_v10 = vpop.f32.mrf.mxu1  ;;  %5170 = vmatprep.mubr.msk.f32.mxu0 %vm344_vm0, %v5898_v59  ;;  %v6368_v59 = vld [vmem:[%s5445_s10 + $0xeb] sm:$0xff] }
  0xed   : > { %v6355_v22 = vpop.f32.mrf.mxu0 }
  0xee   : > { %v6357_v26 = vpop.f32.mrf.mxu1  ;;  %5107 = vmatmul.mubr.msk.f32.gmra.mxu1 %vm344_vm0, %v6346_v31 }
  0xef   : > { %v6361_v52 = vpop.f32.mrf.mxu0  ;;  %5171 = vmatmul.mubr.msk.f32.gmra.mxu0 %vm344_vm0, %v5908_v3  ;;  %5109 = vmatprep.mubr.msk.f32.mxu1 %vm344_vm0, %v6353_v16 }
  0xf0   : > { %v6370_v28 = vpop.f32.mrf.mxu1  ;;  %5173 = vmatprep.mubr.msk.f32.mxu0 %vm344_vm0, %v5912_v19  ;;  %v6390_v19 = vld [vmem:[%s5445_s10 + $0xfb] sm:$0xff] }
  0xf1   : > { %v6377_v38 = vpop.f32.mrf.mxu0 }
  0xf2   : > { %v6379_v44 = vpop.f32.mrf.mxu1  ;;  %5110 = vmatmul.mubr.msk.f32.gmra.mxu1 %vm344_vm0, %v6368_v59 }
  0xf3   : > { %7122 = vst [vmem:[#allocation2_spill] sm:$0xff] %v6379_v44  ;;  %v6383_v3 = vpop.f32.mrf.mxu0  ;;  %5174 = vmatmul.mubr.msk.f32.gmra.mxu0 %vm344_vm0, %v6092_v14  ;;  %5112 = vmatprep.mubr.msk.f32.mxu1 %vm344_vm0, %v6375_v32 }
  0xf4   : > { %v6392_v50 = vpop.f32.mrf.mxu1  ;;  %5176 = vmatprep.mubr.msk.f32.mxu0 %vm344_vm0, %v6096_v20  ;;  %v2200_v20 = vld [vmem:[%s5445_s10 + $0x10b] sm:$0x7f] }
  0xf5   : > { %7123 = vst [vmem:[#allocation3_spill] sm:$0xff] %v6392_v50  ;;  %v6400_v12 = vpop.f32.mrf.mxu0 }
  0xf6   : > { %v6403_v47 = vpop.f32.mrf.mxu1  ;;  %5113 = vmatmul.mubr.msk.f32.gmra.mxu1 %vm344_vm0, %v6390_v19 }
  0xf7   : > { %7125 = vst [vmem:[#allocation5_spill] sm:$0xff] %v6403_v47  ;;  %v6407_v14 = vpop.f32.mrf.mxu0  ;;  %5177 = vmatmul.mubr.msk.f32.gmra.mxu0 %vm344_vm0, %v2592_v63  ;;  %5115 = vmatprep.mubr.msk.f32.mxu1 %vm344_vm0, %v6398_v4  ;;  %v3353_v47 = vld [vmem:[%s5445_s10 + $0x34] sm:$0xff] }
  0xf8   : > { %v6413_v55 = vpop.f32.mrf.mxu1  ;;  %5179 = vmatprep.mubr.msk.f32.mxu0 %vm344_vm0, %v2593_v29  ;;  %v3352_v29 = vld [vmem:[%s5445_s10 + $0x2c] sm:$0xff] }
  0xf9   : > { %7126 = vst [vmem:[#allocation6_spill] sm:$0xff] %v6413_v55  ;;  %v6417_v61 = vpop.f32.mrf.mxu0 }
  0xfa   : > { %v6420_v6 = vpop.f32.mrf.mxu1  ;;  %5116 = vmatmul.mubr.msk.f32.gmra.mxu1 %vm344_vm0, %v2200_v20 }
  0xfb   : > { %7127 = vst [vmem:[#allocation7_spill] sm:$0xff] %v6420_v6  ;;  %v6423_v7 = vpop.f32.mrf.mxu0  ;;  %5180 = vmatmul.mubr.msk.f32.gmra.mxu0 %vm344_vm0, %v2594_v37  ;;  %5198 = vmatprep.mubr.msk.f32.mxu1 %vm344_vm0, %v6114_v34  ;;  %v3354_v37 = vld [vmem:[%s5445_s10 + $0x3c] sm:$0xff] }
  0xfc   : > { %v6428_v63 = vpop.f32.mrf.mxu1  ;;  %5262 = vmatprep.mubr.msk.f32.mxu0 %vm344_vm0, %v3351_v56 }
  0xfd   : > { %7128 = vst [vmem:[#allocation8_spill] sm:$0xff] %v6428_v63  ;;  %v6432_v55 = vpop.f32.mrf.mxu0 }
  0xfe   : > { %v4816_v6 = vpop.f32.mrf.mxu1  ;;  %5199 = vmatmul.mubr.msk.f32.vlgmr.msra.gmra.mxu1 %vm344_vm0, %v6123_v40  ;;  %v3355_v40 = vld [vmem:[%s5445_s10 + $0x44] sm:$0xff] }
  0xff   : > { %v834_v20 = vadd.f32 %v4816_v6, %v6273_v21  ;;  %v4880_v50 = vpop.f32.mrf.mxu0  ;;  %5263 = vmatmul.mubr.msk.f32.vlgmr.msra.gmra.mxu0 %vm344_vm0, %v3352_v29  ;;  %5201 = vmatprep.mubr.msk.f32.mxu1 %vm344_vm0, %v6131_v46 }
 0x100   : > { %v828_v34 = vpop.f32.mrf.mxu1  ;;  %5265 = vmatprep.mubr.msk.f32.mxu0 %vm344_vm0, %v3353_v47 }
 0x101   : > { %v6443_v56 = vadd.f32 %v4880_v50, %v834_v20  ;;  %v829_v63 = vadd.f32 %v828_v34, %v6289_v27  ;;  %v1190_v4 = vpop.f32.mrf.mxu0  ;;  %v3356_v27 = vld [vmem:[%s5445_s10 + $0x4c] sm:$0xff] }
 0x102   : > { %v4819_v44 = vpop.f32.mrf.mxu1  ;;  %5202 = vmatmul.mubr.msk.f32.gmra.mxu1 %vm344_vm0, %v6145_v54 }
 0x103   : > { %v6449_v21 = vadd.f32 %v1190_v4, %v829_v63  ;;  %v844_v46 = vadd.f32 %v4819_v44, %v6295_v58  ;;  %v4883_v6 = vpop.f32.mrf.mxu0  ;;  %5266 = vmatmul.mubr.msk.f32.gmra.mxu0 %vm344_vm0, %v3354_v37  ;;  %5204 = vmatprep.mubr.msk.f32.mxu1 %vm344_vm0, %v6153_v2  ;;  %v3357_v4 = vld [vmem:[%s5445_s10 + $0x54] sm:$0xff] }
 0x104   : > { %v838_v50 = vpop.f32.mrf.mxu1  ;;  %5268 = vmatprep.mubr.msk.f32.mxu0 %vm344_vm0, %v3355_v40  ;;  %v3359_v40 = vld [vmem:[%s5445_s10 + $0x64] sm:$0xff] }
 0x105   : > { %v6457_v47 = vadd.f32 %v4883_v6, %v844_v46  ;;  %v839_v29 = vadd.f32 %v838_v50, %v6311_v39  ;;  %v1200_v54 = vpop.f32.mrf.mxu0  ;;  %v3358_v39 = vld [vmem:[%s5445_s10 + $0x5c] sm:$0xff] }
 0x106   : > { %v4822_v63 = vpop.f32.mrf.mxu1  ;;  %5205 = vmatmul.mubr.msk.f32.gmra.mxu1 %vm344_vm0, %v6165_v9 }
 0x107   : > { %v6463_v58 = vadd.f32 %v1200_v54, %v839_v29  ;;  %v854_v2 = vadd.f32 %v4822_v63, %v6317_v1  ;;  %v4886_v44 = vpop.f32.mrf.mxu0  ;;  %5269 = vmatmul.mubr.msk.f32.gmra.mxu0 %vm344_vm0, %v3356_v27  ;;  %5207 = vmatprep.mubr.msk.f32.mxu1 %vm344_vm0, %v6173_v23  ;;  %v3361_v54 = vld [vmem:[%s5445_s10 + $0x74] sm:$0xff] }
 0x108   : > { %v848_v20 = vpop.f32.mrf.mxu1  ;;  %5271 = vmatprep.mubr.msk.f32.mxu0 %vm344_vm0, %v3357_v4 }
 0x109   : > { %v6471_v34 = vadd.f32 %v4886_v44, %v854_v2  ;;  %v849_v37 = vadd.f32 %v848_v20, %v6333_v51  ;;  %v1210_v9 = vpop.f32.mrf.mxu0  ;;  %v3360_v51 = vld [vmem:[%s5445_s10 + $0x6c] sm:$0xff] }
 0x10a   : > { %v4825_v46 = vpop.f32.mrf.mxu1  ;;  %5208 = vmatmul.mubr.msk.f32.gmra.mxu1 %vm344_vm0, %v6185_v41 }
 0x10b   : > { %v6477_v1 = vadd.f32 %v1210_v9, %v849_v37  ;;  %v864_v23 = vadd.f32 %v4825_v46, %v6339_v13  ;;  %v4889_v6 = vpop.f32.mrf.mxu0  ;;  %5272 = vmatmul.mubr.msk.f32.gmra.mxu0 %vm344_vm0, %v3358_v39  ;;  %5210 = vmatprep.mubr.msk.f32.mxu1 %vm344_vm0, %v6193_v17  ;;  %v3363_v39 = vld [vmem:[%s5445_s10 + $0x84] sm:$0xff] }
 0x10c   : > { %v858_v50 = vpop.f32.mrf.mxu1  ;;  %5274 = vmatprep.mubr.msk.f32.mxu0 %vm344_vm0, %v3359_v40 }
 0x10d   : > { %v6485_v27 = vadd.f32 %v4889_v6, %v864_v23  ;;  %v859_v29 = vadd.f32 %v858_v50, %v6355_v22  ;;  %v1220_v41 = vpop.f32.mrf.mxu0  ;;  %v3362_v22 = vld [vmem:[%s5445_s10 + $0x7c] sm:$0xff]  ;;  %v3365_v6 = vld [vmem:[%s5445_s10 + $0x94] sm:$0xff] }
 0x10e   : > { %v4828_v4 = vpop.f32.mrf.mxu1  ;;  %5211 = vmatmul.mubr.msk.f32.gmra.mxu1 %vm344_vm0, %v6205_v57 }
 0x10f   : > { %v6491_v13 = vadd.f32 %v1220_v41, %v859_v29  ;;  %v874_v17 = vadd.f32 %v4828_v4, %v6361_v52  ;;  %v4892_v63 = vpop.f32.mrf.mxu0  ;;  %5275 = vmatmul.mubr.msk.f32.gmra.mxu0 %vm344_vm0, %v3360_v51  ;;  %5213 = vmatprep.mubr.msk.f32.mxu1 %vm344_vm0, %v6213_v43  ;;  %v3367_v4 = vld [vmem:[%s5445_s10 + $0xa4] sm:$0xff] }
 0x110   : > { %v868_v2 = vpop.f32.mrf.mxu1  ;;  %5277 = vmatprep.mubr.msk.f32.mxu0 %vm344_vm0, %v3361_v54 }
 0x111   : > { %v6499_v44 = vadd.f32 %v4892_v63, %v874_v17  ;;  %v869_v20 = vadd.f32 %v868_v2, %v6377_v38  ;;  %v1230_v57 = vpop.f32.mrf.mxu0  ;;  %v3364_v38 = vld [vmem:[%s5445_s10 + $0x8c] sm:$0xff] }
 0x112   : > { %v4831_v37 = vpop.f32.mrf.mxu1  ;;  %5214 = vmatmul.mubr.msk.f32.gmra.mxu1 %vm344_vm0, %v6225_v0 }
 0x113   : > { %v6505_v52 = vadd.f32 %v1230_v57, %v869_v20  ;;  %v884_v43 = vadd.f32 %v4831_v37, %v6383_v3  ;;  %v4895_v9 = vpop.f32.mrf.mxu0  ;;  %5278 = vmatmul.mubr.msk.f32.gmra.mxu0 %vm344_vm0, %v3362_v22  ;;  %5216 = vmatprep.mubr.msk.f32.mxu1 %vm344_vm0, %v6233_v62  ;;  %v3369_v57 = vld [vmem:[%s5445_s10 + $0xb4] sm:$0xff] }
 0x114   : > { %v878_v40 = vpop.f32.mrf.mxu1  ;;  %5280 = vmatprep.mubr.msk.f32.mxu0 %vm344_vm0, %v3363_v39 }
 0x115   : > { %v6513_v46 = vadd.f32 %v4895_v9, %v884_v43  ;;  %v879_v23 = vadd.f32 %v878_v40, %v6400_v12  ;;  %v1240_v0 = vpop.f32.mrf.mxu0  ;;  %v3366_v12 = vld [vmem:[%s5445_s10 + $0x9c] sm:$0xff] }
 0x116   : > { %v4834_v50 = vpop.f32.mrf.mxu1  ;;  %5217 = vmatmul.mubr.msk.f32.gmra.mxu1 %vm344_vm0, %v6245_v11 }
 0x117   : > { %v6519_v3 = vadd.f32 %v1240_v0, %v879_v23  ;;  %v894_v62 = vadd.f32 %v4834_v50, %v6407_v14  ;;  %v4898_v51 = vpop.f32.mrf.mxu0  ;;  %5281 = vmatmul.mubr.msk.f32.gmra.mxu0 %vm344_vm0, %v3364_v38  ;;  %5219 = vmatprep.mubr.msk.f32.mxu1 %vm344_vm0, %v6253_v15  ;;  %v3371_v38 = vld [vmem:[%s5445_s10 + $0xc4] sm:$0xff] }
 0x118   : > { %v888_v29 = vpop.f32.mrf.mxu1  ;;  %5283 = vmatprep.mubr.msk.f32.mxu0 %vm344_vm0, %v3365_v6 }
 0x119   : > { %v6527_v41 = vadd.f32 %v4898_v51, %v894_v62  ;;  %v889_v54 = vadd.f32 %v888_v29, %v6417_v61  ;;  %v1250_v11 = vpop.f32.mrf.mxu0  ;;  %v3368_v61 = vld [vmem:[%s5445_s10 + $0xac] sm:$0xff]  ;;  %v3373_v51 = vld [vmem:[%s5445_s10 + $0xd4] sm:$0xff] }
 0x11a   : > { %v4837_v17 = vpop.f32.mrf.mxu1  ;;  %5220 = vmatmul.mubr.msk.f32.gmra.mxu1 %vm344_vm0, %v6262_v25 }
 0x11b   : > { %v6533_v14 = vadd.f32 %v1250_v11, %v889_v54  ;;  %v904_v15 = vadd.f32 %v4837_v17, %v6423_v7  ;;  %v4901_v63 = vpop.f32.mrf.mxu0  ;;  %5284 = vmatmul.mubr.msk.f32.gmra.mxu0 %vm344_vm0, %v3366_v12  ;;  %5222 = vmatprep.mubr.msk.f32.mxu1 %vm344_vm0, %v6267_v35  ;;  %v3375_v17 = vld [vmem:[%s5445_s10 + $0xe4] sm:$0xff] }
 0x11c   : > { %v898_v2 = vpop.f32.mrf.mxu1  ;;  %5286 = vmatprep.mubr.msk.f32.mxu0 %vm344_vm0, %v3367_v4 }
 0x11d   : > { %v6541_v22 = vadd.f32 %v4901_v63, %v904_v15  ;;  %v899_v20 = vadd.f32 %v898_v2, %v6432_v55  ;;  %v1260_v25 = vpop.f32.mrf.mxu0  ;;  %v3370_v55 = vld [vmem:[%s5445_s10 + $0xbc] sm:$0xff] }
 0x11e   : > { %v4840_v39 = vpop.f32.mrf.mxu1  ;;  %5223 = vmatmul.mubr.msk.f32.gmra.mxu1 %vm344_vm0, %v6280_v49 }
 0x11f   : > { %v6547_v7 = vadd.f32 %v1260_v25, %v899_v20  ;;  %v914_v35 = vadd.f32 %v4840_v39, %v6269_v18  ;;  %v4904_v37 = vpop.f32.mrf.mxu0  ;;  %5287 = vmatmul.mubr.msk.f32.gmra.mxu0 %vm344_vm0, %v3368_v61  ;;  %5225 = vmatprep.mubr.msk.f32.mxu1 %vm344_vm0, %v6287_v24  ;;  %v3377_v25 = vld [vmem:[%s5445_s10 + $0xf4] sm:$0xff] }
 0x120   : > { %v908_v43 = vpop.f32.mrf.mxu1  ;;  %5289 = vmatprep.mubr.msk.f32.mxu0 %vm344_vm0, %v3369_v57 }
 0x121   : > { %v6555_v9 = vadd.f32 %v4904_v37, %v914_v35  ;;  %v909_v40 = vadd.f32 %v908_v43, %v6282_v53  ;;  %v1270_v49 = vpop.f32.mrf.mxu0  ;;  %v3372_v53 = vld [vmem:[%s5445_s10 + $0xcc] sm:$0xff] }
 0x122   : > { %v4843_v23 = vpop.f32.mrf.mxu1  ;;  %5226 = vmatmul.mubr.msk.f32.gmra.mxu1 %vm344_vm0, %v6302_v60 }
 0x123   : > { %v6561_v18 = vadd.f32 %v1270_v49, %v909_v40  ;;  %v924_v24 = vadd.f32 %v4843_v23, %v6291_v30  ;;  %v4907_v0 = vpop.f32.mrf.mxu0  ;;  %5290 = vmatmul.mubr.msk.f32.gmra.mxu0 %vm344_vm0, %v3370_v55  ;;  %5228 = vmatprep.mubr.msk.f32.mxu1 %vm344_vm0, %v6309_v36  ;;  %v3379_v55 = vld [vmem:[%s5445_s10 + $0x104] sm:$0xff]  ;;  %v7130_v23 = vld [vmem:[#allocation4_spill] sm:$0xff] }
 0x124   : > { %v918_v6 = vpop.f32.mrf.mxu1  ;;  %5292 = vmatprep.mubr.msk.f32.mxu0 %vm344_vm0, %v3371_v38 }
 0x125   : > { %v6569_v50 = vadd.f32 %v4907_v0, %v924_v24  ;;  %v919_v62 = vadd.f32 %v918_v6, %v6304_v33  ;;  %v1280_v60 = vpop.f32.mrf.mxu0  ;;  %v3374_v33 = vld [vmem:[%s5445_s10 + $0xdc] sm:$0xff]  ;;  %v2986_v24 = vld [vmem:[%s5445_s10 + $0x10b] sm:$0xff]  ;;  %v2987_v6 = vld [vmem:[%s5445_s10 + $0x113] sm:$0xff] }
 0x126   : > { %v4846_v29 = vpop.f32.mrf.mxu1  ;;  %5229 = vmatmul.mubr.msk.f32.gmra.mxu1 %vm344_vm0, %v6324_v5  ;;  %v3380_v0 = vld [vmem:[%s5445_s10 + $0x10c] sm:$0xff] }
 0x127   : > { %v6575_v30 = vadd.f32 %v1280_v60, %v919_v62  ;;  %v934_v36 = vadd.f32 %v4846_v29, %v6313_v42  ;;  %v4910_v12 = vpop.f32.mrf.mxu0  ;;  %5293 = vmatmul.mubr.msk.f32.gmra.mxu0 %vm344_vm0, %v3372_v53  ;;  %5231 = vmatprep.mubr.msk.f32.mxu1 %vm344_vm0, %v6331_v48 }
 0x128   : > { %v928_v54 = vpop.f32.mrf.mxu1  ;;  %5295 = vmatprep.mubr.msk.f32.mxu0 %vm344_vm0, %v3373_v51  ;;  %v3381_v51 = vld [vmem:[%s5445_s10 + $0x114] sm:$0xff] }
 0x129   : > { %v6583_v11 = vadd.f32 %v4910_v12, %v934_v36  ;;  %v929_v4 = vadd.f32 %v928_v54, %v6326_v45  ;;  %v1290_v5 = vpop.f32.mrf.mxu0  ;;  %v3376_v45 = vld [vmem:[%s5445_s10 + $0xec] sm:$0xff]  ;;  %v7132_v12 = vld [vmem:[#allocation5_spill] sm:$0xff] }
 0x12a   : > { %v4849_v15 = vpop.f32.mrf.mxu1  ;;  %5232 = vmatmul.mubr.msk.f32.gmra.mxu1 %vm344_vm0, %v6346_v31 }
 0x12b   : > { %v6589_v42 = vadd.f32 %v1290_v5, %v929_v4  ;;  %v944_v48 = vadd.f32 %v4849_v15, %v6335_v8  ;;  %v4913_v63 = vpop.f32.mrf.mxu0  ;;  %5296 = vmatmul.mubr.msk.f32.gmra.mxu0 %vm344_vm0, %v3374_v33  ;;  %5234 = vmatprep.mubr.msk.f32.mxu1 %vm344_vm0, %v6353_v16  ;;  %v2988_v4 = vld [vmem:[%s5445_s10 + $0x11b] sm:$0x7f] }
 0x12c   : > { %v938_v2 = vpop.f32.mrf.mxu1  ;;  %5298 = vmatprep.mubr.msk.f32.mxu0 %vm344_vm0, %v3375_v17  ;;  %v3382_v17 = vld [vmem:[%s5445_s10 + $0x11c] sm:$0x7f] }
 0x12d   : > { %v6597_v61 = vadd.f32 %v4913_v63, %v944_v48  ;;  %v939_v20 = vadd.f32 %v938_v2, %v6348_v10  ;;  %v1300_v31 = vpop.f32.mrf.mxu0  ;;  %v3378_v10 = vld [vmem:[%s5445_s10 + $0xfc] sm:$0xff] }
 0x12e   : > { %v4852_v57 = vpop.f32.mrf.mxu1  ;;  %5235 = vmatmul.mubr.msk.f32.gmra.mxu1 %vm344_vm0, %v6368_v59  ;;  %v7133_v48 = vld [vmem:[#allocation6_spill] sm:$0xff] }
 0x12f   : > { %v6603_v8 = vadd.f32 %v1300_v31, %v939_v20  ;;  %v954_v16 = vadd.f32 %v4852_v57, %v6357_v26  ;;  %v4916_v39 = vpop.f32.mrf.mxu0  ;;  %5299 = vmatmul.mubr.msk.f32.gmra.mxu0 %vm344_vm0, %v3376_v45  ;;  %5237 = vmatprep.mubr.msk.f32.mxu1 %vm344_vm0, %v6375_v32  ;;  %v7129_v32 = vld [vmem:[#allocation2_spill] sm:$0xff]  ;;  %v7134_v31 = vld [vmem:[#allocation7_spill] sm:$0xff] }
 0x130   : > { %v948_v35 = vpop.f32.mrf.mxu1  ;;  %5301 = vmatprep.mubr.msk.f32.mxu0 %vm344_vm0, %v3377_v25 }
 0x131   : > { %v6611_v37 = vadd.f32 %v4916_v39, %v954_v16  ;;  %v949_v59 = vadd.f32 %v948_v35, %v6370_v28  ;;  %v1310_v43 = vpop.f32.mrf.mxu0  ;;  %v7135_v35 = vld [vmem:[#allocation8_spill] sm:$0xff] }
 0x132   : > { %v4855_v26 = vpop.f32.mrf.mxu1  ;;  %5238 = vmatmul.mubr.msk.f32.gmra.mxu1 %vm344_vm0, %v6390_v19  ;;  %v7131_v19 = vld [vmem:[#allocation3_spill] sm:$0xff] }
 0x133   : > { %v6617_v40 = vadd.f32 %v1310_v43, %v949_v59  ;;  %v964_v49 = vadd.f32 %v4855_v26, %v7129_v32  ;;  %v4919_v38 = vpop.f32.mrf.mxu0  ;;  %5302 = vmatmul.mubr.msk.f32.gmra.mxu0 %vm344_vm0, %v3378_v10  ;;  %5240 = vmatprep.mubr.msk.f32.mxu1 %vm344_vm0, %v7130_v23 }
 0x134   : > { %v958_v28 = vpop.f32.mrf.mxu1  ;;  %5304 = vmatprep.mubr.msk.f32.mxu0 %vm344_vm0, %v3379_v55 }
 0x135   : > { %v6627_v53 = vadd.f32 %v4919_v38, %v964_v49  ;;  %v959_v62 = vadd.f32 %v958_v28, %v7131_v19  ;;  %v1320_v60 = vpop.f32.mrf.mxu0 }
 0x136   : > { %v4858_v29 = vpop.f32.mrf.mxu1  ;;  %5241 = vmatmul.mubr.msk.f32.gmra.mxu1 %vm344_vm0, %v2986_v24 }
 0x137   : > { %v6632_v36 = vadd.f32 %v1320_v60, %v959_v62  ;;  %v974_v54 = vadd.f32 %v4858_v29, %v7132_v12  ;;  %v4922_v33 = vpop.f32.mrf.mxu0  ;;  %5305 = vmatmul.mubr.msk.f32.gmra.mxu0 %vm344_vm0, %v3380_v0  ;;  %5243 = vmatprep.mubr.msk.f32.mxu1 %vm344_vm0, %v2987_v6 }
 0x138   : > { %v968_v5 = vpop.f32.mrf.mxu1  ;;  %5307 = vmatprep.mubr.msk.f32.mxu0 %vm344_vm0, %v3381_v51 }
 0x139   : > { %v6640_v15 = vadd.f32 %v4922_v33, %v974_v54  ;;  %v969_v63 = vadd.f32 %v968_v5, %v7133_v48  ;;  %v1330_v2 = vpop.f32.mrf.mxu0 }
 0x13a   : > { %v4861_v45 = vpop.f32.mrf.mxu1  ;;  %5244 = vmatmul.mubr.msk.f32.gmra.mxu1 %vm344_vm0, %v2988_v4 }
 0x13b   : > { %v6644_v20 = vadd.f32 %v1330_v2, %v969_v63  ;;  %v984_v25 = vadd.f32 %v4861_v45, %v7134_v31  ;;  %v4925_v57 = vpop.f32.mrf.mxu0  ;;  %5308 = vmatmul.mubr.msk.f32.gmra.mxu0 %vm344_vm0, %v3382_v17 }
 0x13c   : > { %v978_v16 = vpop.f32.mrf.mxu1 }
 0x13d   : > { %v6648_v39 = vadd.f32 %v4925_v57, %v984_v25  ;;  %v979_v10 = vadd.f32 %v978_v16, %v7135_v35  ;;  %v1340_v59 = vpop.f32.mrf.mxu0 }
 0x13e   : > { %v4944_v43 = vpop.f32.mrf.mxu1 }
 0x13f   : > { %v6651_v55 = vadd.f32 %v1340_v59, %v979_v10  ;;  %v1744_v26 = vadd.f32 %v4944_v43, %v6443_v56  ;;  %v5008_v32 = vpop.f32.mrf.mxu0 }
 0x140   : > { %v1584_v49 = vpop.f32.mrf.mxu1 }
 0x141   : > { %v6654_v38 = vadd.f32 %v5008_v32, %v1744_v26  ;;  %v1743_v23 = vadd.f32 %v1584_v49, %v6449_v21  ;;  %v1978_v24 = vpop.f32.mrf.mxu0 }
 0x142   : > { %v4947_v28 = vpop.f32.mrf.mxu1 }
 0x143   : > { %v6657_v0 = vadd.f32 %v1978_v24, %v1743_v23  ;;  %v1746_v6 = vadd.f32 %v4947_v28, %v6457_v47  ;;  %v5011_v19 = vpop.f32.mrf.mxu0 }
 0x144   : > { %v1594_v62 = vpop.f32.mrf.mxu1 }
 0x145   : > { %v6660_v60 = vadd.f32 %v5011_v19, %v1746_v6  ;;  %v1745_v51 = vadd.f32 %v1594_v62, %v6463_v58  ;;  %v1988_v29 = vpop.f32.mrf.mxu0 }
 0x146   : > { %v4950_v56 = vpop.f32.mrf.mxu1 }
 0x147   : > { %v6663_v12 = vadd.f32 %v1988_v29, %v1745_v51  ;;  %v1748_v54 = vadd.f32 %v4950_v56, %v6471_v34  ;;  %v5014_v33 = vpop.f32.mrf.mxu0 }
 0x148   : > { %v1604_v21 = vpop.f32.mrf.mxu1 }
 0x149   : > { %v6666_v4 = vadd.f32 %v5014_v33, %v1748_v54  ;;  %v1747_v5 = vadd.f32 %v1604_v21, %v6477_v1  ;;  %v1998_v17 = vpop.f32.mrf.mxu0 }
 0x14a   : > { %v4953_v47 = vpop.f32.mrf.mxu1 }
 0x14b   : > { %v6669_v48 = vadd.f32 %v1998_v17, %v1747_v5  ;;  %v1750_v63 = vadd.f32 %v4953_v47, %v6485_v27  ;;  %v5017_v2 = vpop.f32.mrf.mxu0 }
 0x14c   : > { %v1614_v58 = vpop.f32.mrf.mxu1 }
 0x14d   : > { %v6672_v45 = vadd.f32 %v5017_v2, %v1750_v63  ;;  %v1749_v31 = vadd.f32 %v1614_v58, %v6491_v13  ;;  %v2008_v25 = vpop.f32.mrf.mxu0 }
 0x14e   : > { %v4956_v34 = vpop.f32.mrf.mxu1 }
 0x14f   : > { %v6675_v57 = vadd.f32 %v2008_v25, %v1749_v31  ;;  %v1752_v16 = vadd.f32 %v4956_v34, %v6499_v44  ;;  %v5020_v35 = vpop.f32.mrf.mxu0 }
 0x150   : > { %v1624_v1 = vpop.f32.mrf.mxu1 }
 0x151   : > { %v6678_v10 = vadd.f32 %v5020_v35, %v1752_v16  ;;  %v1751_v59 = vadd.f32 %v1624_v1, %v6505_v52  ;;  %v2018_v43 = vpop.f32.mrf.mxu0 }
 0x152   : > { %v4959_v27 = vpop.f32.mrf.mxu1 }
 0x153   : > { %v6681_v26 = vadd.f32 %v2018_v43, %v1751_v59  ;;  %v1754_v32 = vadd.f32 %v4959_v27, %v6513_v46  ;;  %v5023_v49 = vpop.f32.mrf.mxu0 }
 0x154   : > { %v1634_v13 = vpop.f32.mrf.mxu1 }
 0x155   : > { %v6684_v23 = vadd.f32 %v5023_v49, %v1754_v32  ;;  %v1753_v24 = vadd.f32 %v1634_v13, %v6519_v3  ;;  %v2028_v28 = vpop.f32.mrf.mxu0 }
 0x156   : > { %v4962_v44 = vpop.f32.mrf.mxu1 }
 0x157   : > { %v6687_v6 = vadd.f32 %v2028_v28, %v1753_v24  ;;  %v1756_v19 = vadd.f32 %v4962_v44, %v6527_v41  ;;  %v5026_v62 = vpop.f32.mrf.mxu0 }
 0x158   : > { %v1644_v52 = vpop.f32.mrf.mxu1 }
 0x159   : > { %v6690_v51 = vadd.f32 %v5026_v62, %v1756_v19  ;;  %v1755_v29 = vadd.f32 %v1644_v52, %v6533_v14  ;;  %v2038_v56 = vpop.f32.mrf.mxu0 }
 0x15a   : > { %v4965_v46 = vpop.f32.mrf.mxu1 }
 0x15b   : > { %v6693_v54 = vadd.f32 %v2038_v56, %v1755_v29  ;;  %v1758_v33 = vadd.f32 %v4965_v46, %v6541_v22  ;;  %v5029_v21 = vpop.f32.mrf.mxu0 }
 0x15c   : > { %v1654_v3 = vpop.f32.mrf.mxu1 }
 0x15d   : > { %v6696_v5 = vadd.f32 %v5029_v21, %v1758_v33  ;;  %v1757_v17 = vadd.f32 %v1654_v3, %v6547_v7  ;;  %v2048_v47 = vpop.f32.mrf.mxu0 }
 0x15e   : > { %v4968_v41 = vpop.f32.mrf.mxu1 }
 0x15f   : > { %v6699_v63 = vadd.f32 %v2048_v47, %v1757_v17  ;;  %v1760_v2 = vadd.f32 %v4968_v41, %v6555_v9  ;;  %v5032_v58 = vpop.f32.mrf.mxu0 }
 0x160   : > { %v1664_v14 = vpop.f32.mrf.mxu1 }
 0x161   : > { %v6702_v31 = vadd.f32 %v5032_v58, %v1760_v2  ;;  %v1759_v25 = vadd.f32 %v1664_v14, %v6561_v18  ;;  %v2058_v34 = vpop.f32.mrf.mxu0 }
 0x162   : > { %v4971_v22 = vpop.f32.mrf.mxu1 }
 0x163   : > { %v6705_v16 = vadd.f32 %v2058_v34, %v1759_v25  ;;  %v1762_v35 = vadd.f32 %v4971_v22, %v6569_v50  ;;  %v5035_v1 = vpop.f32.mrf.mxu0 }
 0x164   : > { %v1674_v7 = vpop.f32.mrf.mxu1 }
 0x165   : > { %v6708_v59 = vadd.f32 %v5035_v1, %v1762_v35  ;;  %v1761_v43 = vadd.f32 %v1674_v7, %v6575_v30  ;;  %v2068_v27 = vpop.f32.mrf.mxu0 }
 0x166   : > { %v4974_v9 = vpop.f32.mrf.mxu1 }
 0x167   : > { %7136 = vst [vmem:[#allocation2_spill] sm:$0xff] %v6708_v59  ;;  %v6711_v32 = vadd.f32 %v2068_v27, %v1761_v43  ;;  %v1764_v49 = vadd.f32 %v4974_v9, %v6583_v11  ;;  %v5038_v13 = vpop.f32.mrf.mxu0 }
 0x168   : > { %v1684_v18 = vpop.f32.mrf.mxu1 }
 0x169   : > { %7137 = vst [vmem:[#allocation4_spill] sm:$0xff] %v6711_v32  ;;  %v6714_v24 = vadd.f32 %v5038_v13, %v1764_v49  ;;  %v1763_v28 = vadd.f32 %v1684_v18, %v6589_v42  ;;  %v2078_v44 = vpop.f32.mrf.mxu0 }
 0x16a   : > { %v4977_v50 = vpop.f32.mrf.mxu1 }
 0x16b   : > { %7138 = vst [vmem:[#allocation3_spill] sm:$0xff] %v6714_v24  ;;  %v6717_v19 = vadd.f32 %v2078_v44, %v1763_v28  ;;  %v1766_v62 = vadd.f32 %v4977_v50, %v6597_v61  ;;  %v5041_v52 = vpop.f32.mrf.mxu0 }
 0x16c   : > { %v1694_v30 = vpop.f32.mrf.mxu1 }
 0x16d   : > { %7139 = vst [vmem:[#allocation5_spill] sm:$0xff] %v6717_v19  ;;  %v6720_v29 = vadd.f32 %v5041_v52, %v1766_v62  ;;  %v1765_v56 = vadd.f32 %v1694_v30, %v6603_v8  ;;  %v2088_v46 = vpop.f32.mrf.mxu0 }
 0x16e   : > { %v4980_v11 = vpop.f32.mrf.mxu1 }
 0x16f   : > { %7140 = vst [vmem:[#allocation6_spill] sm:$0xff] %v6720_v29  ;;  %v6723_v33 = vadd.f32 %v2088_v46, %v1765_v56  ;;  %v1768_v21 = vadd.f32 %v4980_v11, %v6611_v37  ;;  %v5044_v3 = vpop.f32.mrf.mxu0 }
 0x170   : > { %v1704_v42 = vpop.f32.mrf.mxu1 }
 0x171   : > { %7141 = vst [vmem:[#allocation7_spill] sm:$0xff] %v6723_v33  ;;  %v6726_v17 = vadd.f32 %v5044_v3, %v1768_v21  ;;  %v1767_v47 = vadd.f32 %v1704_v42, %v6617_v40  ;;  %v2098_v41 = vpop.f32.mrf.mxu0 }
 0x172   : > { %v4983_v61 = vpop.f32.mrf.mxu1 }
 0x173   : > { %7142 = vst [vmem:[#allocation8_spill] sm:$0xff] %v6726_v17  ;;  %v6729_v2 = vadd.f32 %v2098_v41, %v1767_v47  ;;  %v1770_v58 = vadd.f32 %v4983_v61, %v6627_v53  ;;  %v5047_v14 = vpop.f32.mrf.mxu0 }
 0x174   : > { %v1714_v8 = vpop.f32.mrf.mxu1 }
 0x175   : > { %7143 = vst [vmem:[#allocation9_spill] sm:$0xff] %v6729_v2  ;;  %v6732_v25 = vadd.f32 %v5047_v14, %v1770_v58  ;;  %v1769_v34 = vadd.f32 %v1714_v8, %v6632_v36  ;;  %v2108_v22 = vpop.f32.mrf.mxu0 }
 0x176   : > { %v4986_v37 = vpop.f32.mrf.mxu1 }
 0x177   : > { %7144 = vst [vmem:[#allocation10_spill] sm:$0xff] %v6732_v25  ;;  %v6735_v35 = vadd.f32 %v2108_v22, %v1769_v34  ;;  %v1772_v1 = vadd.f32 %v4986_v37, %v6640_v15  ;;  %v5050_v7 = vpop.f32.mrf.mxu0 }
 0x178   : > { %v1724_v40 = vpop.f32.mrf.mxu1 }
 0x179   : > { %7145 = vst [vmem:[#allocation11_spill] sm:$0xff] %v6735_v35  ;;  %v6738_v43 = vadd.f32 %v5050_v7, %v1772_v1  ;;  %v1771_v27 = vadd.f32 %v1724_v40, %v6644_v20  ;;  %v2118_v9 = vpop.f32.mrf.mxu0 }
 0x17a   : > { %v4989_v53 = vpop.f32.mrf.mxu1 }
 0x17b   : > { %7146 = vst [vmem:[#allocation12_spill] sm:$0xff] %v6738_v43  ;;  %v6741_v49 = vadd.f32 %v2118_v9, %v1771_v27  ;;  %v1774_v13 = vadd.f32 %v4989_v53, %v6648_v39  ;;  %v5053_v18 = vpop.f32.mrf.mxu0 }
 0x17c   : > { %v1734_v36 = vpop.f32.mrf.mxu1 }
 0x17d   : > { %7147 = vst [vmem:[#allocation13_spill] sm:$0xff] %v6741_v49  ;;  %v6744_v28 = vadd.f32 %v5053_v18, %v1774_v13  ;;  %v1773_v44 = vadd.f32 %v1734_v36, %v6651_v55  ;;  %v2128_v50 = vpop.f32.mrf.mxu0 }
 0x17e   : > { %v5072_v15 = vpop.f32.mrf.mxu1 }
 0x17f   : > { %7148 = vst [vmem:[#allocation14_spill] sm:$0xff] %v6744_v28  ;;  %v6747_v62 = vadd.f32 %v2128_v50, %v1773_v44  ;;  %v6749_v52 = vpop.f32.mrf.mxu0 }
 0x180   : > { %v2372_v30 = vpop.f32.mrf.mxu1 }
 0x181   : > { %7149 = vst [vmem:[#allocation15_spill] sm:$0xff] %v6747_v62  ;;  %v6751_v20 = vpop.f32.mrf.mxu0 }
 0x182   : > { %v5075_v56 = vpop.f32.mrf.mxu1 }
 0x183   : > { %v6753_v46 = vpop.f32.mrf.mxu0 }
 0x184   : > { %v6755_v11 = vpop.f32.mrf.mxu1 }
 0x185   : > { %v6757_v39 = vpop.f32.mrf.mxu0 }
 0x186   : > { %v6759_v21 = vpop.f32.mrf.mxu1 }
 0x187   : > { %v6761_v3 = vpop.f32.mrf.mxu0 }
 0x188   : > { %v6763_v55 = vpop.f32.mrf.mxu1 }
 0x189   : > { %v6765_v42 = vpop.f32.mrf.mxu0 }
 0x18a   : > { %v6767_v47 = vpop.f32.mrf.mxu1 }
 0x18b   : > { %v6769_v41 = vpop.f32.mrf.mxu0 }
 0x18c   : > { %v6771_v61 = vpop.f32.mrf.mxu1 }
 0x18d   : > { %v6773_v58 = vpop.f32.mrf.mxu0 }
 0x18e   : > { %v6775_v14 = vpop.f32.mrf.mxu1 }
 0x18f   : > { %v6777_v8 = vpop.f32.mrf.mxu0 }
 0x190   : > { %v6779_v34 = vpop.f32.mrf.mxu1 }
 0x191   : > { %v6781_v22 = vpop.f32.mrf.mxu0 }
 0x192   : > { %v6783_v37 = vpop.f32.mrf.mxu1 }
 0x193   : > { %v6785_v1 = vpop.f32.mrf.mxu0 }
 0x194   : > { %v6787_v7 = vpop.f32.mrf.mxu1 }
 0x195   : > { %v6789_v40 = vpop.f32.mrf.mxu0 }
 0x196   : > { %v6791_v27 = vpop.f32.mrf.mxu1 }
 0x197   : > { %v6793_v9 = vpop.f32.mrf.mxu0 }
 0x198   : > { %v6795_v53 = vpop.f32.mrf.mxu1 }
 0x199   : > { %v6797_v13 = vpop.f32.mrf.mxu0 }
 0x19a   : > { %v6799_v18 = vpop.f32.mrf.mxu1 }
 0x19b   : > { %v6801_v36 = vpop.f32.mrf.mxu0 }
 0x19c   : > { %v6803_v44 = vpop.f32.mrf.mxu1 }
 0x19d   : > { %v6805_v50 = vpop.f32.mrf.mxu0 }
 0x19e   : > { %v6807_v62 = vpop.f32.mrf.mxu1 }
 0x19f   : > { %v6809_v28 = vpop.f32.mrf.mxu0 }
 0x1a0   : > { %v6811_v49 = vpop.f32.mrf.mxu1 }
 0x1a1   : > { %v6813_v43 = vpop.f32.mrf.mxu0 }
 0x1a2   : > { %7150 = vst [vmem:[#allocation16_spill] sm:$0xff] %v6813_v43  ;;  %v6815_v35 = vpop.f32.mrf.mxu1 }
 0x1a3   : > { %7151 = vst [vmem:[#allocation17_spill] sm:$0xff] %v6815_v35  ;;  %v6817_v25 = vpop.f32.mrf.mxu0 }
 0x1a4   : > { %7152 = vst [vmem:[#allocation18_spill] sm:$0xff] %v6817_v25  ;;  %v6819_v2 = vpop.f32.mrf.mxu1 }
 0x1a5   : > { %7153 = vst [vmem:[#allocation19_spill] sm:$0xff] %v6819_v2  ;;  %v6821_v17 = vpop.f32.mrf.mxu0 }
 0x1a6   : > { %7154 = vst [vmem:[#allocation20_spill] sm:$0xff] %v6821_v17  ;;  %v6823_v33 = vpop.f32.mrf.mxu1 }
 0x1a7   : > { %7155 = vst [vmem:[#allocation21_spill] sm:$0xff] %v6823_v33  ;;  %v6825_v29 = vpop.f32.mrf.mxu0 }
 0x1a8   : > { %7156 = vst [vmem:[#allocation22_spill] sm:$0xff] %v6825_v29  ;;  %v6827_v19 = vpop.f32.mrf.mxu1 }
 0x1a9   : > { %7157 = vst [vmem:[#allocation23_spill] sm:$0xff] %v6827_v19  ;;  %v6829_v24 = vpop.f32.mrf.mxu0 }
 0x1aa   : > { %7158 = vst [vmem:[#allocation24_spill] sm:$0xff] %v6829_v24  ;;  %v6831_v32 = vpop.f32.mrf.mxu1 }
 0x1ab   : > { %7159 = vst [vmem:[#allocation25_spill] sm:$0xff] %v6831_v32  ;;  %v6833_v59 = vpop.f32.mrf.mxu0 }
 0x1ac   : > { %7160 = vst [vmem:[#allocation26_spill] sm:$0xff] %v6833_v59  ;;  %v6835_v43 = vpop.f32.mrf.mxu1 }
 0x1ad   : > { %7161 = vst [vmem:[#allocation27_spill] sm:$0xff] %v6835_v43  ;;  %v6837_v35 = vpop.f32.mrf.mxu0 }
 0x1ae   : > { %7162 = vst [vmem:[#allocation28_spill] sm:$0xff] %v6837_v35  ;;  %v6839_v25 = vpop.f32.mrf.mxu1 }
 0x1af   : > { %7163 = vst [vmem:[#allocation29_spill] sm:$0xff] %v6839_v25  ;;  %v6841_v2 = vpop.f32.mrf.mxu0 }
 0x1b0   : > { %7164 = vst [vmem:[#allocation30_spill] sm:$0xff] %v6841_v2  ;;  %v6843_v17 = vpop.f32.mrf.mxu1  ;;  %v2532_v2 = vadd.f32 %v5072_v15, %v6654_v38  ;;  %v2533_v15 = vadd.f32 %v6755_v11, %v6663_v12  ;;  %v6891_v12 = vld [vmem:[%s7119_s3] ss:$0 sm:$0xff] }
 0x1b1   : > { %7165 = vst [vmem:[#allocation31_spill] sm:$0xff] %v6843_v17  ;;  %v6845_v33 = vpop.f32.mrf.mxu0 }
 0x1b2   : > { %7166 = vst [vmem:[#allocation32_spill] sm:$0xff] %v6845_v33  ;;  %v6847_v29 = vpop.f32.mrf.mxu1  ;;  %v2531_v33 = vadd.f32 %v2372_v30, %v6657_v0  ;;  %v6881_v0 = vld [vmem:[%s7118_s2] ss:$0 sm:$0xff] }
 0x1b3   : > { %7167 = vst [vmem:[#allocation33_spill] sm:$0xff] %v6847_v29  ;;  %v6849_v19 = vpop.f32.mrf.mxu0 }
 0x1b4   : > { %7168 = vst [vmem:[#allocation34_spill] sm:$0xff] %v6849_v19  ;;  %v6851_v24 = vpop.f32.mrf.mxu1  ;;  %v2925_v38 = vadd.f32 %v6751_v20, %v2531_v33  ;;  %v2535_v33 = vadd.f32 %v6763_v55, %v6669_v48 }
 0x1b5   : > { %7169 = vst [vmem:[#allocation35_spill] sm:$0xff] %v6851_v24  ;;  %v6853_v32 = vpop.f32.mrf.mxu0 }
 0x1b6   : > { %7170 = vst [vmem:[#allocation36_spill] sm:$0xff] %v6853_v32  ;;  %v6855_v59 = vpop.f32.mrf.mxu1  ;;  %v2926_v32 = vadd.f32 %v6749_v52, %v2532_v2 }
 0x1b7   : > { %7171 = vst [vmem:[#allocation37_spill] sm:$0xff] %v6855_v59  ;;  %v6857_v43 = vpop.f32.mrf.mxu0  ;;  %v2534_v59 = vadd.f32 %v5075_v56, %v6660_v60 }
 0x1b8   : > { %7172 = vst [vmem:[#allocation38_spill] sm:$0xff] %v6857_v43  ;;  %v6859_v35 = vpop.f32.mrf.mxu1 }
 0x1b9   : > { %v6862_v25 = vpop.f32.mrf.mxu0  ;;  %v2928_v2 = vadd.f32 %v6753_v46, %v2534_v59 }
 0x1ba   : > { %7173 = vst [vmem:[#allocation39_spill] sm:$0xff] %v6862_v25  ;;  %v6864_v17 = vpop.f32.mrf.mxu1 }
 0x1bb   : > { %7174 = vst [vmem:[#allocation40_spill] sm:$0xff] %v6864_v17  ;;  %v6867_v29 = vpop.f32.mrf.mxu0 }
 0x1bc   : > { %v6869_v19 = vpop.f32.mrf.mxu1 }
 0x1bd   : > { %v6873_v24 = vpop.f32.mrf.mxu0 }
 0x1be   : > { %7175 = vst [vmem:[#allocation41_spill] sm:$0xff] %v6873_v24  ;;  %v5200_v43 = vpop.f32.mrf.mxu1  ;;  %v2536_v24 = vadd.f32 %v6759_v21, %v6666_v4  ;;  %v2538_v4 = vadd.f32 %v6767_v47, %v6672_v45 }
 0x1bf   : > { %v3320_v25 = vadd.f32 %v5200_v43, %v2926_v32  ;;  %v5264_v17 = vpop.f32.mrf.mxu0  ;;  %v2927_v43 = vadd.f32 %v6757_v39, %v2533_v15  ;;  %v2929_v39 = vadd.f32 %v6765_v42, %v2535_v33  ;;  %v2537_v15 = vadd.f32 %v6771_v61, %v6675_v57 }
 0x1c0   : > { %v3160_v30 = vpop.f32.mrf.mxu1  ;;  %v2932_v42 = vadd.f32 %v6769_v41, %v2538_v4  ;;  %v2540_v57 = vadd.f32 %v6775_v14, %v6678_v10 }
 0x1c1   : > { %v3714_v60 = vadd.f32 %v5264_v17, %v3320_v25  ;;  %v3319_v52 = vadd.f32 %v3160_v30, %v2925_v38  ;;  %v3554_v56 = vpop.f32.mrf.mxu0  ;;  %v2930_v30 = vadd.f32 %v6761_v3, %v2536_v24 }
 0x1c2   : > { %v5203_v32 = vpop.f32.mrf.mxu1 }
 0x1c3   : > { %v3753_v59 = vmul.f32 %v6881_v0, %v3714_v60  ;;  %v3713_v17 = vadd.f32 %v3554_v56, %v3319_v52  ;;  %v3322_v25 = vadd.f32 %v5203_v32, %v2928_v2  ;;  %v5267_v20 = vpop.f32.mrf.mxu0 }
 0x1c4   : > { %v3170_v46 = vpop.f32.mrf.mxu1 }
 0x1c5   : > { %v3792_v48 = vadd.f32 %v6891_v12, %v3753_v59  ;;  %v3752_v11 = vmul.f32 %v6881_v0, %v3713_v17  ;;  %v3716_v21 = vadd.f32 %v5267_v20, %v3322_v25  ;;  %v3321_v55 = vadd.f32 %v3170_v46, %v2927_v43  ;;  %v3564_v38 = vpop.f32.mrf.mxu0 }
 0x1c6   : > { %v5206_v45 = vpop.f32.mrf.mxu1  ;;  %v2931_v17 = vadd.f32 %v6773_v58, %v2537_v15 }
 0x1c7   : > { %v3824_v47 = vmax.f32 %v3792_v48, 0.0  ;;  %v3791_v2 = vadd.f32 %v6891_v12, %v3752_v11  ;;  %v3755_v60 = vmul.f32 %v6881_v0, %v3716_v21  ;;  %v3715_v24 = vadd.f32 %v3564_v38, %v3321_v55  ;;  %v5270_v3 = vpop.f32.mrf.mxu0 }
 0x1c8   : > { %v3324_v61 = vadd.f32 %v5206_v45, %v2930_v30  ;;  %v3180_v52 = vpop.f32.mrf.mxu1  ;;  %v2934_v48 = vadd.f32 %v6777_v8, %v2540_v57  ;;  %v2539_v11 = vadd.f32 %v6779_v34, %v6681_v26  ;;  %v2542_v21 = vadd.f32 %v6783_v37, %v6684_v23 }
 0x1c9   : > { %3857 = vst.msk [vmem:[%s6907_s24 + $0x8] sm:$0xff] %vm3855_vm1, %v3824_v47  ;;  %v3823_v56 = vmax.f32 %v3791_v2, 0.0  ;;  %v3794_v33 = vadd.f32 %v6891_v12, %v3755_v60  ;;  %v3754_v32 = vmul.f32 %v6881_v0, %v3715_v24  ;;  %v3323_v43 = vadd.f32 %v3180_v52, %v2929_v39  ;;  %v3574_v59 = vpop.f32.mrf.mxu0 }
 0x1ca   : > { %v3718_v25 = vadd.f32 %v5270_v3, %v3324_v61  ;;  %v5209_v20 = vpop.f32.mrf.mxu1  ;;  %v2541_v8 = vadd.f32 %v6787_v7, %v6687_v6  ;;  %v2933_v24 = vadd.f32 %v6781_v22, %v2539_v11  ;;  %v2936_v3 = vadd.f32 %v6785_v1, %v2542_v21 }
 0x1cb   : > { %3856 = vst.msk [vmem:[%s6907_s24] sm:$0xff] %vm3855_vm1, %v3823_v56  ;;  %v3826_v41 = vmax.f32 %v3794_v33, 0.0  ;;  %v3793_v10 = vadd.f32 %v6891_v12, %v3754_v32  ;;  %v3717_v14 = vadd.f32 %v3574_v59, %v3323_v43  ;;  %v3326_v4 = vadd.f32 %v5209_v20, %v2932_v42  ;;  %v5273_v46 = vpop.f32.mrf.mxu0 }
 0x1cc   : > { %v3757_v58 = vmul.f32 %v6881_v0, %v3718_v25  ;;  %v3190_v55 = vpop.f32.mrf.mxu1  ;;  %v2544_v6 = vadd.f32 %v6791_v27, %v6690_v51  ;;  %v2935_v32 = vadd.f32 %v6789_v40, %v2541_v8  ;;  %v2543_v22 = vadd.f32 %v6795_v53, %v6693_v54 }
 0x1cd   : > { %3859 = vst.msk [vmem:[%s6907_s24 + $0x18] sm:$0xff] %vm3855_vm1, %v3826_v41  ;;  %v3825_v38 = vmax.f32 %v3793_v10, 0.0  ;;  %v3756_v30 = vmul.f32 %v6881_v0, %v3717_v14  ;;  %v3720_v39 = vadd.f32 %v5273_v46, %v3326_v4  ;;  %v3325_v15 = vadd.f32 %v3190_v55, %v2931_v17  ;;  %v3584_v45 = vpop.f32.mrf.mxu0 }
 0x1ce   : > { %v3796_v47 = vadd.f32 %v6891_v12, %v3757_v58  ;;  %v5212_v26 = vpop.f32.mrf.mxu1  ;;  %v2938_v20 = vadd.f32 %v6793_v9, %v2544_v6  ;;  %v2937_v46 = vadd.f32 %v6797_v13, %v2543_v22  ;;  %v2545_v11 = vadd.f32 %v6803_v44, %v6699_v63  ;;  %v7176_v6 = vld [vmem:[#allocation2_spill] sm:$0xff] }
 0x1cf   : > { %3858 = vst.msk [vmem:[%s6907_s24 + $0x10] sm:$0xff] %vm3855_vm1, %v3825_v38  ;;  %v3795_v23 = vadd.f32 %v6891_v12, %v3756_v30  ;;  %v3759_v34 = vmul.f32 %v6881_v0, %v3720_v39  ;;  %v3719_v37 = vadd.f32 %v3584_v45, %v3325_v15  ;;  %v3328_v2 = vadd.f32 %v5212_v26, %v2934_v48  ;;  %v5276_v60 = vpop.f32.mrf.mxu0 }
 0x1d0   : > { %v3828_v7 = vmax.f32 %v3796_v47, 0.0  ;;  %v3200_v42 = vpop.f32.mrf.mxu1  ;;  %v2546_v48 = vadd.f32 %v6799_v18, %v6696_v5  ;;  %v2548_v13 = vadd.f32 %v6807_v62, %v6702_v31  ;;  %v2939_v26 = vadd.f32 %v6805_v50, %v2545_v11 }
 0x1d1   : > { %v3827_v57 = vmax.f32 %v3795_v23, 0.0  ;;  %v3798_v61 = vadd.f32 %v6891_v12, %v3759_v34  ;;  %v3758_v52 = vmul.f32 %v6881_v0, %v3719_v37  ;;  %v3722_v56 = vadd.f32 %v5276_v60, %v3328_v2  ;;  %v3594_v33 = vpop.f32.mrf.mxu0 }
 0x1d2   : > { %3861 = vst.msk [vmem:[%s6907_s24 + $0x28] sm:$0xff] %vm3855_vm1, %v3828_v7  ;;  %v3327_v1 = vadd.f32 %v3200_v42, %v2933_v24  ;;  %v5215_v43 = vpop.f32.mrf.mxu1  ;;  %v2940_v47 = vadd.f32 %v6801_v36, %v2546_v48  ;;  %v2547_v31 = vadd.f32 %v6811_v49, %v6705_v16  ;;  %v7177_v7 = vld [vmem:[#allocation17_spill] sm:$0xff] }
 0x1d3   : > { %3860 = vst.msk [vmem:[%s6907_s24 + $0x20] sm:$0xff] %vm3855_vm1, %v3827_v57  ;;  %v3830_v51 = vmax.f32 %v3798_v61, 0.0  ;;  %v3797_v27 = vadd.f32 %v6891_v12, %v3758_v52  ;;  %v3761_v59 = vmul.f32 %v6881_v0, %v3722_v56  ;;  %v3330_v17 = vadd.f32 %v5215_v43, %v2936_v3  ;;  %v5279_v25 = vpop.f32.mrf.mxu0  ;;  %v7178_v56 = vld [vmem:[#allocation16_spill] sm:$0xff] }
 0x1d4   : > { %v3721_v40 = vadd.f32 %v3594_v33, %v3327_v1  ;;  %v3210_v41 = vpop.f32.mrf.mxu1  ;;  %v2942_v3 = vadd.f32 %v6809_v28, %v2548_v13  ;;  %v2550_v36 = vadd.f32 %v7177_v7, %v7176_v6  ;;  %v2941_v33 = vadd.f32 %v7178_v56, %v2547_v31  ;;  %v7191_v7 = vld [vmem:[#allocation7_spill] sm:$0xff] }
 0x1d5   : > { %3863 = vst.msk [vmem:[%s6907_s24 + $0x38] sm:$0xff] %vm3855_vm1, %v3830_v51  ;;  %v3829_v54 = vmax.f32 %v3797_v27, 0.0  ;;  %v3800_v53 = vadd.f32 %v6891_v12, %v3761_v59  ;;  %v3724_v10 = vadd.f32 %v5279_v25, %v3330_v17  ;;  %v3329_v14 = vadd.f32 %v3210_v41, %v2935_v32  ;;  %v3604_v4 = vpop.f32.mrf.mxu0  ;;  %v7179_v59 = vld [vmem:[#allocation18_spill] sm:$0xff]  ;;  %v7180_v25 = vld [vmem:[#allocation4_spill] sm:$0xff]  ;;  %v7182_v41 = vld [vmem:[#allocation3_spill] sm:$0xff] }
 0x1d6   : > { %v3760_v9 = vmul.f32 %v6881_v0, %v3721_v40  ;;  %v5218_v21 = vpop.f32.mrf.mxu1  ;;  %v2944_v17 = vadd.f32 %v7179_v59, %v2550_v36  ;;  %v7192_v36 = vld [vmem:[#allocation27_spill] sm:$0xff] }
 0x1d7   : > { %3862 = vst.msk [vmem:[%s6907_s24 + $0x30] sm:$0xff] %vm3855_vm1, %v3829_v54  ;;  %v3832_v58 = vmax.f32 %v3800_v53, 0.0  ;;  %v3763_v55 = vmul.f32 %v6881_v0, %v3724_v10  ;;  %v3723_v38 = vadd.f32 %v3604_v4, %v3329_v14  ;;  %v3332_v30 = vadd.f32 %v5218_v21, %v2938_v20  ;;  %v5282_v39 = vpop.f32.mrf.mxu0  ;;  %v7181_v20 = vld [vmem:[#allocation19_spill] sm:$0xff]  ;;  %v7183_v54 = vld [vmem:[#allocation21_spill] sm:$0xff] }
 0x1d8   : > { %v3799_v15 = vadd.f32 %v6891_v12, %v3760_v9  ;;  %v3220_v5 = vpop.f32.mrf.mxu1  ;;  %v2549_v40 = vadd.f32 %v7181_v20, %v7180_v25  ;;  %v2552_v53 = vadd.f32 %v7183_v54, %v7182_v41  ;;  %v7184_v21 = vld [vmem:[#allocation5_spill] sm:$0xff]  ;;  %v7195_v20 = vld [vmem:[#allocation8_spill] sm:$0xff] }
 0x1d9   : > { %3865 = vst.msk [vmem:[%s6907_s24 + $0x48] sm:$0xff] %vm3855_vm1, %v3832_v58  ;;  %v3802_v63 = vadd.f32 %v6891_v12, %v3763_v55  ;;  %v3762_v18 = vmul.f32 %v6881_v0, %v3723_v38  ;;  %v3726_v44 = vadd.f32 %v5282_v39, %v3332_v30  ;;  %v3331_v45 = vadd.f32 %v3220_v5, %v2937_v46  ;;  %v3614_v8 = vpop.f32.mrf.mxu0  ;;  %v7185_v58 = vld [vmem:[#allocation23_spill] sm:$0xff]  ;;  %v7197_v54 = vld [vmem:[#allocation9_spill] sm:$0xff] }
 0x1da   : > { %v3831_v62 = vmax.f32 %v3799_v15, 0.0  ;;  %v5221_v23 = vpop.f32.mrf.mxu1  ;;  %v2551_v55 = vadd.f32 %v7185_v58, %v7184_v21  ;;  %v7199_v58 = vld [vmem:[#allocation10_spill] sm:$0xff] }
 0x1db   : > { %v3834_v34 = vmax.f32 %v3802_v63, 0.0  ;;  %v3801_v37 = vadd.f32 %v6891_v12, %v3762_v18  ;;  %v3765_v2 = vmul.f32 %v6881_v0, %v3726_v44  ;;  %v3725_v60 = vadd.f32 %v3614_v8, %v3331_v45  ;;  %v5285_v24 = vpop.f32.mrf.mxu0  ;;  %v7186_v18 = vld [vmem:[#allocation20_spill] sm:$0xff]  ;;  %v7187_v45 = vld [vmem:[#allocation22_spill] sm:$0xff] }
 0x1dc   : > { %3864 = vst.msk [vmem:[%s6907_s24 + $0x40] sm:$0xff] %vm3855_vm1, %v3831_v62  ;;  %v3334_v50 = vadd.f32 %v5221_v23, %v2940_v47  ;;  %v3230_v42 = vpop.f32.mrf.mxu1  ;;  %v2943_v44 = vadd.f32 %v7186_v18, %v2549_v40  ;;  %v2946_v8 = vadd.f32 %v7187_v45, %v2552_v53  ;;  %v7188_v47 = vld [vmem:[#allocation6_spill] sm:$0xff]  ;;  %v7196_v40 = vld [vmem:[#allocation29_spill] sm:$0xff]  ;;  %v7198_v53 = vld [vmem:[#allocation31_spill] sm:$0xff] }
 0x1dd   : > { %3867 = vst.msk [vmem:[%s6907_s24 + $0x58] sm:$0xff] %vm3855_vm1, %v3834_v34  ;;  %v3833_v16 = vmax.f32 %v3801_v37, 0.0  ;;  %v3804_v49 = vadd.f32 %v6891_v12, %v3765_v2  ;;  %v3764_v57 = vmul.f32 %v6881_v0, %v3725_v60  ;;  %v3333_v61 = vadd.f32 %v3230_v42, %v2939_v26  ;;  %v3624_v52 = vpop.f32.mrf.mxu0  ;;  %v7189_v26 = vld [vmem:[#allocation25_spill] sm:$0xff] }
 0x1de   : > { %v3728_v28 = vadd.f32 %v5285_v24, %v3334_v50  ;;  %v5224_v32 = vpop.f32.mrf.mxu1  ;;  %v2554_v31 = vadd.f32 %v7189_v26, %v7188_v47  ;;  %v2553_v50 = vadd.f32 %v7192_v36, %v7191_v7  ;;  %v2556_v41 = vadd.f32 %v7196_v40, %v7195_v20  ;;  %v7203_v26 = vld [vmem:[#allocation11_spill] sm:$0xff]  ;;  %v7206_v36 = vld [vmem:[#allocation12_spill] sm:$0xff]  ;;  %v7210_v40 = vld [vmem:[#allocation13_spill] sm:$0xff] }
 0x1df   : > { %3866 = vst.msk [vmem:[%s6907_s24 + $0x50] sm:$0xff] %vm3855_vm1, %v3833_v16  ;;  %v3836_v22 = vmax.f32 %v3804_v49, 0.0  ;;  %v3803_v1 = vadd.f32 %v6891_v12, %v3764_v57  ;;  %v3727_v43 = vadd.f32 %v3624_v52, %v3333_v61  ;;  %v3336_v51 = vadd.f32 %v5224_v32, %v2942_v3  ;;  %v5288_v27 = vpop.f32.mrf.mxu0  ;;  %v7190_v3 = vld [vmem:[#allocation24_spill] sm:$0xff] }
 0x1e0   : > { %v3767_v10 = vmul.f32 %v6881_v0, %v3728_v28  ;;  %v3240_v14 = vpop.f32.mrf.mxu1  ;;  %v2945_v6 = vadd.f32 %v7190_v3, %v2551_v55  ;;  %v7200_v55 = vld [vmem:[#allocation33_spill] sm:$0xff] }
 0x1e1   : > { %3869 = vst.msk [vmem:[%s6907_s24 + $0x68] sm:$0xff] %vm3855_vm1, %v3836_v22  ;;  %v3835_v4 = vmax.f32 %v3803_v1, 0.0  ;;  %v3766_v46 = vmul.f32 %v6881_v0, %v3727_v43  ;;  %v3730_v48 = vadd.f32 %v5288_v27, %v3336_v51  ;;  %v3335_v11 = vadd.f32 %v3240_v14, %v2941_v33  ;;  %v3634_v9 = vpop.f32.mrf.mxu0  ;;  %v7193_v33 = vld [vmem:[#allocation26_spill] sm:$0xff] }
 0x1e2   : > { %v3806_v38 = vadd.f32 %v6891_v12, %v3767_v10  ;;  %v5227_v30 = vpop.f32.mrf.mxu1  ;;  %v2948_v28 = vadd.f32 %v7193_v33, %v2554_v31  ;;  %v2555_v10 = vadd.f32 %v7198_v53, %v7197_v54  ;;  %v7204_v31 = vld [vmem:[#allocation35_spill] sm:$0xff]  ;;  %v7211_v54 = vld [vmem:[#allocation14_spill] sm:$0xff]  ;;  %v7212_v53 = vld [vmem:[#allocation40_spill] sm:$0xff] }
 0x1e3   : > { %3868 = vst.msk [vmem:[%s6907_s24 + $0x60] sm:$0xff] %vm3855_vm1, %v3835_v4  ;;  %v3805_v39 = vadd.f32 %v6891_v12, %v3766_v46  ;;  %v3769_v13 = vmul.f32 %v6881_v0, %v3730_v48  ;;  %v3729_v15 = vadd.f32 %v3634_v9, %v3335_v11  ;;  %v3338_v5 = vadd.f32 %v5227_v30, %v2944_v17  ;;  %v5291_v63 = vpop.f32.mrf.mxu0  ;;  %v7194_v17 = vld [vmem:[#allocation28_spill] sm:$0xff] }
 0x1e4   : > { %v3838_v62 = vmax.f32 %v3806_v38, 0.0  ;;  %v3250_v23 = vpop.f32.mrf.mxu1  ;;  %v2947_v25 = vadd.f32 %v7194_v17, %v2553_v50  ;;  %v2558_v38 = vadd.f32 %v7200_v55, %v7199_v58  ;;  %v7207_v50 = vld [vmem:[#allocation37_spill] sm:$0xff]  ;;  %v7213_v58 = vld [vmem:[#allocation15_spill] sm:$0xff] }
 0x1e5   : > { %v3837_v34 = vmax.f32 %v3805_v39, 0.0  ;;  %v3808_v37 = vadd.f32 %v6891_v12, %v3769_v13  ;;  %v3768_v2 = vmul.f32 %v6881_v0, %v3729_v15  ;;  %v3732_v60 = vadd.f32 %v5291_v63, %v3338_v5  ;;  %v3644_v24 = vpop.f32.mrf.mxu0 }
 0x1e6   : > { %3871 = vst.msk [vmem:[%s6907_s24 + $0x78] sm:$0xff] %vm3855_vm1, %v3838_v62  ;;  %v3337_v42 = vadd.f32 %v3250_v23, %v2943_v44  ;;  %v5230_v16 = vpop.f32.mrf.mxu1  ;;  %v7201_v44 = vld [vmem:[#allocation30_spill] sm:$0xff]  ;;  %v2557_v62 = vadd.f32 %v7204_v31, %v7203_v26  ;;  %v2561_v55 = vadd.f32 %v6869_v19, %v7213_v58 }
 0x1e7   : > { %3870 = vst.msk [vmem:[%s6907_s24 + $0x70] sm:$0xff] %vm3855_vm1, %v3837_v34  ;;  %v3840_v49 = vmax.f32 %v3808_v37, 0.0  ;;  %v3807_v57 = vadd.f32 %v6891_v12, %v3768_v2  ;;  %v3771_v61 = vmul.f32 %v6881_v0, %v3732_v60  ;;  %v3340_v52 = vadd.f32 %v5230_v16, %v2946_v8  ;;  %v5294_v56 = vpop.f32.mrf.mxu0  ;;  %v7202_v8 = vld [vmem:[#allocation32_spill] sm:$0xff] }
 0x1e8   : > { %v3731_v32 = vadd.f32 %v3644_v24, %v3337_v42  ;;  %v3260_v22 = vpop.f32.mrf.mxu1  ;;  %v2950_v45 = vadd.f32 %v7201_v44, %v2556_v41  ;;  %v2949_v47 = vadd.f32 %v7202_v8, %v2555_v10  ;;  %v2560_v42 = vadd.f32 %v7207_v50, %v7206_v36 }
 0x1e9   : > { %3873 = vst.msk [vmem:[%s6907_s24 + $0x88] sm:$0xff] %vm3855_vm1, %v3840_v49  ;;  %v3839_v1 = vmax.f32 %v3807_v57, 0.0  ;;  %v3810_v43 = vadd.f32 %v6891_v12, %v3771_v61  ;;  %v3734_v51 = vadd.f32 %v5294_v56, %v3340_v52  ;;  %v3339_v27 = vadd.f32 %v3260_v22, %v2945_v6  ;;  %v3654_v59 = vpop.f32.mrf.mxu0  ;;  %v7205_v6 = vld [vmem:[#allocation34_spill] sm:$0xff] }
 0x1ea   : > { %v3770_v14 = vmul.f32 %v6881_v0, %v3731_v32  ;;  %v5233_v4 = vpop.f32.mrf.mxu1  ;;  %v2952_v7 = vadd.f32 %v7205_v6, %v2558_v38  ;;  %v2559_v41 = vadd.f32 %v6859_v35, %v7210_v40  ;;  %v2562_v10 = vadd.f32 %v7212_v53, %v7211_v54 }
 0x1eb   : > { %3872 = vst.msk [vmem:[%s6907_s24 + $0x80] sm:$0xff] %vm3855_vm1, %v3839_v1  ;;  %v3842_v46 = vmax.f32 %v3810_v43, 0.0  ;;  %v3773_v48 = vmul.f32 %v6881_v0, %v3734_v51  ;;  %v3733_v11 = vadd.f32 %v3654_v59, %v3339_v27  ;;  %v3342_v9 = vadd.f32 %v5233_v4, %v2948_v28  ;;  %v5297_v21 = vpop.f32.mrf.mxu0  ;;  %v7208_v28 = vld [vmem:[#allocation36_spill] sm:$0xff] }
 0x1ec   : > { %v3809_v30 = vadd.f32 %v6891_v12, %v3770_v14  ;;  %v3270_v39 = vpop.f32.mrf.mxu1  ;;  %v2951_v32 = vadd.f32 %v7208_v28, %v2557_v62  ;;  %v2956_v44 = vadd.f32 %v6867_v29, %v2562_v10 }
 0x1ed   : > { %3875 = vst.msk [vmem:[%s6907_s24 + $0x98] sm:$0xff] %vm3855_vm1, %v3842_v46  ;;  %v3812_v13 = vadd.f32 %v6891_v12, %v3773_v48  ;;  %v3772_v15 = vmul.f32 %v6881_v0, %v3733_v11  ;;  %v3736_v5 = vadd.f32 %v5297_v21, %v3342_v9  ;;  %v3341_v63 = vadd.f32 %v3270_v39, %v2947_v25  ;;  %v3664_v18 = vpop.f32.mrf.mxu0  ;;  %v7209_v25 = vld [vmem:[#allocation38_spill] sm:$0xff] }
 0x1ee   : > { %v3841_v23 = vmax.f32 %v3809_v30, 0.0  ;;  %v5236_v34 = vpop.f32.mrf.mxu1  ;;  %v2954_v20 = vadd.f32 %v7209_v25, %v2560_v42 }
 0x1ef   : > { %v3844_v37 = vmax.f32 %v3812_v13, 0.0  ;;  %v3811_v2 = vadd.f32 %v6891_v12, %v3772_v15  ;;  %v3775_v60 = vmul.f32 %v6881_v0, %v3736_v5  ;;  %v3735_v24 = vadd.f32 %v3664_v18, %v3341_v63  ;;  %v5300_v3 = vpop.f32.mrf.mxu0  ;;  %v7214_v63 = vld [vmem:[#allocation39_spill] sm:$0xff] }
 0x1f0   : > { %3874 = vst.msk [vmem:[%s6907_s24 + $0x90] sm:$0xff] %vm3855_vm1, %v3841_v23  ;;  %v3344_v16 = vadd.f32 %v5236_v34, %v2950_v45  ;;  %v3280_v49 = vpop.f32.mrf.mxu1  ;;  %v2953_v18 = vadd.f32 %v7214_v63, %v2559_v41  ;;  %v7215_v23 = vld [vmem:[#allocation41_spill] sm:$0xff] }
 0x1f1   : > { %3877 = vst.msk [vmem:[%s6907_s24 + $0xa8] sm:$0xff] %vm3855_vm1, %v3844_v37  ;;  %v3843_v57 = vmax.f32 %v3811_v2, 0.0  ;;  %v3814_v61 = vadd.f32 %v6891_v12, %v3775_v60  ;;  %v3774_v52 = vmul.f32 %v6881_v0, %v3735_v24  ;;  %v3343_v56 = vadd.f32 %v3280_v49, %v2949_v47  ;;  %v3674_v33 = vpop.f32.mrf.mxu0 }
 0x1f2   : > { %v3738_v22 = vadd.f32 %v5300_v3, %v3344_v16  ;;  %v5239_v1 = vpop.f32.mrf.mxu1  ;;  %v2955_v34 = vadd.f32 %v7215_v23, %v2561_v55 }
 0x1f3   : > { %3876 = vst.msk [vmem:[%s6907_s24 + $0xa0] sm:$0xff] %vm3855_vm1, %v3843_v57  ;;  %v3846_v43 = vmax.f32 %v3814_v61, 0.0  ;;  %v3813_v51 = vadd.f32 %v6891_v12, %v3774_v52  ;;  %v3737_v27 = vadd.f32 %v3674_v33, %v3343_v56  ;;  %v3346_v59 = vadd.f32 %v5239_v1, %v2952_v7  ;;  %v5303_v17 = vpop.f32.mrf.mxu0 }
 0x1f4   : > { %v3777_v14 = vmul.f32 %v6881_v0, %v3738_v22  ;;  %v3290_v4 = vpop.f32.mrf.mxu1 }
 0x1f5   : > { %3879 = vst.msk [vmem:[%s6907_s24 + $0xb8] sm:$0xff] %vm3855_vm1, %v3846_v43  ;;  %v3845_v46 = vmax.f32 %v3813_v51, 0.0  ;;  %v3776_v48 = vmul.f32 %v6881_v0, %v3737_v27  ;;  %v3740_v11 = vadd.f32 %v5303_v17, %v3346_v59  ;;  %v3345_v9 = vadd.f32 %v3290_v4, %v2951_v32  ;;  %v3684_v21 = vpop.f32.mrf.mxu0 }
 0x1f6   : > { %v3816_v38 = vadd.f32 %v6891_v12, %v3777_v14  ;;  %v5242_v35 = vpop.f32.mrf.mxu1 }
 0x1f7   : > { %3878 = vst.msk [vmem:[%s6907_s24 + $0xb0] sm:$0xff] %vm3855_vm1, %v3845_v46  ;;  %v3815_v30 = vadd.f32 %v6891_v12, %v3776_v48  ;;  %v3779_v39 = vmul.f32 %v6881_v0, %v3740_v11  ;;  %v3739_v13 = vadd.f32 %v3684_v21, %v3345_v9  ;;  %v3348_v15 = vadd.f32 %v5242_v35, %v2954_v20  ;;  %v5306_v5 = vpop.f32.mrf.mxu0 }
 0x1f8   : > { %v3848_v45 = vmax.f32 %v3816_v38, 0.0  ;;  %v3300_v19 = vpop.f32.mrf.mxu1 }
 0x1f9   : > { %v3847_v8 = vmax.f32 %v3815_v30, 0.0  ;;  %v3818_v47 = vadd.f32 %v6891_v12, %v3779_v39  ;;  %v3778_v26 = vmul.f32 %v6881_v0, %v3739_v13  ;;  %v3742_v31 = vadd.f32 %v5306_v5, %v3348_v15  ;;  %v3694_v62 = vpop.f32.mrf.mxu0 }
 0x1fa   : > { %3881 = vst.msk [vmem:[%s6907_s24 + $0xc8] sm:$0xff] %vm3855_vm1, %v3848_v45  ;;  %v3347_v37 = vadd.f32 %v3300_v19, %v2953_v18  ;;  %v5245_v2 = vpop.f32.mrf.mxu1 }
 0x1fb   : > { %3880 = vst.msk [vmem:[%s6907_s24 + $0xc0] sm:$0xff] %vm3855_vm1, %v3847_v8  ;;  %v3850_v29 = vmax.f32 %v3818_v47, 0.0  ;;  %v3817_v60 = vadd.f32 %v6891_v12, %v3778_v26  ;;  %v3781_v24 = vmul.f32 %v6881_v0, %v3742_v31  ;;  %v3350_v3 = vadd.f32 %v5245_v2, %v2956_v44  ;;  %v5309_v6 = vpop.f32.mrf.mxu0 }
 0x1fc   : > { %v3741_v7 = vadd.f32 %v3694_v62, %v3347_v37  ;;  %v3310_v36 = vpop.f32.mrf.mxu1 }
 0x1fd   : > { %3883 = vst.msk [vmem:[%s6907_s24 + $0xd8] sm:$0xff] %vm3855_vm1, %v3850_v29  ;;  %v3849_v50 = vmax.f32 %v3817_v60, 0.0  ;;  %v3820_v42 = vadd.f32 %v6891_v12, %v3781_v24  ;;  %v3744_v16 = vadd.f32 %v5309_v6, %v3350_v3  ;;  %v3349_v49 = vadd.f32 %v3310_v36, %v2955_v34  ;;  %v3704_v61 = vpop.f32.mrf.mxu0 }
 0x1fe   : > { %v3780_v57 = vmul.f32 %v6881_v0, %v3741_v7 }
 0x1ff   : > { %3882 = vst.msk [vmem:[%s6907_s24 + $0xd0] sm:$0xff] %vm3855_vm1, %v3849_v50  ;;  %v3852_v52 = vmax.f32 %v3820_v42, 0.0  ;;  %v3783_v56 = vmul.f32 %v6881_v0, %v3744_v16  ;;  %v3743_v33 = vadd.f32 %v3704_v61, %v3349_v49 }
 0x200   : > { %v3819_v28 = vadd.f32 %v6891_v12, %v3780_v57 }
 0x201   : > { %3885 = vst.msk [vmem:[%s6907_s24 + $0xe8] sm:$0xff] %vm3855_vm1, %v3852_v52  ;;  %v3822_v32 = vadd.f32 %v6891_v12, %v3783_v56  ;;  %v3782_v22 = vmul.f32 %v6881_v0, %v3743_v33 }
 0x202   : > { %v3851_v1 = vmax.f32 %v3819_v28, 0.0 }
 0x203   : > { %v3854_v43 = vmax.f32 %v3822_v32, 0.0  ;;  %v3821_v51 = vadd.f32 %v6891_v12, %v3782_v22 }
 0x204   : > { %3884 = vst.msk [vmem:[%s6907_s24 + $0xe0] sm:$0xff] %vm3855_vm1, %v3851_v1 }
 0x205   : > { %3888 = vst.msk [vmem:[%s6907_s24 + $0xf8] sm:$0x7f] %vm3887_vm2, %v3854_v43  ;;  %v3853_v27 = vmax.f32 %v3821_v51, 0.0 }
 0x207   : > { %3886 = vst.msk [vmem:[%s6907_s24 + $0xf0] sm:$0xff] %vm3855_vm1, %v3853_v27 }
 0x208 PF: > { %s14_s17 = sadd.s32 1, %s5373_s17   ;;  %s7216_s15 = smov %s5369_s16 }
 0x209   : > { %p11_p5 = scmp.ge.s32.totalorder %s14_s17, 4   ;;  %s7217_s16 = smov %s7219_s18 }
 0x20b   :  { %13 = sbr.rel (!%p11_p5) target bundleno = 2 (0x2), region = 83 }

// kernel: inception_b.5
= control target key start
LH: loop header
LB: loop body
LE: loop exit
PB: predicated region body
PF: predicated region fallthrough
CT: control target
= control target key end

     0   :  { %s2539_s15 = smov 0   ;;  %s2541_s16 = smov 0   ;;  %s3232_s0 = inlined_call_operand.vmem [shape: f32[2,256,32], index: 0, kind: input, shape index: {}]   ;;  %s3233_s1 = inlined_call_operand.vmem [shape: f32[9,32,384], index: 1, kind: input, shape index: {}]   ;;  %s3234_s2 = inlined_call_operand.vmem [shape: f32[1,384], index: 2, kind: input, shape index: {}]   ;;  %s3235_s3 = inlined_call_operand.vmem [shape: f32[1,384], index: 3, kind: input, shape index: {}]   ;;  %s3236_s4 = inlined_call_operand.vmem [shape: f32[2,56,384], index: 4, kind: output, shape index: {}]  }
   0x1   :  { %s2543_s17 = smov 0   ;;  %s2545_s18 = smov 0  }
   0x2   :  { %s2547_s19 = smov 0   ;;  %s2549_s20 = smov 0  }
   0x3   :  { %s2551_s21 = smov 0   ;;  %s2553_s22 = smov 0  }
   0x4   :  { %s2555_s23 = smov 0  }
   0x5 LB: > { %s1885_s24 = sadd.s32 4294967295, %s2510_s23   ;;  %s23_s25 = sadd.s32 1, %s2502_s21  ;;  %s2510_s23 = sphi %s2555_s23, %s14_s23   ;;  %s2506_s22 = sphi %s2553_s22, %s3245_s22   ;;  %s2502_s21 = sphi %s2551_s21, %s3244_s21   ;;  %s2498_s20 = sphi %s2549_s20, %s3243_s20   ;;  %s2494_s19 = sphi %s2547_s19, %s3242_s19   ;;  %s2490_s18 = sphi %s2545_s18, %s3241_s18   ;;  %s2486_s17 = sphi %s2543_s17, %s3240_s17   ;;  %s2482_s16 = sphi %s2541_s16, %s3239_s16   ;;  %s2478_s15 = sphi %s2539_s15, %s3238_s15  }
   0x6   : > { %p24_p0 = scmp.ge.s32.totalorder %s23_s25, 3  ;;  %s26_s26 = sadd.s32 1, %s2506_s22 }
   0x7   : > { %s59_s27 = sadd.s32 1, %s2490_s18  ;;  %p66_p1 = scmp.ne.s32.totalorder %s2490_s18, %s2486_s17 }
   0x8   : > { %s3247_s25 = smov (%p24_p0, %s23_s25), 0  ;;  %s3249_s26 = smov (!%p24_p0, %s26_s26), %s2506_s22 }
   0x9   : > { %s56_s28 = ssub.s32 %s2502_s21, %s3247_s25  ;;  %p67_p2 = scmp.eq.s32.totalorder %s2510_s23, 0 }
   0xa   : > { %p28_p3 = scmp.ge.s32.totalorder %s3249_s26, 2  ;;  %p57_p4 = scmp.eq.s32.totalorder %s56_s28, 0 }
   0xb   : > { %p68_p5 = por %p67_p2, %p66_p1  ;;  %s139_s29 = sadd.s32 1, %s2482_s16 }
   0xc   : > { %s3251_s26 = smov (%p28_p3, %s3249_s26), 0  ;;  %p149_p6 = scmp.ne.s32.totalorder %s2482_s16, %s2478_s15 }
   0xd   : > { %s2600_s30 = scalar_select %p57_p4, %s2490_s18, %s59_s27  }
   0xe   : > { %s134_s5 = ssub.s32 %s2506_s22, %s3251_s26  ;;  %p150_p7 = scmp.eq.s32.totalorder %s1885_s24, 5 }
   0xf   : > { %s136_s6 = sor.u32 %s134_s5, %s56_s28  ;;  %p1888_p10 = scmp.ge.s32.totalorder %s2510_s23, 6 }
  0x10   : > { %p137_p8 = scmp.eq.s32.totalorder %s136_s6, 0  ;;  %p2606_p9 = por %p150_p7, %p149_p6 }
  0x11   : > { %172 = sbr.rel (%p1888_p10) target bundleno = 45 (0x2d), region = 16 }
  0x12   : > { %s2611_s8 = scalar_select %p137_p8, %s2482_s16, %s139_s29  }
  0x16   : > { %183 = sbr.rel (!%p68_p5) target bundleno = 45 (0x2d), region = 24  ;;  %s185_s9 = sand.u32 (%p68_p5), 1, %s2490_s18  }
  0x17   : > { %s1889_s10 = sshll.u32 (%p68_p5), %s2502_s21, 3  ;;  %s2362_s11 = smul.u32 (%p68_p5), 288, %s185_s9 }
  0x18   : > { %s2619_s14 = scalar_lea.vmem (%p68_p5), %s3233_s1, %s1889_s10 }
  0x19   : > { %v288_v0 = vld [vmem:[%s2619_s14] sm:$0xff] (%p68_p5)  ;;  %v290_v1 = vld [vmem:[%s2619_s14 + $0x18] sm:$0xff] (%p68_p5)  ;;  %v292_v2 = vld [vmem:[%s2619_s14 + $0x30] sm:$0xff] (%p68_p5)  ;;  %s2627_s24 = scalar_lea.vmem (%p68_p5), [#allocation2], %s2362_s11 }
  0x1a   : > { %v294_v3 = vld [vmem:[%s2619_s14 + $0x48] sm:$0xff] (%p68_p5)  ;;  %v296_v4 = vld [vmem:[%s2619_s14 + $0x60] sm:$0xff] (%p68_p5)  ;;  %v298_v5 = vld [vmem:[%s2619_s14 + $0x78] sm:$0xff] (%p68_p5)  ;;  %289 = vst [vmem:[%s2627_s24] sm:$0xff] (%p68_p5), %v288_v0 }
  0x1b   : > { %291 = vst [vmem:[%s2627_s24 + $0x8] sm:$0xff] %v290_v1  ;;  %293 = vst [vmem:[%s2627_s24 + $0x10] sm:$0xff] %v292_v2  ;;  %v300_v6 = vld [vmem:[%s2619_s14 + $0x90] sm:$0xff]  ;;  %v302_v7 = vld [vmem:[%s2619_s14 + $0xa8] sm:$0xff] }
  0x1c   : > { %295 = vst [vmem:[%s2627_s24 + $0x18] sm:$0xff] %v294_v3  ;;  %297 = vst [vmem:[%s2627_s24 + $0x20] sm:$0xff] %v296_v4  ;;  %v304_v8 = vld [vmem:[%s2619_s14 + $0xc0] sm:$0xff]  ;;  %v306_v9 = vld [vmem:[%s2619_s14 + $0xd8] sm:$0xff] }
  0x1d   : > { %299 = vst [vmem:[%s2627_s24 + $0x28] sm:$0xff] %v298_v5  ;;  %301 = vst [vmem:[%s2627_s24 + $0x30] sm:$0xff] %v300_v6  ;;  %v308_v10 = vld [vmem:[%s2619_s14 + $0xf0] sm:$0xff]  ;;  %v310_v11 = vld [vmem:[%s2619_s14 + $0x108] sm:$0xff] }
  0x1e   : > { %303 = vst [vmem:[%s2627_s24 + $0x38] sm:$0xff] %v302_v7  ;;  %305 = vst [vmem:[%s2627_s24 + $0x40] sm:$0xff] %v304_v8  ;;  %v312_v12 = vld [vmem:[%s2619_s14 + $0x120] sm:$0xff]  ;;  %v314_v13 = vld [vmem:[%s2619_s14 + $0x138] sm:$0xff] }
  0x1f   : > { %307 = vst [vmem:[%s2627_s24 + $0x48] sm:$0xff] %v306_v9  ;;  %309 = vst [vmem:[%s2627_s24 + $0x50] sm:$0xff] %v308_v10  ;;  %v316_v14 = vld [vmem:[%s2619_s14 + $0x150] sm:$0xff]  ;;  %v318_v15 = vld [vmem:[%s2619_s14 + $0x168] sm:$0xff] }
  0x20   : > { %311 = vst [vmem:[%s2627_s24 + $0x58] sm:$0xff] %v310_v11  ;;  %313 = vst [vmem:[%s2627_s24 + $0x60] sm:$0xff] %v312_v12  ;;  %v320_v16 = vld [vmem:[%s2619_s14 + $0x180] sm:$0xff]  ;;  %v322_v17 = vld [vmem:[%s2619_s14 + $0x198] sm:$0xff] }
  0x21   : > { %315 = vst [vmem:[%s2627_s24 + $0x68] sm:$0xff] %v314_v13  ;;  %317 = vst [vmem:[%s2627_s24 + $0x70] sm:$0xff] %v316_v14  ;;  %v324_v18 = vld [vmem:[%s2619_s14 + $0x1b0] sm:$0xff]  ;;  %v326_v19 = vld [vmem:[%s2619_s14 + $0x1c8] sm:$0xff] }
  0x22   : > { %319 = vst [vmem:[%s2627_s24 + $0x78] sm:$0xff] %v318_v15  ;;  %321 = vst [vmem:[%s2627_s24 + $0x80] sm:$0xff] %v320_v16  ;;  %v328_v20 = vld [vmem:[%s2619_s14 + $0x1e0] sm:$0xff]  ;;  %v330_v21 = vld [vmem:[%s2619_s14 + $0x1f8] sm:$0xff] }
  0x23   : > { %323 = vst [vmem:[%s2627_s24 + $0x88] sm:$0xff] %v322_v17  ;;  %325 = vst [vmem:[%s2627_s24 + $0x90] sm:$0xff] %v324_v18  ;;  %v332_v22 = vld [vmem:[%s2619_s14 + $0x210] sm:$0xff]  ;;  %v334_v23 = vld [vmem:[%s2619_s14 + $0x228] sm:$0xff] }
  0x24   : > { %327 = vst [vmem:[%s2627_s24 + $0x98] sm:$0xff] %v326_v19  ;;  %329 = vst [vmem:[%s2627_s24 + $0xa0] sm:$0xff] %v328_v20  ;;  %v336_v24 = vld [vmem:[%s2619_s14 + $0x240] sm:$0xff]  ;;  %v338_v25 = vld [vmem:[%s2619_s14 + $0x258] sm:$0xff] }
  0x25   : > { %331 = vst [vmem:[%s2627_s24 + $0xa8] sm:$0xff] %v330_v21  ;;  %333 = vst [vmem:[%s2627_s24 + $0xb0] sm:$0xff] %v332_v22  ;;  %v340_v26 = vld [vmem:[%s2619_s14 + $0x270] sm:$0xff]  ;;  %v342_v27 = vld [vmem:[%s2619_s14 + $0x288] sm:$0xff] }
  0x26   : > { %335 = vst [vmem:[%s2627_s24 + $0xb8] sm:$0xff] %v334_v23  ;;  %337 = vst [vmem:[%s2627_s24 + $0xc0] sm:$0xff] %v336_v24  ;;  %v344_v28 = vld [vmem:[%s2619_s14 + $0x2a0] sm:$0xff]  ;;  %v346_v29 = vld [vmem:[%s2619_s14 + $0x2b8] sm:$0xff] }
  0x27   : > { %339 = vst [vmem:[%s2627_s24 + $0xc8] sm:$0xff] %v338_v25  ;;  %341 = vst [vmem:[%s2627_s24 + $0xd0] sm:$0xff] %v340_v26  ;;  %v348_v30 = vld [vmem:[%s2619_s14 + $0x2d0] sm:$0xff]  ;;  %v350_v31 = vld [vmem:[%s2619_s14 + $0x2e8] sm:$0xff] }
  0x28   : > { %343 = vst [vmem:[%s2627_s24 + $0xd8] sm:$0xff] %v342_v27  ;;  %345 = vst [vmem:[%s2627_s24 + $0xe0] sm:$0xff] %v344_v28  ;;  %v352_v32 = vld [vmem:[%s2619_s14 + $0x300] sm:$0xff]  ;;  %v354_v33 = vld [vmem:[%s2619_s14 + $0x318] sm:$0xff] }
  0x29   : > { %347 = vst [vmem:[%s2627_s24 + $0xe8] sm:$0xff] %v346_v29  ;;  %349 = vst [vmem:[%s2627_s24 + $0xf0] sm:$0xff] %v348_v30  ;;  %v356_v34 = vld [vmem:[%s2619_s14 + $0x330] sm:$0xff]  ;;  %v358_v35 = vld [vmem:[%s2619_s14 + $0x348] sm:$0xff] }
  0x2a   : > { %351 = vst [vmem:[%s2627_s24 + $0xf8] sm:$0xff] %v350_v31  ;;  %353 = vst [vmem:[%s2627_s24 + $0x100] sm:$0xff] %v352_v32 }
  0x2b   : > { %355 = vst [vmem:[%s2627_s24 + $0x108] sm:$0xff] %v354_v33  ;;  %357 = vst [vmem:[%s2627_s24 + $0x110] sm:$0xff] %v356_v34 }
  0x2c   : > { %359 = vst [vmem:[%s2627_s24 + $0x118] sm:$0xff] %v358_v35 }
  0x2d PF: > { %p1890_p11 = scmp.ge.s32.totalorder %s2510_s23, 1  ;;  %p376_p12 = scmp.lt.s32.totalorder %s2510_s23, 7 }
  0x2f   : > { %p377_p13 = pnand %p1890_p11, %p376_p12 }
  0x30   : > { %s383_s27 = sand.u32 (!%p377_p13), 1, %s2486_s17   ;;  %p418_p0 = scmp.lt.s32.totalorder (!%p377_p13), %s2498_s20, 1 }
  0x31   : > { %380 = sbr.rel (%p377_p13) target bundleno = 399 (0x18f), region = 70  ;;  %p423_p1 = scmp.lt.s32.totalorder (!%p377_p13), %s2494_s19, 2 }
  0x32   : > { %s2363_s28 = smul.u32 (!%p377_p13), 288, %s383_s27  ;;  %s415_s24 = sand.u32 (!%p377_p13), 1, %s2478_s15  }
  0x34   : > { %s2706_s5 = scalar_lea.vmem (!%p377_p13), [#allocation2], %s2363_s28 }
  0x36   : > { %v2512_v36 = vmov 0.0   ;;  %vm2513_vm0 = vmmov 0   ;;  %s419_s29 = scalar_select %p418_p0, %s2498_s20, 1  ;;  %v1896_v37 = vld [vmem:[%s2706_s5 + $0x38] sm:$0xff]  ;;  %v1895_v38 = vld [vmem:[%s2706_s5 + $0x30] sm:$0xff]  ;;  %v1894_v39 = vld [vmem:[%s2706_s5 + $0x28] sm:$0xff] }
  0x37   : > { %2093 = vmatprep.subr.mxu0 %v2512_v36  ;;  %2354 = vmatprep.subr.mxu1 %v2512_v36  ;;  %v1893_v40 = vld [vmem:[%s2706_s5 + $0x20] sm:$0xff]  ;;  %vm452_vm1 = vcmask 261120   ;;  %v1914_v43 = vld [vmem:[%s2706_s5 + $0x58] sm:$0xff]  ;;  %v1913_v47 = vld [vmem:[%s2706_s5 + $0x50] sm:$0xff]  ;;  %s424_s11 = scalar_select %p423_p1, %s2494_s19, 2 }
  0x38   : > { %2101 = vmatprep.mubr.msk.f32.mxu0 %vm2513_vm0, %v2512_v36  ;;  %2113 = vmatprep.mubr.msk.f32.mxu1 %vm2513_vm0, %v2512_v36  ;;  %s1993_s17 = sshll.u32 %s419_s29, 8  ;;  %v439_v44 = vld [vmem:[%s2706_s5 + $0x18] sm:$0xff]  ;;  %v438_v48 = vld [vmem:[%s2706_s5 + $0x10] sm:$0xff]  ;;  %v437_v51 = vld [vmem:[%s2706_s5 + $0x8] sm:$0xff] }
  0x39   : > { %2094 = vmatpush3.msra.mxu0 %v1896_v37  ;;  %2358 = vmatpush3.msra.mxu1 %v1896_v37  ;;  %s2716_s10 = scalar_lea.vmem %s3232_s0, %s1993_s17  ;;  %v1912_v52 = vld [vmem:[%s2706_s5 + $0x48] sm:$0xff]  ;;  %v436_v53 = vld [vmem:[%s2706_s5] sm:$0xff]  ;;  %v1925_v57 = vld [vmem:[%s2706_s5 + $0x78] sm:$0xff]  ;;  %s425_s14 = scalar_lea.vmem %s3234_s2, %s424_s11 }
  0x3a   : > { %2095 = vmatprep.subr.mxu0 %v2512_v36  ;;  %2355 = vmatprep.subr.mxu1 %v2512_v36  ;;  %v440_v41 = vld [vmem:[%s2716_s10 + $0x40] sm:$0xff]  ;;  %v2735_v45 = vld [vmem:[%s2716_s10 + $0x48] sm:$0xff]  ;;  %v2753_v49 = vld [vmem:[%s2716_s10 + $0x50] sm:$0xff]  ;;  %s428_s29 = scalar_lea.vmem %s3235_s3, %s424_s11  ;;  %s2365_s17 = smul.u32 (%p2606_p9), 21, %s2498_s20 }
  0x3b   : > { %2096 = vmatpush3.msra.mxu0 %v1895_v38  ;;  %2359 = vmatpush3.msra.mxu1 %v1895_v38  ;;  %v2723_v42 = vld [vmem:[%s2716_s10 + $0x60] sm:$0xff]  ;;  %v2738_v46 = vld [vmem:[%s2716_s10 + $0x68] sm:$0xff]  ;;  %v2756_v50 = vld [vmem:[%s2716_s10 + $0x70] sm:$0xff] }
  0x3c   : > { %2097 = vmatprep.subr.mxu0 %v2512_v36  ;;  %2356 = vmatprep.subr.mxu1 %v2512_v36  ;;  %v2772_v54 = vld [vmem:[%s2716_s10 + $0x58] sm:$0xff]  ;;  %v429_v55 = vld [vmem:[%s2716_s10] sm:$0xff]  ;;  %v2788_v58 = vld [vmem:[%s2716_s10 + $0x8] sm:$0xff]  ;;  %s1725_s6 = sadd.s32 (%p2606_p9), %s2494_s19, %s2365_s17 }
  0x3d   : > { %2098 = vmatpush3.msra.mxu0 %v1894_v39  ;;  %2360 = vmatpush3.msra.mxu1 %v1894_v39  ;;  %v1911_v56 = vld [vmem:[%s2706_s5 + $0x40] sm:$0xff]  ;;  %v1936_v60 = vld [vmem:[%s2706_s5 + $0x98] sm:$0xff]  ;;  %v2803_v61 = vld [vmem:[%s2716_s10 + $0x10] sm:$0xff]  ;;  %s1990_s7 = sshll.u32 (%p2606_p9), %s1725_s6, 3 }
  0x3e   : > { %2099 = vmatprep.subr.mxu0 %v2512_v36  ;;  %2357 = vmatprep.subr.mxu1 %v2512_v36  ;;  %v695_v59 = vld [vmem:[%s2716_s10 + $0x1] sm:$0xff]  ;;  %v2806_v62 = vld [vmem:[%s2716_s10 + $0x9] sm:$0xff]  ;;  %v2821_v1 = vld [vmem:[%s2716_s10 + $0x18] sm:$0xff]  ;;  %s1727_s11 = scalar_lea.vmem (%p2606_p9), %s3236_s4, %s1990_s7 }
  0x3f   : > { %2100 = vmatpush3.msra.mxu0 %v1893_v40  ;;  %2361 = vmatpush3.msra.mxu1 %v1893_v40  ;;  %v1924_v63 = vld [vmem:[%s2706_s5 + $0x70] sm:$0xff]  ;;  %v1923_v3 = vld [vmem:[%s2706_s5 + $0x68] sm:$0xff]  ;;  %v2841_v5 = vld [vmem:[%s2716_s10 + $0x20] sm:$0xff] }
  0x40   : > { %2102 = vmatmul.mubr.msk.f32.vlgmr.msra.gmra.mxu0 %vm452_vm1, %v440_v41  ;;  %2114 = vmatmul.mubr.msk.f32.vlgmr.msra.gmra.mxu1 %vm452_vm1, %v2723_v42  ;;  %v1935_v0 = vld [vmem:[%s2706_s5 + $0x90] sm:$0xff]  ;;  %v1934_v4 = vld [vmem:[%s2706_s5 + $0x88] sm:$0xff]  ;;  %v2844_v6 = vld [vmem:[%s2716_s10 + $0x19] sm:$0xff] }
  0x41   : > { %2151 = vmatprep.subr.mxu0 %v2512_v36  ;;  %2122 = vmatprep.subr.mxu1 %v2512_v36  ;;  %v2824_v2 = vld [vmem:[%s2716_s10 + $0x11] sm:$0xff]  ;;  %v1922_v7 = vld [vmem:[%s2706_s5 + $0x60] sm:$0xff]  ;;  %v2859_v9 = vld [vmem:[%s2716_s10 + $0x28] sm:$0xff] }
  0x42   : > { %2152 = vmatpush3.msra.mxu0 %v1914_v43  ;;  %2104 = vmatprep.mubr.msk.f32.mxu0 %vm2513_vm0, %v2512_v36  ;;  %v1933_v8 = vld [vmem:[%s2706_s5 + $0x80] sm:$0xff]  ;;  %v2875_v11 = vld [vmem:[%s2716_s10 + $0x30] sm:$0xff]  ;;  %v1947_v15 = vld [vmem:[%s2706_s5 + $0xb8] sm:$0xff] }
  0x43   : > { %2116 = vmatprep.mubr.msk.f32.mxu1 %vm2513_vm0, %v2512_v36  ;;  %2123 = vmatpush3.msra.mxu1 %v439_v44  ;;  %v2862_v10 = vld [vmem:[%s2716_s10 + $0x21] sm:$0xff]  ;;  %v2878_v12 = vld [vmem:[%s2716_s10 + $0x29] sm:$0xff]  ;;  %v2889_v13 = vld [vmem:[%s2716_s10 + $0x31] sm:$0xff] }
  0x44   : > { %2105 = vmatmul.mubr.msk.f32.gmra.mxu0 %vm452_vm1, %v2735_v45  ;;  %2117 = vmatmul.mubr.msk.f32.gmra.mxu1 %vm452_vm1, %v2738_v46  ;;  %v835_v14 = vld [vmem:[%s2716_s10 + $0x80] sm:$0xff]  ;;  %v836_v16 = vld [vmem:[%s2716_s10 + $0x88] sm:$0xff]  ;;  %v1958_v18 = vld [vmem:[%s2706_s5 + $0xd8] sm:$0xff] }
  0x45   : > { %2153 = vmatprep.subr.mxu0 %v2512_v36  ;;  %2124 = vmatprep.subr.mxu1 %v2512_v36  ;;  %v975_v17 = vld [vmem:[%s2716_s10 + $0xc0] sm:$0xff]  ;;  %v1946_v19 = vld [vmem:[%s2706_s5 + $0xb0] sm:$0xff]  ;;  %v976_v21 = vld [vmem:[%s2716_s10 + $0xc8] sm:$0xff] }
  0x46   : > { %2154 = vmatpush3.msra.mxu0 %v1913_v47  ;;  %2125 = vmatpush3.msra.mxu1 %v438_v48  ;;  %v837_v20 = vld [vmem:[%s2716_s10 + $0x90] sm:$0xff]  ;;  %v1945_v23 = vld [vmem:[%s2706_s5 + $0xa8] sm:$0xff]  ;;  %v838_v24 = vld [vmem:[%s2716_s10 + $0x98] sm:$0xff] }
  0x47   : > { %2107 = vmatprep.mubr.msk.f32.mxu0 %vm2513_vm0, %v2512_v36  ;;  %2119 = vmatprep.mubr.msk.f32.mxu1 %vm2513_vm0, %v2512_v36  ;;  %v1957_v22 = vld [vmem:[%s2706_s5 + $0xd0] sm:$0xff]  ;;  %v1956_v26 = vld [vmem:[%s2706_s5 + $0xc8] sm:$0xff]  ;;  %v1944_v27 = vld [vmem:[%s2706_s5 + $0xa0] sm:$0xff] }
  0x48   : > { %2108 = vmatmul.mubr.msk.f32.gmra.mxu0 %vm452_vm1, %v2753_v49  ;;  %2120 = vmatmul.mubr.msk.f32.gmra.mxu1 %vm452_vm1, %v2756_v50  ;;  %v977_v25 = vld [vmem:[%s2716_s10 + $0xd0] sm:$0xff]  ;;  %v839_v28 = vld [vmem:[%s2716_s10 + $0xa0] sm:$0xff]  ;;  %v978_v29 = vld [vmem:[%s2716_s10 + $0xd8] sm:$0xff] }
  0x49   : > { %2126 = vmatprep.subr.mxu1 %v2512_v36  ;;  %2155 = vmatprep.subr.mxu0 %v2512_v36  ;;  %v1955_v30 = vld [vmem:[%s2706_s5 + $0xc0] sm:$0xff]  ;;  %v840_v31 = vld [vmem:[%s2716_s10 + $0xa8] sm:$0xff]  ;;  %v841_v33 = vld [vmem:[%s2716_s10 + $0xb0] sm:$0xff] }
  0x4a   : > { %2127 = vmatpush3.msra.mxu1 %v437_v51  ;;  %2156 = vmatpush3.msra.mxu0 %v1912_v52  ;;  %v979_v32 = vld [vmem:[%s2716_s10 + $0xe0] sm:$0xff]  ;;  %v980_v34 = vld [vmem:[%s2716_s10 + $0xe8] sm:$0xff]  ;;  %v981_v35 = vld [vmem:[%s2716_s10 + $0xf0] sm:$0xff] }
  0x4b   : > { %2128 = vmatprep.subr.mxu1 %v2512_v36  ;;  %2110 = vmatprep.mubr.msk.f32.mxu0 %vm2513_vm0, %v2512_v36  ;;  %v1115_v37 = vld [vmem:[%s2716_s10 + $0x81] sm:$0xff]  ;;  %v1969_v38 = vld [vmem:[%s2706_s5 + $0xf8] sm:$0xff]  ;;  %v1116_v39 = vld [vmem:[%s2716_s10 + $0x89] sm:$0xff] }
  0x4c   : > { %2129 = vmatpush3.msra.mxu1 %v436_v53  ;;  %2130 = vmatprep.mubr.msk.f32.mxu1 %vm2513_vm0, %v2512_v36  ;;  %v1980_v40 = vld [vmem:[%s2706_s5 + $0x118] sm:$0xff]  ;;  %v1968_v41 = vld [vmem:[%s2706_s5 + $0xf0] sm:$0xff]  ;;  %v1967_v47 = vld [vmem:[%s2706_s5 + $0xe8] sm:$0xff] }
  0x4d   : > { %2111 = vmatmul.mubr.msk.f32.gmra.mxu0 %vm452_vm1, %v2772_v54  ;;  %2131 = vmatmul.mubr.msk.f32.vlgmr.msra.gmra.mxu1 %vm452_vm1, %v429_v55  ;;  %v1117_v43 = vld [vmem:[%s2716_s10 + $0x91] sm:$0xff]  ;;  %v1118_v48 = vld [vmem:[%s2716_s10 + $0x99] sm:$0xff]  ;;  %v1978_v51 = vld [vmem:[%s2706_s5 + $0x108] sm:$0xff] }
  0x4e   : > { %2157 = vmatprep.subr.mxu0 %v2512_v36  ;;  %2180 = vmatprep.subr.mxu1 %v2512_v36  ;;  %v1979_v44 = vld [vmem:[%s2706_s5 + $0x110] sm:$0xff]  ;;  %v1966_v52 = vld [vmem:[%s2706_s5 + $0xe0] sm:$0xff] }
  0x4f   : > { %2158 = vmatpush3.msra.mxu0 %v1911_v56  ;;  %2133 = vmatprep.mubr.msk.f32.mxu1 %vm2513_vm0, %v2512_v36  ;;  %v1119_v53 = vld [vmem:[%s2716_s10 + $0xa1] sm:$0xff]  ;;  %v1120_v56 = vld [vmem:[%s2716_s10 + $0xa9] sm:$0xff] }
  0x50   : > { %2159 = vmatprep.mubr.msk.f32.mxu0 %vm2513_vm0, %v2512_v36  ;;  %2181 = vmatpush3.msra.mxu1 %v1925_v57  ;;  %v1977_v55 = vld [vmem:[%s2706_s5 + $0x100] sm:$0xff]  ;;  %v1121_v57 = vld [vmem:[%s2716_s10 + $0xb1] sm:$0xff]  ;;  %s2364_s5 = smul.u32 56, %s415_s24 }
  0x51   : > { %2134 = vmatmul.mubr.msk.f32.gmra.mxu1 %vm452_vm1, %v2788_v58  ;;  %2160 = vmatmul.mubr.msk.f32.vlgmr.msra.gmra.mxu0 %vm452_vm1, %v695_v59 }
  0x52   : > { %2209 = vmatprep.subr.mxu0 %v2512_v36  ;;  %2136 = vmatprep.mubr.msk.f32.mxu1 %vm2513_vm0, %v2512_v36  ;;  %s3159_s15 = scalar_lea.vmem [#allocation3], %s2364_s5 }
  0x53   : > { %2210 = vmatpush3.msra.mxu0 %v1936_v60  ;;  %2162 = vmatprep.mubr.msk.f32.mxu0 %vm2513_vm0, %v2512_v36 }
  0x54   : > { %2182 = vmatprep.subr.mxu1 %v2512_v36  ;;  %2211 = vmatprep.subr.mxu0 %v2512_v36 }
  0x55   : > { %2137 = vmatmul.mubr.msk.f32.gmra.mxu1 %vm452_vm1, %v2803_v61  ;;  %2163 = vmatmul.mubr.msk.f32.gmra.mxu0 %vm452_vm1, %v2806_v62 }
  0x56   : > { %2183 = vmatpush3.msra.mxu1 %v1924_v63  ;;  %2139 = vmatprep.mubr.msk.f32.mxu1 %vm2513_vm0, %v2512_v36 }
  0x57   : > { %2165 = vmatprep.mubr.msk.f32.mxu0 %vm2513_vm0, %v2512_v36  ;;  %2212 = vmatpush3.msra.mxu0 %v1935_v0 }
  0x58   : > { %2184 = vmatprep.subr.mxu1 %v2512_v36  ;;  %2213 = vmatprep.subr.mxu0 %v2512_v36 }
  0x59   : > { %2140 = vmatmul.mubr.msk.f32.gmra.mxu1 %vm452_vm1, %v2821_v1  ;;  %2166 = vmatmul.mubr.msk.f32.gmra.mxu0 %vm452_vm1, %v2824_v2 }
  0x5a   : > { %2142 = vmatprep.mubr.msk.f32.mxu1 %vm2513_vm0, %v2512_v36  ;;  %2168 = vmatprep.mubr.msk.f32.mxu0 %vm2513_vm0, %v2512_v36 }
  0x5b   : > { %2185 = vmatpush3.msra.mxu1 %v1923_v3  ;;  %2214 = vmatpush3.msra.mxu0 %v1934_v4 }
  0x5c   : > { %2186 = vmatprep.subr.mxu1 %v2512_v36  ;;  %2215 = vmatprep.subr.mxu0 %v2512_v36 }
  0x5d   : > { %2143 = vmatmul.mubr.msk.f32.gmra.mxu1 %vm452_vm1, %v2841_v5  ;;  %2169 = vmatmul.mubr.msk.f32.gmra.mxu0 %vm452_vm1, %v2844_v6 }
  0x5e   : > { %2145 = vmatprep.mubr.msk.f32.mxu1 %vm2513_vm0, %v2512_v36  ;;  %2171 = vmatprep.mubr.msk.f32.mxu0 %vm2513_vm0, %v2512_v36 }
  0x5f   : > { %2187 = vmatpush3.msra.mxu1 %v1922_v7  ;;  %2216 = vmatpush3.msra.mxu0 %v1933_v8 }
  0x60   : > { %2238 = vmatprep.subr.mxu1 %v2512_v36  ;;  %2267 = vmatprep.subr.mxu0 %v2512_v36 }
  0x61   : > { %2146 = vmatmul.mubr.msk.f32.gmra.mxu1 %vm452_vm1, %v2859_v9  ;;  %2172 = vmatmul.mubr.msk.f32.gmra.mxu0 %vm452_vm1, %v2862_v10 }
  0x62   : > { %2148 = vmatprep.mubr.msk.f32.mxu1 %vm2513_vm0, %v2512_v36  ;;  %2174 = vmatprep.mubr.msk.f32.mxu0 %vm2513_vm0, %v2512_v36 }
  0x65   : > { %2149 = vmatmul.mubr.msk.f32.gmra.mxu1 %vm452_vm1, %v2875_v11  ;;  %2175 = vmatmul.mubr.msk.f32.gmra.mxu0 %vm452_vm1, %v2878_v12 }
  0x66   : > { %2177 = vmatprep.mubr.msk.f32.mxu0 %vm2513_vm0, %v2512_v36  ;;  %2188 = vmatprep.mubr.msk.f32.mxu1 %vm2513_vm0, %v2512_v36 }
  0x69   : > { %2178 = vmatmul.mubr.msk.f32.gmra.mxu0 %vm452_vm1, %v2889_v13  ;;  %2189 = vmatmul.mubr.msk.f32.vlgmr.msra.gmra.mxu1 %vm452_vm1, %v835_v14 }
  0x6a   : > { %2191 = vmatprep.mubr.msk.f32.mxu1 %vm2513_vm0, %v2512_v36  ;;  %2217 = vmatprep.mubr.msk.f32.mxu0 %vm2513_vm0, %v2512_v36 }
  0x6b   : > { %2239 = vmatpush3.msra.mxu1 %v1947_v15 }
  0x6c   : > { %2240 = vmatprep.subr.mxu1 %v2512_v36 }
  0x6d   : > { %2192 = vmatmul.mubr.msk.f32.gmra.mxu1 %vm452_vm1, %v836_v16  ;;  %2218 = vmatmul.mubr.msk.f32.vlgmr.msra.gmra.mxu0 %vm452_vm1, %v975_v17 }
  0x6e   : > { %2268 = vmatpush3.msra.mxu0 %v1958_v18  ;;  %2194 = vmatprep.mubr.msk.f32.mxu1 %vm2513_vm0, %v2512_v36 }
  0x6f   : > { %2220 = vmatprep.mubr.msk.f32.mxu0 %vm2513_vm0, %v2512_v36  ;;  %2241 = vmatpush3.msra.mxu1 %v1946_v19 }
  0x70   : > { %2269 = vmatprep.subr.mxu0 %v2512_v36  ;;  %2242 = vmatprep.subr.mxu1 %v2512_v36 }
  0x71   : > { %2195 = vmatmul.mubr.msk.f32.gmra.mxu1 %vm452_vm1, %v837_v20  ;;  %2221 = vmatmul.mubr.msk.f32.gmra.mxu0 %vm452_vm1, %v976_v21 }
  0x72   : > { %2197 = vmatprep.mubr.msk.f32.mxu1 %vm2513_vm0, %v2512_v36  ;;  %2223 = vmatprep.mubr.msk.f32.mxu0 %vm2513_vm0, %v2512_v36 }
  0x73   : > { %2270 = vmatpush3.msra.mxu0 %v1957_v22  ;;  %2243 = vmatpush3.msra.mxu1 %v1945_v23 }
  0x74   : > { %2271 = vmatprep.subr.mxu0 %v2512_v36  ;;  %2244 = vmatprep.subr.mxu1 %v2512_v36 }
  0x75   : > { %2198 = vmatmul.mubr.msk.f32.gmra.mxu1 %vm452_vm1, %v838_v24  ;;  %2224 = vmatmul.mubr.msk.f32.gmra.mxu0 %vm452_vm1, %v977_v25 }
  0x76   : > { %2200 = vmatprep.mubr.msk.f32.mxu1 %vm2513_vm0, %v2512_v36  ;;  %2226 = vmatprep.mubr.msk.f32.mxu0 %vm2513_vm0, %v2512_v36 }
  0x77   : > { %2272 = vmatpush3.msra.mxu0 %v1956_v26  ;;  %2245 = vmatpush3.msra.mxu1 %v1944_v27 }
  0x78   : > { %2273 = vmatprep.subr.mxu0 %v2512_v36  ;;  %2296 = vmatprep.subr.mxu1 %v2512_v36 }
  0x79   : > { %2201 = vmatmul.mubr.msk.f32.gmra.mxu1 %vm452_vm1, %v839_v28  ;;  %2227 = vmatmul.mubr.msk.f32.gmra.mxu0 %vm452_vm1, %v978_v29 }
  0x7a   : > { %2203 = vmatprep.mubr.msk.f32.mxu1 %vm2513_vm0, %v2512_v36  ;;  %2229 = vmatprep.mubr.msk.f32.mxu0 %vm2513_vm0, %v2512_v36 }
  0x7b   : > { %2274 = vmatpush3.msra.mxu0 %v1955_v30 }
  0x7c   : > { %2325 = vmatprep.subr.mxu0 %v2512_v36 }
  0x7d   : > { %2204 = vmatmul.mubr.msk.f32.gmra.mxu1 %vm452_vm1, %v840_v31  ;;  %2230 = vmatmul.mubr.msk.f32.gmra.mxu0 %vm452_vm1, %v979_v32 }
  0x7e   : > { %2206 = vmatprep.mubr.msk.f32.mxu1 %vm2513_vm0, %v2512_v36  ;;  %2232 = vmatprep.mubr.msk.f32.mxu0 %vm2513_vm0, %v2512_v36 }
  0x81   : > { %2207 = vmatmul.mubr.msk.f32.gmra.mxu1 %vm452_vm1, %v841_v33  ;;  %2233 = vmatmul.mubr.msk.f32.gmra.mxu0 %vm452_vm1, %v980_v34 }
  0x82   : > { %2235 = vmatprep.mubr.msk.f32.mxu0 %vm2513_vm0, %v2512_v36  ;;  %2246 = vmatprep.mubr.msk.f32.mxu1 %vm2513_vm0, %v2512_v36 }
  0x85   : > { %2236 = vmatmul.mubr.msk.f32.gmra.mxu0 %vm452_vm1, %v981_v35  ;;  %2247 = vmatmul.mubr.msk.f32.vlgmr.msra.gmra.mxu1 %vm452_vm1, %v1115_v37 }
  0x86   : > { %2249 = vmatprep.mubr.msk.f32.mxu1 %vm2513_vm0, %v2512_v36  ;;  %2275 = vmatprep.mubr.msk.f32.mxu0 %vm2513_vm0, %v2512_v36 }
  0x87   : > { %2297 = vmatpush3.msra.mxu1 %v1969_v38 }
  0x88   : > { %2298 = vmatprep.subr.mxu1 %v2512_v36 }
  0x89   : > { %2250 = vmatmul.mubr.msk.f32.gmra.mxu1 %vm452_vm1, %v1116_v39  ;;  %2276 = vmatmul.mubr.msk.f32.vlgmr.msra.gmra.mxu0 %vm452_vm1, %v2788_v58  ;;  %v1261_v58 = vld [vmem:[%s2716_s10 + $0x38] sm:$0xff] }
  0x8a   : > { %2326 = vmatpush3.msra.mxu0 %v1980_v40  ;;  %2252 = vmatprep.mubr.msk.f32.mxu1 %vm2513_vm0, %v2512_v36 }
  0x8b   : > { %2278 = vmatprep.mubr.msk.f32.mxu0 %vm2513_vm0, %v2512_v36  ;;  %2299 = vmatpush3.msra.mxu1 %v1968_v41 }
  0x8c   : > { %2327 = vmatprep.subr.mxu0 %v2512_v36  ;;  %2300 = vmatprep.subr.mxu1 %v2512_v36 }
  0x8d   : > { %2253 = vmatmul.mubr.msk.f32.gmra.mxu1 %vm452_vm1, %v1117_v43  ;;  %2279 = vmatmul.mubr.msk.f32.gmra.mxu0 %vm452_vm1, %v2803_v61 }
  0x8e   : > { %2255 = vmatprep.mubr.msk.f32.mxu1 %vm2513_vm0, %v2512_v36  ;;  %2281 = vmatprep.mubr.msk.f32.mxu0 %vm2513_vm0, %v2512_v36 }
  0x8f   : > { %2328 = vmatpush3.msra.mxu0 %v1979_v44  ;;  %2301 = vmatpush3.msra.mxu1 %v1967_v47 }
  0x90   : > { %2329 = vmatprep.subr.mxu0 %v2512_v36  ;;  %2302 = vmatprep.subr.mxu1 %v2512_v36 }
  0x91   : > { %2256 = vmatmul.mubr.msk.f32.gmra.mxu1 %vm452_vm1, %v1118_v48  ;;  %2282 = vmatmul.mubr.msk.f32.gmra.mxu0 %vm452_vm1, %v2821_v1 }
  0x92   : > { %2258 = vmatprep.mubr.msk.f32.mxu1 %vm2513_vm0, %v2512_v36  ;;  %2284 = vmatprep.mubr.msk.f32.mxu0 %vm2513_vm0, %v2512_v36 }
  0x93   : > { %2330 = vmatpush3.msra.mxu0 %v1978_v51  ;;  %2303 = vmatpush3.msra.mxu1 %v1966_v52 }
  0x94   : > { %2331 = vmatprep.subr.mxu0 %v2512_v36 }
  0x95   : > { %2259 = vmatmul.mubr.msk.f32.gmra.mxu1 %vm452_vm1, %v1119_v53  ;;  %2285 = vmatmul.mubr.msk.f32.gmra.mxu0 %vm452_vm1, %v2841_v5 }
  0x96   : > { %2261 = vmatprep.mubr.msk.f32.mxu1 %vm2513_vm0, %v2512_v36  ;;  %2287 = vmatprep.mubr.msk.f32.mxu0 %vm2513_vm0, %v2512_v36 }
  0x97   : > { %2332 = vmatpush3.msra.mxu0 %v1977_v55 }
  0x99   : > { %2262 = vmatmul.mubr.msk.f32.gmra.mxu1 %vm452_vm1, %v1120_v56  ;;  %2288 = vmatmul.mubr.msk.f32.gmra.mxu0 %vm452_vm1, %v2859_v9 }
  0x9a   : > { %2264 = vmatprep.mubr.msk.f32.mxu1 %vm2513_vm0, %v2512_v36  ;;  %2290 = vmatprep.mubr.msk.f32.mxu0 %vm2513_vm0, %v2512_v36 }
  0x9d   : > { %2265 = vmatmul.mubr.msk.f32.gmra.mxu1 %vm452_vm1, %v1121_v57  ;;  %2291 = vmatmul.mubr.msk.f32.gmra.mxu0 %vm452_vm1, %v2875_v11 }
  0x9e   : > { %2293 = vmatprep.mubr.msk.f32.mxu0 %vm2513_vm0, %v2512_v36  ;;  %2304 = vmatprep.mubr.msk.f32.mxu1 %vm2513_vm0, %v2512_v36 }
  0xa1   : > { %2294 = vmatmul.mubr.msk.f32.gmra.mxu0 %vm452_vm1, %v1261_v58  ;;  %2305 = vmatmul.mubr.msk.f32.vlgmr.msra.gmra.mxu1 %vm452_vm1, %v2735_v45  ;;  %v1541_v45 = vld [vmem:[%s2716_s10 + $0x39] sm:$0xff] }
  0xa2   : > { %2307 = vmatprep.mubr.msk.f32.mxu1 %vm2513_vm0, %v2512_v36  ;;  %2333 = vmatprep.mubr.msk.f32.mxu0 %vm2513_vm0, %v2512_v36 }
  0xa5   : > { %2308 = vmatmul.mubr.msk.f32.gmra.mxu1 %vm452_vm1, %v2753_v49  ;;  %2334 = vmatmul.mubr.msk.f32.vlgmr.msra.gmra.mxu0 %vm452_vm1, %v2806_v62 }
  0xa6   : > { %2310 = vmatprep.mubr.msk.f32.mxu1 %vm2513_vm0, %v2512_v36  ;;  %2336 = vmatprep.mubr.msk.f32.mxu0 %vm2513_vm0, %v2512_v36 }
  0xa9   : > { %2311 = vmatmul.mubr.msk.f32.gmra.mxu1 %vm452_vm1, %v2772_v54  ;;  %2337 = vmatmul.mubr.msk.f32.gmra.mxu0 %vm452_vm1, %v2824_v2 }
  0xaa   : > { %2313 = vmatprep.mubr.msk.f32.mxu1 %vm2513_vm0, %v2512_v36  ;;  %2339 = vmatprep.mubr.msk.f32.mxu0 %vm2513_vm0, %v2512_v36 }
  0xad   : > { %2314 = vmatmul.mubr.msk.f32.gmra.mxu1 %vm452_vm1, %v2723_v42  ;;  %2340 = vmatmul.mubr.msk.f32.gmra.mxu0 %vm452_vm1, %v2844_v6  ;;  %v1401_v42 = vld [vmem:[%s2716_s10 + $0x78] sm:$0xff] }
  0xae   : > { %2316 = vmatprep.mubr.msk.f32.mxu1 %vm2513_vm0, %v2512_v36  ;;  %2342 = vmatprep.mubr.msk.f32.mxu0 %vm2513_vm0, %v2512_v36 }
  0xb1   : > { %2317 = vmatmul.mubr.msk.f32.gmra.mxu1 %vm452_vm1, %v2738_v46  ;;  %2343 = vmatmul.mubr.msk.f32.gmra.mxu0 %vm452_vm1, %v2862_v10 }
  0xb2   : > { %2319 = vmatprep.mubr.msk.f32.mxu1 %vm2513_vm0, %v2512_v36  ;;  %2345 = vmatprep.mubr.msk.f32.mxu0 %vm2513_vm0, %v2512_v36 }
  0xb5   : > { %2320 = vmatmul.mubr.msk.f32.gmra.mxu1 %vm452_vm1, %v2756_v50  ;;  %2346 = vmatmul.mubr.msk.f32.gmra.mxu0 %vm452_vm1, %v2878_v12 }
  0xb6   : > { %2322 = vmatprep.mubr.msk.f32.mxu1 %vm2513_vm0, %v2512_v36  ;;  %2348 = vmatprep.mubr.msk.f32.mxu0 %vm2513_vm0, %v2512_v36 }
  0xb9   : > { %2323 = vmatmul.mubr.msk.f32.gmra.mxu1 %vm452_vm1, %v1401_v42  ;;  %2349 = vmatmul.mubr.msk.f32.gmra.mxu0 %vm452_vm1, %v2889_v13 }
  0xba   : > { %2351 = vmatprep.mubr.msk.f32.mxu0 %vm2513_vm0, %v2512_v36 }
  0xbd   : > { %2352 = vmatmul.mubr.msk.f32.gmra.mxu0 %vm452_vm1, %v1541_v45 }
 0x100   : > { %v540_v46 = vpop.f32.mrf.mxu0  ;;  %v560_v49 = vpop.f32.mrf.mxu1 }
 0x102   : > { %v2103_v50 = vpop.f32.mrf.mxu0  ;;  %v2115_v54 = vpop.f32.mrf.mxu1 }
 0x104   : > { %v545_v59 = vpop.f32.mrf.mxu0  ;;  %v565_v60 = vpop.f32.mrf.mxu1 }
 0x106   : > { %v2106_v61 = vpop.f32.mrf.mxu0  ;;  %v2118_v62 = vpop.f32.mrf.mxu1 }
 0x108   : > { %v550_v63 = vpop.f32.mrf.mxu0  ;;  %v570_v0 = vpop.f32.mrf.mxu1 }
 0x10a   : > { %v2109_v1 = vpop.f32.mrf.mxu0  ;;  %v2121_v2 = vpop.f32.mrf.mxu1 }
 0x10d   : > { %v555_v3 = vpop.f32.mrf.mxu0  ;;  %v661_v4 = vpop.f32.mrf.mxu1 }
 0x10e   : > { %v662_v5 = vadd.f32 %v661_v4, %v540_v46 }
 0x10f   : > { %v2112_v6 = vpop.f32.mrf.mxu0  ;;  %v2132_v36 = vpop.f32.mrf.mxu1 }
 0x111   : > { %v666_v7 = vpop.f32.mrf.mxu1  ;;  %v794_v8 = vpop.f32.mrf.mxu0 }
 0x112   : > { %v667_v9 = vadd.f32 %v666_v7, %v545_v59  ;;  %v3089_v10 = vadd.f32 %v794_v8, %v662_v5 }
 0x113   : > { %v2135_v11 = vpop.f32.mrf.mxu1  ;;  %v2161_v12 = vpop.f32.mrf.mxu0 }
 0x115   : > { %v671_v13 = vpop.f32.mrf.mxu1  ;;  %v799_v14 = vpop.f32.mrf.mxu0 }
 0x116   : > { %v672_v15 = vadd.f32 %v671_v13, %v550_v63  ;;  %v3091_v16 = vadd.f32 %v799_v14, %v667_v9 }
 0x117   : > { %v2138_v17 = vpop.f32.mrf.mxu1  ;;  %v2164_v18 = vpop.f32.mrf.mxu0 }
 0x119   : > { %v676_v19 = vpop.f32.mrf.mxu1  ;;  %v804_v20 = vpop.f32.mrf.mxu0 }
 0x11a   : > { %v677_v21 = vadd.f32 %v676_v19, %v555_v3  ;;  %v3093_v22 = vadd.f32 %v804_v20, %v672_v15 }
 0x11b   : > { %v2141_v23 = vpop.f32.mrf.mxu1  ;;  %v2167_v24 = vpop.f32.mrf.mxu0 }
 0x11d   : > { %v681_v25 = vpop.f32.mrf.mxu1  ;;  %v809_v26 = vpop.f32.mrf.mxu0 }
 0x11e   : > { %v682_v27 = vadd.f32 %v681_v25, %v560_v49  ;;  %v3095_v28 = vadd.f32 %v809_v26, %v677_v21 }
 0x11f   : > { %v2144_v29 = vpop.f32.mrf.mxu1  ;;  %v2170_v30 = vpop.f32.mrf.mxu0 }
 0x121   : > { %v686_v31 = vpop.f32.mrf.mxu1  ;;  %v814_v32 = vpop.f32.mrf.mxu0 }
 0x122   : > { %v687_v33 = vadd.f32 %v686_v31, %v565_v60  ;;  %v3097_v34 = vadd.f32 %v814_v32, %v682_v27 }
 0x123   : > { %v2147_v35 = vpop.f32.mrf.mxu1  ;;  %v2173_v37 = vpop.f32.mrf.mxu0 }
 0x125   : > { %v691_v38 = vpop.f32.mrf.mxu1  ;;  %v819_v39 = vpop.f32.mrf.mxu0 }
 0x126   : > { %v692_v40 = vadd.f32 %v691_v38, %v570_v0  ;;  %v3099_v41 = vadd.f32 %v819_v39, %v687_v33 }
 0x127   : > { %v2150_v43 = vpop.f32.mrf.mxu1  ;;  %v2176_v44 = vpop.f32.mrf.mxu0 }
 0x129   : > { %v824_v47 = vpop.f32.mrf.mxu0  ;;  %v934_v48 = vpop.f32.mrf.mxu1 }
 0x12a   : > { %v3101_v51 = vadd.f32 %v824_v47, %v692_v40  ;;  %v968_v38 = vadd.f32 %v934_v48, %v3089_v10 }
 0x12b   : > { %v2179_v52 = vpop.f32.mrf.mxu0  ;;  %v2190_v53 = vpop.f32.mrf.mxu1 }
 0x12d   : > { %v939_v55 = vpop.f32.mrf.mxu1  ;;  %v1074_v56 = vpop.f32.mrf.mxu0 }
 0x12e   : > { %v1108_v43 = vadd.f32 %v1074_v56, %v968_v38  ;;  %v969_v52 = vadd.f32 %v939_v55, %v3091_v16 }
 0x12f   : > { %v2193_v57 = vpop.f32.mrf.mxu1  ;;  %v2219_v58 = vpop.f32.mrf.mxu0 }
 0x131   : > { %v944_v42 = vpop.f32.mrf.mxu1  ;;  %v1079_v45 = vpop.f32.mrf.mxu0 }
 0x132   : > { %v970_v56 = vadd.f32 %v944_v42, %v3093_v22 }
 0x133   : > { %v2196_v46 = vpop.f32.mrf.mxu1  ;;  %v2222_v49 = vpop.f32.mrf.mxu0 }
 0x134   : > { %v1109_v46 = vadd.f32 %v1079_v45, %v969_v52 }
 0x135   : > { %v3103_v50 = vpop.f32.mrf.mxu1  ;;  %v3105_v54 = vpop.f32.mrf.mxu0 }
 0x136   : > { %v1110_v45 = vadd.f32 %v3105_v54, %v970_v56  ;;  %v971_v42 = vadd.f32 %v3103_v50, %v3095_v28 }
 0x137   : > { %v2199_v59 = vpop.f32.mrf.mxu1  ;;  %v2225_v60 = vpop.f32.mrf.mxu0 }
 0x139   : > { %v3107_v61 = vpop.f32.mrf.mxu1  ;;  %v3109_v62 = vpop.f32.mrf.mxu0 }
 0x13b   : > { %v2202_v63 = vpop.f32.mrf.mxu1  ;;  %v2228_v0 = vpop.f32.mrf.mxu0 }
 0x13c   : > { %v3145_v63 = vld [vmem:[%s425_s14] ss:$0 sm:$0xff] }
 0x13d   : > { %v3111_v1 = vpop.f32.mrf.mxu1  ;;  %v3113_v2 = vpop.f32.mrf.mxu0 }
 0x13f   : > { %v2205_v3 = vpop.f32.mrf.mxu1  ;;  %v2231_v4 = vpop.f32.mrf.mxu0 }
 0x140   : > { %v3148_v4 = vld [vmem:[%s428_s29] ss:$0 sm:$0xff] }
 0x141   : > { %v3115_v5 = vpop.f32.mrf.mxu1  ;;  %v3117_v6 = vpop.f32.mrf.mxu0 }
 0x143   : > { %v2208_v36 = vpop.f32.mrf.mxu1  ;;  %v2234_v7 = vpop.f32.mrf.mxu0 }
 0x145   : > { %v3119_v8 = vpop.f32.mrf.mxu0  ;;  %v1214_v9 = vpop.f32.mrf.mxu1 }
 0x146   : > { %v1248_v53 = vadd.f32 %v1214_v9, %v1108_v43 }
 0x147   : > { %v2237_v11 = vpop.f32.mrf.mxu0  ;;  %v2248_v12 = vpop.f32.mrf.mxu1 }
 0x149   : > { %v1219_v13 = vpop.f32.mrf.mxu1  ;;  %v1354_v14 = vpop.f32.mrf.mxu0 }
 0x14a   : > { %v1388_v49 = vadd.f32 %v1354_v14, %v1248_v53  ;;  %v1249_v59 = vadd.f32 %v1219_v13, %v1109_v46  ;;  %v1111_v14 = vadd.f32 %v3109_v62, %v971_v42 }
 0x14b   : > { %v2251_v15 = vpop.f32.mrf.mxu1  ;;  %v2277_v17 = vpop.f32.mrf.mxu0 }
 0x14d   : > { %v1224_v18 = vpop.f32.mrf.mxu1  ;;  %v1359_v19 = vpop.f32.mrf.mxu0 }
 0x14e   : > { %v1389_v0 = vadd.f32 %v1359_v19, %v1249_v59  ;;  %v1250_v7 = vadd.f32 %v1224_v18, %v1110_v45  ;;  %v972_v19 = vadd.f32 %v3107_v61, %v3097_v34  ;;  %v973_v61 = vadd.f32 %v3111_v1, %v3099_v41 }
 0x14f   : > { %v2254_v20 = vpop.f32.mrf.mxu1  ;;  %v2280_v21 = vpop.f32.mrf.mxu0  ;;  %v974_v41 = vadd.f32 %v3115_v5, %v3101_v51 }
 0x151   : > { %v1229_v23 = vpop.f32.mrf.mxu1  ;;  %v1364_v24 = vpop.f32.mrf.mxu0 }
 0x152   : > { %v1390_v15 = vadd.f32 %v1364_v24, %v1250_v7 }
 0x153   : > { %v2257_v25 = vpop.f32.mrf.mxu1  ;;  %v2283_v26 = vpop.f32.mrf.mxu0 }
 0x154   : > { %v1251_v25 = vadd.f32 %v1229_v23, %v1111_v14 }
 0x155   : > { %v3121_v27 = vpop.f32.mrf.mxu1  ;;  %v1369_v29 = vpop.f32.mrf.mxu0 }
 0x157   : > { %v2260_v30 = vpop.f32.mrf.mxu1  ;;  %v2286_v31 = vpop.f32.mrf.mxu0 }
 0x158   : > { %v1112_v31 = vadd.f32 %v3113_v2, %v972_v19 }
 0x159   : > { %v3123_v32 = vpop.f32.mrf.mxu1  ;;  %v3125_v33 = vpop.f32.mrf.mxu0 }
 0x15b   : > { %v2263_v35 = vpop.f32.mrf.mxu1  ;;  %v2289_v37 = vpop.f32.mrf.mxu0 }
 0x15c   : > { %v1391_v35 = vadd.f32 %v1369_v29, %v1251_v25  ;;  %v1252_v37 = vadd.f32 %v3121_v27, %v1112_v31 }
 0x15d   : > { %v3129_v39 = vpop.f32.mrf.mxu1  ;;  %v3131_v40 = vpop.f32.mrf.mxu0 }
 0x15e   : > { %v1392_v52 = vadd.f32 %v3125_v33, %v1252_v37  ;;  %v1114_v33 = vadd.f32 %v3119_v8, %v974_v41 }
 0x15f   : > { %v2266_v44 = vpop.f32.mrf.mxu1  ;;  %v2292_v47 = vpop.f32.mrf.mxu0 }
 0x160   : > { %v1113_v47 = vadd.f32 %v3117_v6, %v973_v61 }
 0x161   : > { %v3135_v57 = vpop.f32.mrf.mxu0  ;;  %v1494_v58 = vpop.f32.mrf.mxu1 }
 0x162   : > { %v1528_v60 = vadd.f32 %v1494_v58, %v1388_v49  ;;  %v1253_v46 = vadd.f32 %v3123_v32, %v1113_v47 }
 0x163   : > { %v2295_v10 = vpop.f32.mrf.mxu0  ;;  %v2306_v48 = vpop.f32.mrf.mxu1 }
 0x164   : > { %v1393_v59 = vadd.f32 %v3131_v40, %v1253_v46 }
 0x165   : > { %v1499_v16 = vpop.f32.mrf.mxu1  ;;  %v1634_v55 = vpop.f32.mrf.mxu0 }
 0x166   : > { %v1668_v3 = vadd.f32 %v1634_v55, %v1528_v60  ;;  %v1529_v9 = vadd.f32 %v1499_v16, %v1389_v0  ;;  %v1254_v55 = vadd.f32 %v3129_v39, %v1114_v33 }
 0x167   : > { %v2309_v36 = vpop.f32.mrf.mxu1  ;;  %v2335_v22 = vpop.f32.mrf.mxu0 }
 0x168   : > { %v1682_v11 = vmul.f32 %v3145_v63, %v1668_v3  ;;  %v1394_v22 = vadd.f32 %v3135_v57, %v1254_v55 }
 0x169   : > { %v1504_v12 = vpop.f32.mrf.mxu1  ;;  %v1639_v13 = vpop.f32.mrf.mxu0 }
 0x16a   : > { %v1696_v54 = vadd.f32 %v3148_v4, %v1682_v11  ;;  %v1669_v17 = vadd.f32 %v1639_v13, %v1529_v9  ;;  %v1530_v28 = vadd.f32 %v1504_v12, %v1390_v15 }
 0x16b   : > { %v2312_v20 = vpop.f32.mrf.mxu1  ;;  %v2338_v21 = vpop.f32.mrf.mxu0 }
 0x16c   : > { %v1703_v26 = vmax.f32 %v1696_v54, 0.0  ;;  %v1683_v50 = vmul.f32 %v3145_v63, %v1669_v17 }
 0x16d   : > { %v1509_v18 = vpop.f32.mrf.mxu1  ;;  %v1644_v30 = vpop.f32.mrf.mxu0 }
 0x16e   : > { %1710 = vst [vmem:[%s3159_s15] sm:$0xff] %v1703_v26  ;;  %v1697_v62 = vadd.f32 %v3148_v4, %v1683_v50  ;;  %v1670_v34 = vadd.f32 %v1644_v30, %v1530_v28  ;;  %v1531_v43 = vadd.f32 %v1509_v18, %v1391_v35 }
 0x16f   : > { %v2315_v23 = vpop.f32.mrf.mxu1  ;;  %v2341_v24 = vpop.f32.mrf.mxu0 }
 0x170   : > { %v1704_v38 = vmax.f32 %v1697_v62, 0.0  ;;  %v1684_v2 = vmul.f32 %v3145_v63, %v1670_v34 }
 0x171   : > { %v1514_v29 = vpop.f32.mrf.mxu1  ;;  %v1649_v44 = vpop.f32.mrf.mxu0 }
 0x172   : > { %1711 = vst [vmem:[%s3159_s15 + $0x8] sm:$0xff] %v1704_v38  ;;  %v1698_v53 = vadd.f32 %v3148_v4, %v1684_v2  ;;  %v1671_v58 = vadd.f32 %v1649_v44, %v1531_v43  ;;  %v1532_v10 = vadd.f32 %v1514_v29, %v1392_v52 }
 0x173   : > { %v2318_v1 = vpop.f32.mrf.mxu1  ;;  %v2344_v27 = vpop.f32.mrf.mxu0 }
 0x174   : > { %v1705_v49 = vmax.f32 %v1698_v53, 0.0  ;;  %v1685_v48 = vmul.f32 %v3145_v63, %v1671_v58 }
 0x175   : > { %v1519_v56 = vpop.f32.mrf.mxu1  ;;  %v1654_v6 = vpop.f32.mrf.mxu0  ;;  %v1768_v20 = vld [vmem:[%s3159_s15] sm:$0xff] (%p2606_p9) }
 0x176   : > { %1712 = vst [vmem:[%s3159_s15 + $0x10] sm:$0xff] %v1705_v49  ;;  %v1699_v60 = vadd.f32 %v3148_v4, %v1685_v48  ;;  %v1672_v16 = vadd.f32 %v1654_v6, %v1532_v10  ;;  %v1533_v45 = vadd.f32 %v1519_v56, %v1393_v59  ;;  %1769 = vst [vmem:[%s1727_s11] sm:$0xff] (%p2606_p9), %v1768_v20 }
 0x177   : > { %v2321_v51 = vpop.f32.mrf.mxu1  ;;  %v2347_v5 = vpop.f32.mrf.mxu0 }
 0x178   : > { %v1706_v32 = vmax.f32 %v1699_v60, 0.0  ;;  %v1686_v0 = vmul.f32 %v3145_v63, %v1672_v16 }
 0x179   : > { %v1524_v3 = vpop.f32.mrf.mxu1  ;;  %v1659_v36 = vpop.f32.mrf.mxu0 }
 0x17a   : > { %1713 = vst [vmem:[%s3159_s15 + $0x18] sm:$0xff] %v1706_v32  ;;  %v1700_v8 = vadd.f32 %v3148_v4, %v1686_v0  ;;  %v1673_v40 = vadd.f32 %v1659_v36, %v1533_v45  ;;  %v1534_v11 = vadd.f32 %v1524_v3, %v1394_v22 }
 0x17b   : > { %v2350_v42 = vpop.f32.mrf.mxu0  ;;  %v2324_v7 = vpop.f32.mrf.mxu1 }
 0x17c   : > { %v1707_v9 = vmax.f32 %v1700_v8, 0.0  ;;  %v1687_v39 = vmul.f32 %v3145_v63, %v1673_v40 }
 0x17d   : > { %v1664_v12 = vpop.f32.mrf.mxu0  ;;  %v1772_v21 = vld [vmem:[%s3159_s15 + $0x10] sm:$0xff] (%p2606_p9) }
 0x17e   : > { %1714 = vst [vmem:[%s3159_s15 + $0x20] sm:$0xff] %v1707_v9  ;;  %v1701_v13 = vadd.f32 %v3148_v4, %v1687_v39  ;;  %v1674_v14 = vadd.f32 %v1664_v12, %v1534_v11  ;;  %1773 = vst [vmem:[%s1727_s11 + $0x30] sm:$0xff] (%p2606_p9), %v1772_v21 }
 0x17f   : > { %v2353_v15 = vpop.f32.mrf.mxu0 }
 0x180   : > { %v1708_v54 = vmax.f32 %v1701_v13, 0.0  ;;  %v1688_v57 = vmul.f32 %v3145_v63, %v1674_v14  ;;  %v1770_v63 = vld [vmem:[%s3159_s15 + $0x8] sm:$0xff] (%p2606_p9) }
 0x181   : > { %v1774_v25 = vld [vmem:[%s3159_s15 + $0x18] sm:$0xff] (%p2606_p9)  ;;  %1771 = vst [vmem:[%s1727_s11 + $0x18] sm:$0xff] (%p2606_p9), %v1770_v63 }
 0x182   : > { %1715 = vst [vmem:[%s3159_s15 + $0x28] sm:$0xff] %v1708_v54  ;;  %v1702_v17 = vadd.f32 %v3148_v4, %v1688_v57  ;;  %1723 = sbr.rel (!%p2606_p9) target bundleno = 399 (0x18f), region = 78  ;;  %1775 = vst [vmem:[%s1727_s11 + $0x48] sm:$0xff] (%p2606_p9), %v1774_v25 }
 0x184   : > { %v1709_v19 = vmax.f32 %v1702_v17, 0.0 }
 0x185   : > { %v1776_v4 = vld [vmem:[%s3159_s15 + $0x20] sm:$0xff] (%p2606_p9) }
 0x186   : > { %1716 = vst [vmem:[%s3159_s15 + $0x30] sm:$0xff] %v1709_v19  ;;  %1777 = vst [vmem:[%s1727_s11 + $0x60] sm:$0xff] (%p2606_p9), %v1776_v4 }
 0x189   : > { %v1778_v26 = vld [vmem:[%s3159_s15 + $0x28] sm:$0xff] }
 0x18a   : > { %1779 = vst [vmem:[%s1727_s11 + $0x78] sm:$0xff] %v1778_v26 }
 0x18d   : > { %v1780_v28 = vld [vmem:[%s3159_s15 + $0x30] sm:$0xff] }
 0x18e   : > { %1781 = vst [vmem:[%s1727_s11 + $0x90] sm:$0xff] %v1780_v28 }
 0x18f PF: > { %s14_s23 = sadd.s32 1, %s2510_s23   ;;  %s3238_s15 = smov %s2482_s16 }
 0x190   : > { %p11_p2 = scmp.ge.s32.totalorder %s14_s23, 8   ;;  %s3239_s16 = smov %s2611_s8 }
 0x191   : > { %s3240_s17 = smov %s2490_s18  ;;  %s3241_s18 = smov %s2600_s30 }
 0x192   : > { %s3242_s19 = smov %s2502_s21  ;;  %s3243_s20 = smov %s2506_s22 }
 0x193   : > { %s3244_s21 = smov %s3247_s25  ;;  %s3245_s22 = smov %s3251_s26 }
 0x194   :  { %13 = sbr.rel (!%p11_p2) target bundleno = 5 (0x5), region = 164 }

</bundles_post_ra>
